<compile_context>
chip_gen: v7x
topology: tpu7x:2x2x1
jax: 0.10.0
libtpu: 0.0.40
codegen_flags: <defaults>
</compile_context>

<pallas_src>
import functools

import jax
import jax.numpy as jnp
from jax.experimental import pallas as pl
from jax.experimental.pallas import tpu as pltpu


def _round_up(a, m):
    return ((a + m - 1) // m) * m


def _make_kernel(KH, KW, stride, Wp, n_rows, p_true, eps):
    """Fused conv (KH*KW shifted matmuls) + BN(train stats) + ReLU kernel."""
    inv_p = 1.0 / float(p_true)

    def kernel(x_ref, w_ref, g_ref, bt_ref, m_ref, y_ref,
               acc_ref, sum_ref, ssq_ref, scale_ref, shift_ref):
        ph = pl.program_id(0)              # 0 = stats pass, 1 = BN-affine + ReLU
        n = pl.program_id(1)               # image index

        # ---- in-kernel im2col: conv = sum over (kh, kw) of shifted matmuls ----
        # x_ref[0] is the flattened padded image (S_pad, Cin) in bf16; the
        # window for tap (kh, kw) at stride 1 is a contiguous slice starting at
        # kh*Wp + kw.  bf16 x bf16 -> f32 accumulate on the MXU into VMEM.
        for kh in range(KH):
            for kw in range(KW):
                start = kh * Wp + kw
                if stride == 1:
                    a = x_ref[0, start:start + n_rows, :]
                else:
                    # TODO(synk): stride > 1 uses a strided sublane slice; not
                    # exercised by the module's default config and unvalidated.
                    a = x_ref[0, pl.ds(start, n_rows, stride=stride), :]
                contrib = jnp.dot(a, w_ref[kh * KW + kw],
                                  preferred_element_type=jnp.float32)
                if kh == 0 and kw == 0:
                    acc_ref[...] = contrib
                else:
                    acc_ref[...] += contrib

        acc = acc_ref[...]

        @pl.when(ph == 0)
        def _stats_pass():
            @pl.when(n == 0)
            def _():
                sum_ref[...] = jnp.zeros_like(sum_ref)
                ssq_ref[...] = jnp.zeros_like(ssq_ref)

            # Mask the (KW-1)-wide horizontal junk columns out of the stats.
            # (Vertical / channel padding contributes exact zeros: x is zero
            #  padded and the conv bias is not added, so no masking needed.)
            av = acc * m_ref[...]
            sum_ref[...] += jnp.sum(av, axis=0, keepdims=True)
            ssq_ref[...] += jnp.sum(av * av, axis=0, keepdims=True)

            @pl.when(n == pl.num_programs(1) - 1)
            def _():
                mean = sum_ref[...] * inv_p
                # TODO(synk): E[x^2]-mean^2 in f32; use a shifted sum-of-squares
                # if |mean| >> std on real workloads.
                var = ssq_ref[...] * inv_p - mean * mean
                inv_std = jax.lax.rsqrt(var + eps)
                scale = g_ref[...] * inv_std
                scale_ref[...] = scale
                shift_ref[...] = bt_ref[...] - mean * scale

        @pl.when(ph == 1)
        def _bn_relu_pass():
            y_ref[0] = jnp.maximum(acc * scale_ref[...] + shift_ref[...], 0.0)

    return kernel


@functools.partial(jax.jit, static_argnames=("stride", "padding", "eps"))
def conv2d_bn_relu(x, w, b, gamma, beta, *, stride=1, padding=0, eps=1e-5):
    """nn.Conv2d -> nn.BatchNorm2d (training-mode forward) -> ReLU, NCHW in/out.

    The conv bias `b` cancels exactly against the BatchNorm batch-mean
    subtraction in the forward output, so it never enters the kernel.
    """
    del b
    N, Cin, H, W = x.shape
    Cout, Cin_w, KH, KW = w.shape
    assert Cin_w == Cin  # TODO(synk): groups > 1 not implemented (module default groups=1)

    OH = (H + 2 * padding - KH) // stride + 1
    OW = (W + 2 * padding - KW) // stride + 1
    Hp = H + 2 * padding
    Wp = max(W + 2 * padding, (OW - 1) * stride + KW)
    n_rows = OH * Wp                                   # conv rows incl. horizontal junk
    start_max = (KH - 1) * Wp + (KW - 1)
    S_pad = max(Hp * Wp, start_max + stride * (n_rows - 1) + 1)
    P_true = N * OH * OW

    # ---- activations: ONE bf16 NHWC materialization, zero padded -------------
    x_nhwc = jnp.transpose(x, (0, 2, 3, 1)).astype(jnp.bfloat16)
    x_pad = jnp.pad(x_nhwc, ((0, 0), (padding, Hp - H - padding),
                             (padding, Wp - W - padding), (0, 0)))
    x_flat = x_pad.reshape(N, Hp * Wp, Cin)
    if S_pad > Hp * Wp:
        x_flat = jnp.pad(x_flat, ((0, 0), (0, S_pad - Hp * Wp), (0, 0)))

    # ---- weights / BN params: lane-dense Cout padding -------------------------
    # 256 lanes for wide layers fill the v6e/v7x 256x256 MXU; 128 otherwise.
    C_pad = _round_up(Cout, 256 if Cout >= 192 else 128)
    w_k = jnp.transpose(w, (2, 3, 1, 0)).reshape(KH * KW, Cin, Cout)
    w_k = jnp.pad(w_k.astype(jnp.bfloat16), ((0, 0), (0, 0), (0, C_pad - Cout)))

    def pad_row(v):
        return jnp.pad(v.reshape(1, Cout).astype(jnp.float32),
                       ((0, 0), (0, C_pad - Cout)))

    g_row, bt_row = pad_row(gamma), pad_row(beta)

    # Row-validity mask for the BN statistics (junk columns ow >= OW).
    mask = jnp.tile((jnp.arange(Wp) < OW).astype(jnp.float32), OH).reshape(n_rows, 1)

    # ---- VMEM budget: derived from the actual device --------------------------
    def _pad2(rows, cols, elt, sub):
        return _round_up(rows, sub) * _round_up(cols, 128) * elt

    x_blk = _pad2(S_pad, Cin, 2, 16)
    w_blk = KH * KW * _pad2(Cin, C_pad, 2, 16)
    y_blk = _pad2(n_rows, C_pad, 4, 8)
    acc_blk = _pad2(n_rows, C_pad, 4, 8)
    vmem_need = 2 * x_blk + 2 * w_blk + 2 * y_blk + acc_blk + (1 << 20)
    try:
        vmem_cap = pltpu.get_tpu_info().vmem_capacity_bytes
    except Exception:  # conservative fallback (v7x per-TC VMEM)
        vmem_cap = 64 << 20
    # TODO(synk): when a full padded image does not fit this budget, switch to
    # manually DMA'd (kh-shifted) row windows instead of whole-image blocks.
    vmem_limit = int(min(max(2 * vmem_need, 32 << 20), int(0.9 * vmem_cap)))

    kernel = _make_kernel(KH, KW, stride, Wp, n_rows, P_true, eps)

    # Output parking: during pass 0 the out index_map pins the (unwritten)
    # output window to block 0.  Pallas only writes an output block back to HBM
    # when its block index CHANGES, and the first change happens only after
    # pass-1 image 0 has overwritten block 0 with real values.  Do not change
    # the grid order or this index_map without revisiting that invariant.
    y_flat = pl.pallas_call(
        kernel,
        out_shape=jax.ShapeDtypeStruct((N, n_rows, C_pad), jnp.float32),
        grid=(2, N),
        in_specs=[
            pl.BlockSpec((1, S_pad, Cin), lambda ph, n: (n, 0, 0)),
            pl.BlockSpec((KH * KW, Cin, C_pad), lambda ph, n: (0, 0, 0)),
            pl.BlockSpec((1, C_pad), lambda ph, n: (0, 0)),
            pl.BlockSpec((1, C_pad), lambda ph, n: (0, 0)),
            pl.BlockSpec((n_rows, 1), lambda ph, n: (0, 0)),
        ],
        out_specs=pl.BlockSpec((1, n_rows, C_pad), lambda ph, n: (ph * n, 0, 0)),
        scratch_shapes=[
            pltpu.VMEM((n_rows, C_pad), jnp.float32),   # conv accumulator
            pltpu.VMEM((1, C_pad), jnp.float32),        # per-channel sum
            pltpu.VMEM((1, C_pad), jnp.float32),        # per-channel sum of squares
            pltpu.VMEM((1, C_pad), jnp.float32),        # BN scale
            pltpu.VMEM((1, C_pad), jnp.float32),        # BN shift
        ],
        # TODO(synk): v7x megacore would need per-core partial stats plus a
        # cross-core combine before pass 1; kept single-core ("arbitrary").
        compiler_params=pltpu.CompilerParams(
            dimension_semantics=("arbitrary", "arbitrary"),
            vmem_limit_bytes=vmem_limit),
    )(x_flat, w_k, g_row, bt_row, mask)

    y = y_flat.reshape(N, OH, Wp, C_pad)[:, :, :OW, :Cout]
    # TODO(synk): return NHWC (and optionally bf16) if the consumer accepts it;
    # this transpose is an extra activation-sized HBM round trip done by XLA.
    return jnp.transpose(y, (0, 3, 1, 2))              # back to NCHW


def _reference(x, w, b, gamma, beta, *, stride, padding, eps=1e-5,
               conv_dtype=jnp.float32):
    """Pure-JAX reference: conv + training-mode BN + ReLU (NCHW)."""
    conv = jax.lax.conv_general_dilated(
        x.astype(conv_dtype), w.astype(conv_dtype), (stride, stride),
        [(padding, padding), (padding, padding)],
        dimension_numbers=("NCHW", "OIHW", "NCHW"),
        preferred_element_type=jnp.float32) + b.reshape(1, -1, 1, 1)
    m = conv.mean(axis=(0, 2, 3))
    v = conv.var(axis=(0, 2, 3))                       # biased, as PyTorch BN (train)
    norm = (conv - m[None, :, None, None]) * jax.lax.rsqrt(v + eps)[None, :, None, None]
    return jnp.maximum(norm * gamma[None, :, None, None] + beta[None, :, None, None], 0.0)


if __name__ == "__main__":
    # Module config: Conv2d_BN_ReLU(in_channels=4, out_channels=8,
    #                               kernel_size=3, stride=1, padding=1, groups=1)
    N, Cin, H, W = 2, 4, 16, 16
    Cout, KH, KW = 8, 3, 3
    stride, padding = 1, 1

    key = jax.random.PRNGKey(0)
    kx, kw, kb, kg, kbeta = jax.random.split(key, 5)
    x = jax.random.normal(kx, (N, Cin, H, W), dtype=jnp.float32)
    w = jax.random.normal(kw, (Cout, Cin, KH, KW), dtype=jnp.float32) * 0.1
    b = jax.random.normal(kb, (Cout,), dtype=jnp.float32) * 0.1
    gamma = 1.0 + 0.1 * jax.random.normal(kg, (Cout,), dtype=jnp.float32)
    beta = 0.1 * jax.random.normal(kbeta, (Cout,), dtype=jnp.float32)

    out = conv2d_bn_relu(x, w, b, gamma, beta, stride=stride, padding=padding)
    out = jax.block_until_ready(out)
    assert out.shape == (N, Cout, H, W), out.shape

    # Primary check: bf16-input / f32-accumulate reference (same rounding regime
    # as the kernel's MXU path) -> tight tolerance.
    ref_bf16 = _reference(x, w, b, gamma, beta, stride=stride, padding=padding,
                          conv_dtype=jnp.bfloat16)
    err_bf16 = float(jnp.max(jnp.abs(out - ref_bf16)))
    assert jnp.allclose(out, ref_bf16, rtol=5e-3, atol=5e-3), err_bf16

    # Sanity bound against the pure-f32 module semantics (bf16-aware tolerance).
    ref_f32 = _reference(x, w, b, gamma, beta, stride=stride, padding=padding)
    err_f32 = float(jnp.max(jnp.abs(out - ref_f32)))
    assert err_f32 < 6e-2, err_f32

    print("KERNEL_OK")
</pallas_src>

<mosaic_0001>
module attributes {stable_mosaic.version = 11 : i64} {
  func.func @kernel(%arg0: i32, %arg1: i32, %arg2: memref<1x326x4xbf16, #tpu.memory_space<vmem>>, %arg3: memref<9x4x128xbf16, #tpu.memory_space<vmem>>, %arg4: memref<1x128xf32, #tpu.memory_space<vmem>>, %arg5: memref<1x128xf32, #tpu.memory_space<vmem>>, %arg6: memref<288x1xf32, #tpu.memory_space<vmem>>, %arg7: memref<1x288x128xf32, #tpu.memory_space<vmem>>, %arg8: memref<288x128xf32, #tpu.memory_space<vmem>>, %arg9: memref<1x128xf32, #tpu.memory_space<vmem>>, %arg10: memref<1x128xf32, #tpu.memory_space<vmem>>, %arg11: memref<1x128xf32, #tpu.memory_space<vmem>>, %arg12: memref<1x128xf32, #tpu.memory_space<vmem>>) attributes {dimension_semantics = [#tpu.dimension_semantics<arbitrary>, #tpu.dimension_semantics<arbitrary>], iteration_bounds = array<i64: 2, 2>, scalar_prefetch = 0 : i64, scratch_operands = 5 : i64, tpu.core_type = #tpu.core_type<tc>, window_params = [{transform_indices = @transform_0, window_bounds = array<i64: 1, 326, 4>}, {pipeline_mode = #tpu.pipeline_mode<synchronous>, transform_indices = @transform_1, window_bounds = array<i64: 9, 4, 128>}, {pipeline_mode = #tpu.pipeline_mode<synchronous>, transform_indices = @transform_2, window_bounds = array<i64: 1, 128>}, {pipeline_mode = #tpu.pipeline_mode<synchronous>, transform_indices = @transform_3, window_bounds = array<i64: 1, 128>}, {pipeline_mode = #tpu.pipeline_mode<synchronous>, transform_indices = @transform_4, window_bounds = array<i64: 288, 1>}, {transform_indices = @transform_5, window_bounds = array<i64: 1, 288, 128>}]} {
    %c0 = arith.constant 0 : index
    %c0_0 = arith.constant 0 : index
    %c0_1 = arith.constant 0 : index
    %0 = vector.load %arg2[%c0, %c0_0, %c0_1] : memref<1x326x4xbf16, #tpu.memory_space<vmem>>, vector<1x288x4xbf16>
    %1 = vector.shape_cast %0 : vector<1x288x4xbf16> to vector<288x4xbf16>
    %c0_2 = arith.constant 0 : index
    %c0_3 = arith.constant 0 : index
    %c0_4 = arith.constant 0 : index
    %2 = vector.load %arg3[%c0_2, %c0_3, %c0_4] : memref<9x4x128xbf16, #tpu.memory_space<vmem>>, vector<1x4x128xbf16>
    %3 = vector.shape_cast %2 : vector<1x4x128xbf16> to vector<4x128xbf16>
    %cst = arith.constant dense<0.000000e+00> : vector<288x128xf32>
    %4 = tpu.matmul %1, %3, %cst {dimension_numbers = #tpu.dot_dimension_numbers<[1], [0], [0], [1], [0, 0, 1, 1], [], []>} : vector<288x4xbf16>, vector<4x128xbf16>, vector<288x128xf32> -> vector<288x128xf32>
    %c0_5 = arith.constant 0 : index
    %c0_6 = arith.constant 0 : index
    %5 = vector.load %arg8[%c0_5, %c0_6] : memref<288x128xf32, #tpu.memory_space<vmem>>, vector<288x128xf32>
    tpu.vector_store %arg8[%c0_5, %c0_6], %4 {strides = array<i32>} : memref<288x128xf32, #tpu.memory_space<vmem>>, vector<288x128xf32>,
    %c0_7 = arith.constant 0 : index
    %c1 = arith.constant 1 : index
    %c0_8 = arith.constant 0 : index
    %6 = vector.load %arg2[%c0_7, %c1, %c0_8] : memref<1x326x4xbf16, #tpu.memory_space<vmem>>, vector<1x288x4xbf16>
    %7 = vector.shape_cast %6 : vector<1x288x4xbf16> to vector<288x4xbf16>
    %c1_9 = arith.constant 1 : index
    %c0_10 = arith.constant 0 : index
    %c0_11 = arith.constant 0 : index
    %8 = vector.load %arg3[%c1_9, %c0_10, %c0_11] : memref<9x4x128xbf16, #tpu.memory_space<vmem>>, vector<1x4x128xbf16>
    %9 = vector.shape_cast %8 : vector<1x4x128xbf16> to vector<4x128xbf16>
    %cst_12 = arith.constant dense<0.000000e+00> : vector<288x128xf32>
    %10 = tpu.matmul %7, %9, %cst_12 {dimension_numbers = #tpu.dot_dimension_numbers<[1], [0], [0], [1], [0, 0, 1, 1], [], []>} : vector<288x4xbf16>, vector<4x128xbf16>, vector<288x128xf32> -> vector<288x128xf32>
    %c0_13 = arith.constant 0 : index
    %c0_14 = arith.constant 0 : index
    %11 = vector.load %arg8[%c0_13, %c0_14] : memref<288x128xf32, #tpu.memory_space<vmem>>, vector<288x128xf32>
    %12 = arith.addf %11, %10 : vector<288x128xf32>
    %c0_15 = arith.constant 0 : index
    %c0_16 = arith.constant 0 : index
    %13 = vector.load %arg8[%c0_15, %c0_16] : memref<288x128xf32, #tpu.memory_space<vmem>>, vector<288x128xf32>
    tpu.vector_store %arg8[%c0_15, %c0_16], %12 {strides = array<i32>} : memref<288x128xf32, #tpu.memory_space<vmem>>, vector<288x128xf32>,
    %c0_17 = arith.constant 0 : index
    %c2 = arith.constant 2 : index
    %c0_18 = arith.constant 0 : index
    %14 = vector.load %arg2[%c0_17, %c2, %c0_18] : memref<1x326x4xbf16, #tpu.memory_space<vmem>>, vector<1x288x4xbf16>
    %15 = vector.shape_cast %14 : vector<1x288x4xbf16> to vector<288x4xbf16>
    %c2_19 = arith.constant 2 : index
    %c0_20 = arith.constant 0 : index
    %c0_21 = arith.constant 0 : index
    %16 = vector.load %arg3[%c2_19, %c0_20, %c0_21] : memref<9x4x128xbf16, #tpu.memory_space<vmem>>, vector<1x4x128xbf16>
    %17 = vector.shape_cast %16 : vector<1x4x128xbf16> to vector<4x128xbf16>
    %cst_22 = arith.constant dense<0.000000e+00> : vector<288x128xf32>
    %18 = tpu.matmul %15, %17, %cst_22 {dimension_numbers = #tpu.dot_dimension_numbers<[1], [0], [0], [1], [0, 0, 1, 1], [], []>} : vector<288x4xbf16>, vector<4x128xbf16>, vector<288x128xf32> -> vector<288x128xf32>
    %c0_23 = arith.constant 0 : index
    %c0_24 = arith.constant 0 : index
    %19 = vector.load %arg8[%c0_23, %c0_24] : memref<288x128xf32, #tpu.memory_space<vmem>>, vector<288x128xf32>
    %20 = arith.addf %19, %18 : vector<288x128xf32>
    %c0_25 = arith.constant 0 : index
    %c0_26 = arith.constant 0 : index
    %21 = vector.load %arg8[%c0_25, %c0_26] : memref<288x128xf32, #tpu.memory_space<vmem>>, vector<288x128xf32>
    tpu.vector_store %arg8[%c0_25, %c0_26], %20 {strides = array<i32>} : memref<288x128xf32, #tpu.memory_space<vmem>>, vector<288x128xf32>,
    %c0_27 = arith.constant 0 : index
    %c18 = arith.constant 18 : index
    %c0_28 = arith.constant 0 : index
    %22 = vector.load %arg2[%c0_27, %c18, %c0_28] : memref<1x326x4xbf16, #tpu.memory_space<vmem>>, vector<1x288x4xbf16>
    %23 = vector.shape_cast %22 : vector<1x288x4xbf16> to vector<288x4xbf16>
    %c3 = arith.constant 3 : index
    %c0_29 = arith.constant 0 : index
    %c0_30 = arith.constant 0 : index
    %24 = vector.load %arg3[%c3, %c0_29, %c0_30] : memref<9x4x128xbf16, #tpu.memory_space<vmem>>, vector<1x4x128xbf16>
    %25 = vector.shape_cast %24 : vector<1x4x128xbf16> to vector<4x128xbf16>
    %cst_31 = arith.constant dense<0.000000e+00> : vector<288x128xf32>
    %26 = tpu.matmul %23, %25, %cst_31 {dimension_numbers = #tpu.dot_dimension_numbers<[1], [0], [0], [1], [0, 0, 1, 1], [], []>} : vector<288x4xbf16>, vector<4x128xbf16>, vector<288x128xf32> -> vector<288x128xf32>
    %c0_32 = arith.constant 0 : index
    %c0_33 = arith.constant 0 : index
    %27 = vector.load %arg8[%c0_32, %c0_33] : memref<288x128xf32, #tpu.memory_space<vmem>>, vector<288x128xf32>
    %28 = arith.addf %27, %26 : vector<288x128xf32>
    %c0_34 = arith.constant 0 : index
    %c0_35 = arith.constant 0 : index
    %29 = vector.load %arg8[%c0_34, %c0_35] : memref<288x128xf32, #tpu.memory_space<vmem>>, vector<288x128xf32>
    tpu.vector_store %arg8[%c0_34, %c0_35], %28 {strides = array<i32>} : memref<288x128xf32, #tpu.memory_space<vmem>>, vector<288x128xf32>,
    %c0_36 = arith.constant 0 : index
    %c19 = arith.constant 19 : index
    %c0_37 = arith.constant 0 : index
    %30 = vector.load %arg2[%c0_36, %c19, %c0_37] : memref<1x326x4xbf16, #tpu.memory_space<vmem>>, vector<1x288x4xbf16>
    %31 = vector.shape_cast %30 : vector<1x288x4xbf16> to vector<288x4xbf16>
    %c4 = arith.constant 4 : index
    %c0_38 = arith.constant 0 : index
    %c0_39 = arith.constant 0 : index
    %32 = vector.load %arg3[%c4, %c0_38, %c0_39] : memref<9x4x128xbf16, #tpu.memory_space<vmem>>, vector<1x4x128xbf16>
    %33 = vector.shape_cast %32 : vector<1x4x128xbf16> to vector<4x128xbf16>
    %cst_40 = arith.constant dense<0.000000e+00> : vector<288x128xf32>
    %34 = tpu.matmul %31, %33, %cst_40 {dimension_numbers = #tpu.dot_dimension_numbers<[1], [0], [0], [1], [0, 0, 1, 1], [], []>} : vector<288x4xbf16>, vector<4x128xbf16>, vector<288x128xf32> -> vector<288x128xf32>
    %c0_41 = arith.constant 0 : index
    %c0_42 = arith.constant 0 : index
    %35 = vector.load %arg8[%c0_41, %c0_42] : memref<288x128xf32, #tpu.memory_space<vmem>>, vector<288x128xf32>
    %36 = arith.addf %35, %34 : vector<288x128xf32>
    %c0_43 = arith.constant 0 : index
    %c0_44 = arith.constant 0 : index
    %37 = vector.load %arg8[%c0_43, %c0_44] : memref<288x128xf32, #tpu.memory_space<vmem>>, vector<288x128xf32>
    tpu.vector_store %arg8[%c0_43, %c0_44], %36 {strides = array<i32>} : memref<288x128xf32, #tpu.memory_space<vmem>>, vector<288x128xf32>,
    %c0_45 = arith.constant 0 : index
    %c20 = arith.constant 20 : index
    %c0_46 = arith.constant 0 : index
    %38 = vector.load %arg2[%c0_45, %c20, %c0_46] : memref<1x326x4xbf16, #tpu.memory_space<vmem>>, vector<1x288x4xbf16>
    %39 = vector.shape_cast %38 : vector<1x288x4xbf16> to vector<288x4xbf16>
    %c5 = arith.constant 5 : index
    %c0_47 = arith.constant 0 : index
    %c0_48 = arith.constant 0 : index
    %40 = vector.load %arg3[%c5, %c0_47, %c0_48] : memref<9x4x128xbf16, #tpu.memory_space<vmem>>, vector<1x4x128xbf16>
    %41 = vector.shape_cast %40 : vector<1x4x128xbf16> to vector<4x128xbf16>
    %cst_49 = arith.constant dense<0.000000e+00> : vector<288x128xf32>
    %42 = tpu.matmul %39, %41, %cst_49 {dimension_numbers = #tpu.dot_dimension_numbers<[1], [0], [0], [1], [0, 0, 1, 1], [], []>} : vector<288x4xbf16>, vector<4x128xbf16>, vector<288x128xf32> -> vector<288x128xf32>
    %c0_50 = arith.constant 0 : index
    %c0_51 = arith.constant 0 : index
    %43 = vector.load %arg8[%c0_50, %c0_51] : memref<288x128xf32, #tpu.memory_space<vmem>>, vector<288x128xf32>
    %44 = arith.addf %43, %42 : vector<288x128xf32>
    %c0_52 = arith.constant 0 : index
    %c0_53 = arith.constant 0 : index
    %45 = vector.load %arg8[%c0_52, %c0_53] : memref<288x128xf32, #tpu.memory_space<vmem>>, vector<288x128xf32>
    tpu.vector_store %arg8[%c0_52, %c0_53], %44 {strides = array<i32>} : memref<288x128xf32, #tpu.memory_space<vmem>>, vector<288x128xf32>,
    %c0_54 = arith.constant 0 : index
    %c36 = arith.constant 36 : index
    %c0_55 = arith.constant 0 : index
    %46 = vector.load %arg2[%c0_54, %c36, %c0_55] : memref<1x326x4xbf16, #tpu.memory_space<vmem>>, vector<1x288x4xbf16>
    %47 = vector.shape_cast %46 : vector<1x288x4xbf16> to vector<288x4xbf16>
    %c6 = arith.constant 6 : index
    %c0_56 = arith.constant 0 : index
    %c0_57 = arith.constant 0 : index
    %48 = vector.load %arg3[%c6, %c0_56, %c0_57] : memref<9x4x128xbf16, #tpu.memory_space<vmem>>, vector<1x4x128xbf16>
    %49 = vector.shape_cast %48 : vector<1x4x128xbf16> to vector<4x128xbf16>
    %cst_58 = arith.constant dense<0.000000e+00> : vector<288x128xf32>
    %50 = tpu.matmul %47, %49, %cst_58 {dimension_numbers = #tpu.dot_dimension_numbers<[1], [0], [0], [1], [0, 0, 1, 1], [], []>} : vector<288x4xbf16>, vector<4x128xbf16>, vector<288x128xf32> -> vector<288x128xf32>
    %c0_59 = arith.constant 0 : index
    %c0_60 = arith.constant 0 : index
    %51 = vector.load %arg8[%c0_59, %c0_60] : memref<288x128xf32, #tpu.memory_space<vmem>>, vector<288x128xf32>
    %52 = arith.addf %51, %50 : vector<288x128xf32>
    %c0_61 = arith.constant 0 : index
    %c0_62 = arith.constant 0 : index
    %53 = vector.load %arg8[%c0_61, %c0_62] : memref<288x128xf32, #tpu.memory_space<vmem>>, vector<288x128xf32>
    tpu.vector_store %arg8[%c0_61, %c0_62], %52 {strides = array<i32>} : memref<288x128xf32, #tpu.memory_space<vmem>>, vector<288x128xf32>,
    %c0_63 = arith.constant 0 : index
    %c37 = arith.constant 37 : index
    %c0_64 = arith.constant 0 : index
    %54 = vector.load %arg2[%c0_63, %c37, %c0_64] : memref<1x326x4xbf16, #tpu.memory_space<vmem>>, vector<1x288x4xbf16>
    %55 = vector.shape_cast %54 : vector<1x288x4xbf16> to vector<288x4xbf16>
    %c7 = arith.constant 7 : index
    %c0_65 = arith.constant 0 : index
    %c0_66 = arith.constant 0 : index
    %56 = vector.load %arg3[%c7, %c0_65, %c0_66] : memref<9x4x128xbf16, #tpu.memory_space<vmem>>, vector<1x4x128xbf16>
    %57 = vector.shape_cast %56 : vector<1x4x128xbf16> to vector<4x128xbf16>
    %cst_67 = arith.constant dense<0.000000e+00> : vector<288x128xf32>
    %58 = tpu.matmul %55, %57, %cst_67 {dimension_numbers = #tpu.dot_dimension_numbers<[1], [0], [0], [1], [0, 0, 1, 1], [], []>} : vector<288x4xbf16>, vector<4x128xbf16>, vector<288x128xf32> -> vector<288x128xf32>
    %c0_68 = arith.constant 0 : index
    %c0_69 = arith.constant 0 : index
    %59 = vector.load %arg8[%c0_68, %c0_69] : memref<288x128xf32, #tpu.memory_space<vmem>>, vector<288x128xf32>
    %60 = arith.addf %59, %58 : vector<288x128xf32>
    %c0_70 = arith.constant 0 : index
    %c0_71 = arith.constant 0 : index
    %61 = vector.load %arg8[%c0_70, %c0_71] : memref<288x128xf32, #tpu.memory_space<vmem>>, vector<288x128xf32>
    tpu.vector_store %arg8[%c0_70, %c0_71], %60 {strides = array<i32>} : memref<288x128xf32, #tpu.memory_space<vmem>>, vector<288x128xf32>,
    %c0_72 = arith.constant 0 : index
    %c38 = arith.constant 38 : index
    %c0_73 = arith.constant 0 : index
    %62 = vector.load %arg2[%c0_72, %c38, %c0_73] : memref<1x326x4xbf16, #tpu.memory_space<vmem>>, vector<1x288x4xbf16>
    %63 = vector.shape_cast %62 : vector<1x288x4xbf16> to vector<288x4xbf16>
    %c8 = arith.constant 8 : index
    %c0_74 = arith.constant 0 : index
    %c0_75 = arith.constant 0 : index
    %64 = vector.load %arg3[%c8, %c0_74, %c0_75] : memref<9x4x128xbf16, #tpu.memory_space<vmem>>, vector<1x4x128xbf16>
    %65 = vector.shape_cast %64 : vector<1x4x128xbf16> to vector<4x128xbf16>
    %cst_76 = arith.constant dense<0.000000e+00> : vector<288x128xf32>
    %66 = tpu.matmul %63, %65, %cst_76 {dimension_numbers = #tpu.dot_dimension_numbers<[1], [0], [0], [1], [0, 0, 1, 1], [], []>} : vector<288x4xbf16>, vector<4x128xbf16>, vector<288x128xf32> -> vector<288x128xf32>
    %c0_77 = arith.constant 0 : index
    %c0_78 = arith.constant 0 : index
    %67 = vector.load %arg8[%c0_77, %c0_78] : memref<288x128xf32, #tpu.memory_space<vmem>>, vector<288x128xf32>
    %68 = arith.addf %67, %66 : vector<288x128xf32>
    %c0_79 = arith.constant 0 : index
    %c0_80 = arith.constant 0 : index
    %69 = vector.load %arg8[%c0_79, %c0_80] : memref<288x128xf32, #tpu.memory_space<vmem>>, vector<288x128xf32>
    tpu.vector_store %arg8[%c0_79, %c0_80], %68 {strides = array<i32>} : memref<288x128xf32, #tpu.memory_space<vmem>>, vector<288x128xf32>,
    %c0_81 = arith.constant 0 : index
    %c0_82 = arith.constant 0 : index
    %70 = vector.load %arg8[%c0_81, %c0_82] : memref<288x128xf32, #tpu.memory_space<vmem>>, vector<288x128xf32>
    %c0_i32 = arith.constant 0 : i32
    %71 = arith.cmpi eq, %arg0, %c0_i32 : i32
    %72 = arith.extui %71 : i1 to i32
    %c0_i32_83 = arith.constant 0 : i32
    %73 = arith.cmpi ne, %72, %c0_i32_83 : i32
    scf.if %73 {
      %c0_i32_85 = arith.constant 0 : i32
      %77 = arith.cmpi eq, %arg1, %c0_i32_85 : i32
      %78 = arith.extui %77 : i1 to i32
      %c0_i32_86 = arith.constant 0 : i32
      %79 = arith.cmpi ne, %78, %c0_i32_86 : i32
      scf.if %79 {
        %cst_101 = arith.constant 0.000000e+00 : f32
        %97 = vector.broadcast %cst_101 : f32 to vector<1x128xf32>
        %c0_102 = arith.constant 0 : index
        %c0_103 = arith.constant 0 : index
        %98 = vector.load %arg9[%c0_102, %c0_103] : memref<1x128xf32, #tpu.memory_space<vmem>>, vector<1x128xf32>
        tpu.vector_store %arg9[%c0_102, %c0_103], %97 {strides = array<i32>} : memref<1x128xf32, #tpu.memory_space<vmem>>, vector<1x128xf32>,
        %cst_104 = arith.constant 0.000000e+00 : f32
        %99 = vector.broadcast %cst_104 : f32 to vector<1x128xf32>
        %c0_105 = arith.constant 0 : index
        %c0_106 = arith.constant 0 : index
        %100 = vector.load %arg10[%c0_105, %c0_106] : memref<1x128xf32, #tpu.memory_space<vmem>>, vector<1x128xf32>
        tpu.vector_store %arg10[%c0_105, %c0_106], %99 {strides = array<i32>} : memref<1x128xf32, #tpu.memory_space<vmem>>, vector<1x128xf32>,
      } else {
      }
      %c0_87 = arith.constant 0 : index
      %c0_88 = arith.constant 0 : index
      %80 = vector.load %arg6[%c0_87, %c0_88] : memref<288x1xf32, #tpu.memory_space<vmem>>, vector<288x1xf32>
      %81 = vector.broadcast %80 : vector<288x1xf32> to vector<288x128xf32>
      %82 = arith.mulf %70, %81 : vector<288x128xf32>
      %c0_89 = arith.constant 0 : index
      %c0_90 = arith.constant 0 : index
      %83 = vector.load %arg9[%c0_89, %c0_90] : memref<1x128xf32, #tpu.memory_space<vmem>>, vector<1x128xf32>
      %cst_91 = arith.constant dense<0.000000e+00> : vector<128xf32>
      %84 = vector.multi_reduction <add>, %82, %cst_91 [0] : vector<288x128xf32> to vector<128xf32>
      %85 = vector.shape_cast %84 : vector<128xf32> to vector<1x128xf32>
      %86 = arith.addf %83, %85 : vector<1x128xf32>
      %c0_92 = arith.constant 0 : index
      %c0_93 = arith.constant 0 : index
      %87 = vector.load %arg9[%c0_92, %c0_93] : memref<1x128xf32, #tpu.memory_space<vmem>>, vector<1x128xf32>
      tpu.vector_store %arg9[%c0_92, %c0_93], %86 {strides = array<i32>} : memref<1x128xf32, #tpu.memory_space<vmem>>, vector<1x128xf32>,
      %c0_94 = arith.constant 0 : index
      %c0_95 = arith.constant 0 : index
      %88 = vector.load %arg10[%c0_94, %c0_95] : memref<1x128xf32, #tpu.memory_space<vmem>>, vector<1x128xf32>
      %89 = arith.mulf %82, %82 : vector<288x128xf32>
      %cst_96 = arith.constant dense<0.000000e+00> : vector<128xf32>
      %90 = vector.multi_reduction <add>, %89, %cst_96 [0] : vector<288x128xf32> to vector<128xf32>
      %91 = vector.shape_cast %90 : vector<128xf32> to vector<1x128xf32>
      %92 = arith.addf %88, %91 : vector<1x128xf32>
      %c0_97 = arith.constant 0 : index
      %c0_98 = arith.constant 0 : index
      %93 = vector.load %arg10[%c0_97, %c0_98] : memref<1x128xf32, #tpu.memory_space<vmem>>, vector<1x128xf32>
      tpu.vector_store %arg10[%c0_97, %c0_98], %92 {strides = array<i32>} : memref<1x128xf32, #tpu.memory_space<vmem>>, vector<1x128xf32>,
      %c1_i32_99 = arith.constant 1 : i32
      %94 = arith.cmpi eq, %arg1, %c1_i32_99 : i32
      %95 = arith.extui %94 : i1 to i32
      %c0_i32_100 = arith.constant 0 : i32
      %96 = arith.cmpi ne, %95, %c0_i32_100 : i32
      scf.if %96 {
        %c0_101 = arith.constant 0 : index
        %c0_102 = arith.constant 0 : index
        %97 = vector.load %arg9[%c0_101, %c0_102] : memref<1x128xf32, #tpu.memory_space<vmem>>, vector<1x128xf32>
        %cst_103 = arith.constant 0.001953125 : f32
        %98 = vector.broadcast %cst_103 : f32 to vector<1x128xf32>
        %99 = arith.mulf %97, %98 : vector<1x128xf32>
        %c0_104 = arith.constant 0 : index
        %c0_105 = arith.constant 0 : index
        %100 = vector.load %arg10[%c0_104, %c0_105] : memref<1x128xf32, #tpu.memory_space<vmem>>, vector<1x128xf32>
        %cst_106 = arith.constant 0.001953125 : f32
        %101 = vector.broadcast %cst_106 : f32 to vector<1x128xf32>
        %102 = arith.mulf %100, %101 : vector<1x128xf32>
        %103 = arith.mulf %99, %99 : vector<1x128xf32>
        %104 = arith.subf %102, %103 : vector<1x128xf32>
        %cst_107 = arith.constant 9.99999974E-6 : f32
        %105 = vector.broadcast %cst_107 : f32 to vector<1x128xf32>
        %106 = arith.addf %104, %105 : vector<1x128xf32>
        %107 = math.rsqrt %106 : vector<1x128xf32>
        %c0_108 = arith.constant 0 : index
        %c0_109 = arith.constant 0 : index
        %108 = vector.load %arg4[%c0_108, %c0_109] : memref<1x128xf32, #tpu.memory_space<vmem>>, vector<1x128xf32>
        %109 = arith.mulf %108, %107 : vector<1x128xf32>
        %c0_110 = arith.constant 0 : index
        %c0_111 = arith.constant 0 : index
        %110 = vector.load %arg11[%c0_110, %c0_111] : memref<1x128xf32, #tpu.memory_space<vmem>>, vector<1x128xf32>
        tpu.vector_store %arg11[%c0_110, %c0_111], %109 {strides = array<i32>} : memref<1x128xf32, #tpu.memory_space<vmem>>, vector<1x128xf32>,
        %c0_112 = arith.constant 0 : index
        %c0_113 = arith.constant 0 : index
        %111 = vector.load %arg5[%c0_112, %c0_113] : memref<1x128xf32, #tpu.memory_space<vmem>>, vector<1x128xf32>
        %112 = arith.mulf %99, %109 : vector<1x128xf32>
        %113 = arith.subf %111, %112 : vector<1x128xf32>
        %c0_114 = arith.constant 0 : index
        %c0_115 = arith.constant 0 : index
        %114 = vector.load %arg12[%c0_114, %c0_115] : memref<1x128xf32, #tpu.memory_space<vmem>>, vector<1x128xf32>
        tpu.vector_store %arg12[%c0_114, %c0_115], %113 {strides = array<i32>} : memref<1x128xf32, #tpu.memory_space<vmem>>, vector<1x128xf32>,
      } else {
      }
    } else {
    }
    %c1_i32 = arith.constant 1 : i32
    %74 = arith.cmpi eq, %arg0, %c1_i32 : i32
    %75 = arith.extui %74 : i1 to i32
    %c0_i32_84 = arith.constant 0 : i32
    %76 = arith.cmpi ne, %75, %c0_i32_84 : i32
    scf.if %76 {
      %c0_85 = arith.constant 0 : index
      %c0_86 = arith.constant 0 : index
      %77 = vector.load %arg11[%c0_85, %c0_86] : memref<1x128xf32, #tpu.memory_space<vmem>>, vector<1x128xf32>
      %78 = vector.broadcast %77 : vector<1x128xf32> to vector<288x128xf32>
      %79 = arith.mulf %70, %78 : vector<288x128xf32>
      %c0_87 = arith.constant 0 : index
      %c0_88 = arith.constant 0 : index
      %80 = vector.load %arg12[%c0_87, %c0_88] : memref<1x128xf32, #tpu.memory_space<vmem>>, vector<1x128xf32>
      %81 = vector.broadcast %80 : vector<1x128xf32> to vector<288x128xf32>
      %82 = arith.addf %79, %81 : vector<288x128xf32>
      %cst_89 = arith.constant 0.000000e+00 : f32
      %83 = vector.broadcast %cst_89 : f32 to vector<288x128xf32>
      %84 = arith.maximumf %82, %83 : vector<288x128xf32>
      %c0_90 = arith.constant 0 : index
      %c0_91 = arith.constant 0 : index
      %c0_92 = arith.constant 0 : index
      %85 = vector.load %arg7[%c0_90, %c0_91, %c0_92] : memref<1x288x128xf32, #tpu.memory_space<vmem>>, vector<1x288x128xf32>
      %86 = vector.shape_cast %85 : vector<1x288x128xf32> to vector<288x128xf32>
      %87 = vector.shape_cast %84 : vector<288x128xf32> to vector<1x288x128xf32>
      tpu.vector_store %arg7[%c0_90, %c0_91, %c0_92], %87 {strides = array<i32>} : memref<1x288x128xf32, #tpu.memory_space<vmem>>, vector<1x288x128xf32>,
    } else {
    }
    return
  }
  func.func @transform_0(%arg0: i32, %arg1: i32) -> (i32, i32, i32) {
    %c0_i32 = arith.constant 0 : i32
    %c0_i32_0 = arith.constant 0 : i32
    %c0_i32_1 = arith.constant 0 : i32
    return %arg1, %c0_i32, %c0_i32_0 : i32, i32, i32
  }
  func.func @transform_1(%arg0: i32, %arg1: i32) -> (i32, i32, i32) {
    %c0_i32 = arith.constant 0 : i32
    %c0_i32_0 = arith.constant 0 : i32
    %c0_i32_1 = arith.constant 0 : i32
    %c0_i32_2 = arith.constant 0 : i32
    return %c0_i32, %c0_i32_0, %c0_i32_1 : i32, i32, i32
  }
  func.func @transform_2(%arg0: i32, %arg1: i32) -> (i32, i32) {
    %c0_i32 = arith.constant 0 : i32
    %c0_i32_0 = arith.constant 0 : i32
    %c0_i32_1 = arith.constant 0 : i32
    return %c0_i32, %c0_i32_0 : i32, i32
  }
  func.func @transform_3(%arg0: i32, %arg1: i32) -> (i32, i32) {
    %c0_i32 = arith.constant 0 : i32
    %c0_i32_0 = arith.constant 0 : i32
    %c0_i32_1 = arith.constant 0 : i32
    return %c0_i32, %c0_i32_0 : i32, i32
  }
  func.func @transform_4(%arg0: i32, %arg1: i32) -> (i32, i32) {
    %c0_i32 = arith.constant 0 : i32
    %c0_i32_0 = arith.constant 0 : i32
    %c0_i32_1 = arith.constant 0 : i32
    return %c0_i32, %c0_i32_0 : i32, i32
  }
  func.func @transform_5(%arg0: i32, %arg1: i32) -> (i32, i32, i32) {
    %0 = arith.muli %arg0, %arg1 : i32
    %c0_i32 = arith.constant 0 : i32
    %c0_i32_0 = arith.constant 0 : i32
    %c0_i32_1 = arith.constant 0 : i32
    return %0, %c0_i32, %c0_i32_0 : i32, i32, i32
  }
}

</mosaic_0001>

<bundles_post_ra>
// kernel: tile.8
= control target key start
LH: loop header
LB: loop body
LE: loop exit
PB: predicated region body
PF: predicated region fallthrough
CT: control target
= control target key end

     0   :  { %s28_s0 = inlined_call_operand.vmem [shape: f32[18], index: 0, kind: input, shape index: {}]   ;;  %s29_s1 = inlined_call_operand.vmem [shape: f32[16,18], index: 1, kind: output, shape index: {}]  }
   0x1   :  { %v4_v0 = vld [vmem:[%s28_s0] ss:$0 sm:$0xff] }
   0x2   :  { %5 = vst [vmem:[%s29_s1] sm:$0xff] %v4_v0  ;;  %8 = vst [vmem:[%s29_s1 + $0x8] sm:$0xff] %v4_v0 }

// kernel: tile.0
= control target key start
LH: loop header
LB: loop body
LE: loop exit
PB: predicated region body
PF: predicated region fallthrough
CT: control target
= control target key end

     0   :  { %s607_s10 = smov 126   ;;  %s608_s11 = smov 127   ;;  %vm3_vm0 = vcmask 7168   ;;  %s1250_s0 = inlined_call_operand.vmem [shape: f32[16,18], index: 0, kind: input, shape index: {}]   ;;  %s1251_s1 = inlined_call_operand.vmem [shape: f32[288,1], index: 1, kind: output, shape index: {}]  }
   0x1   :  { %v35_v0 = vld.sshfl [vmem:[%s1250_s0] sm:$0xff pattern:$0x6d4b2907]   ;;  %v450_v2 = vld.sshfl [vmem:[%s1250_s0 + $0x1] sm:$0xff pattern:$0xd4b2907e]  }
   0x2   :  { %v640_v1 = vld.sshfl [vmem:[%s1250_s0] sm:$0xff pattern:$0xf6d4b290]   ;;  %36 = vrot.lane.b32.xlu1 %v35_v0, %s607_s10  ;;  %v649_v3 = vld.sshfl [vmem:[%s1250_s0 + $0x1] sm:$0xff pattern:$0x6d4b2907]  }
   0x3   :  { %11 = vrot.lane.b32.xlu0 %v640_v1, %s608_s11  ;;  %s609_s16 = smov 125   ;;  %v468_v4 = vld.sshfl [vmem:[%s1250_s0 + $0x1] sm:$0xff pattern:$0x4b2907e5]   ;;  %s610_s21 = smov 124  }
   0x4   :  { %v85_v5 = vld.sshfl [vmem:[%s1250_s0] sm:$0xff pattern:$0xd4b2907e]   ;;  %s611_s22 = smov 123   ;;  %s612_s27 = smov 122  }
   0x5   :  { %v486_v6 = vld.sshfl [vmem:[%s1250_s0 + $0x1] sm:$0xff pattern:$0xb2907e5c]   ;;  %v135_v7 = vld.sshfl [vmem:[%s1250_s0] sm:$0xff pattern:$0x4b2907e5]  }
   0x6   :  { %49 = vrot.lane.b32.xlu1 %v450_v2, %s607_s10  ;;  %s613_s28 = smov 121   ;;  %v504_v8 = vld.sshfl [vmem:[%s1250_s0 + $0x1] sm:$0xff pattern:$0x2907e5c3]   ;;  %s614_s4 = smov 120  }
   0x7   :  { %24 = vrot.lane.b32.xlu0 %v649_v3, %s608_s11  ;;  %v185_v9 = vld.sshfl [vmem:[%s1250_s0] sm:$0xff pattern:$0xb2907e5c]   ;;  %s615_s5 = smov 119   ;;  %s616_s10 = smov 118  }
   0x8   :  { %v522_v10 = vld.sshfl [vmem:[%s1250_s0 + $0x1] sm:$0xff pattern:$0x907e5c3a]   ;;  %v235_v11 = vld.sshfl [vmem:[%s1250_s0] sm:$0xff pattern:$0x2907e5c3]  }
   0x9   :  { %s617_s11 = smov 117   ;;  %v540_v12 = vld.sshfl [vmem:[%s1250_s0 + $0x1] sm:$0xff pattern:$0x7e5c3a1]   ;;  %s619_s17 = smov 115  }
   0xa   :  { %74 = vrot.lane.b32.xlu1 %v450_v2, %s609_s16  ;;  %v285_v13 = vld.sshfl [vmem:[%s1250_s0] sm:$0xff pattern:$0x907e5c3a]   ;;  %s620_s29 = smov 114   ;;  %s621_s30 = smov 113  }
   0xb   :  { %61 = vrot.lane.b32.xlu0 %v35_v0, %s609_s16  ;;  %s618_s16 = smov 116   ;;  %v558_v14 = vld.sshfl [vmem:[%s1250_s0 + $0x2] sm:$0xff pattern:$0x6d4b2907]   ;;  %s622_s2 = smov 112  }
   0xc   :  { %v335_v15 = vld.sshfl [vmem:[%s1250_s0] sm:$0xff pattern:$0x7e5c3a1]   ;;  %s623_s3 = smov 111  }
   0xd   :  { %v2_v16 = vld [vmem:[%s1250_s0] sm:$0xff]   ;;  %v435_v17 = vld [vmem:[%s1250_s0 + $0x8] sm:$0xff]  }
   0xe   :  { %99 = vrot.lane.b32.xlu1 %v468_v4, %s610_s21  ;;  %4 = vst.msk [vmem:[%s1251_s1] ss:$18 sm:$0xff] %vm3_vm0, %v2_v16   ;;  %436 = vst.msk [vmem:[%s1251_s1 + $0x90] ss:$18 sm:$0xff] %vm3_vm0, %v435_v17  }
   0xf   :  { %86 = vrot.lane.b32.xlu0 %v85_v5, %s610_s21 }
  0x12   :  { %124 = vrot.lane.b32.xlu1 %v468_v4, %s611_s22 }
  0x13   :  { %111 = vrot.lane.b32.xlu0 %v85_v5, %s611_s22 }
  0x16   :  { %149 = vrot.lane.b32.xlu1 %v486_v6, %s612_s27 }
  0x17   :  { %136 = vrot.lane.b32.xlu0 %v135_v7, %s612_s27 }
  0x1a   :  { %174 = vrot.lane.b32.xlu1 %v486_v6, %s613_s28 }
  0x1b   :  { %161 = vrot.lane.b32.xlu0 %v135_v7, %s613_s28 }
  0x1e   :  { %199 = vrot.lane.b32.xlu1 %v504_v8, %s614_s4 }
  0x1f   :  { %186 = vrot.lane.b32.xlu0 %v185_v9, %s614_s4 }
  0x22   :  { %224 = vrot.lane.b32.xlu1 %v504_v8, %s615_s5 }
  0x23   :  { %211 = vrot.lane.b32.xlu0 %v185_v9, %s615_s5 }
  0x26   :  { %249 = vrot.lane.b32.xlu1 %v522_v10, %s616_s10 }
  0x27   :  { %236 = vrot.lane.b32.xlu0 %v235_v11, %s616_s10 }
  0x2a   :  { %274 = vrot.lane.b32.xlu1 %v522_v10, %s617_s11 }
  0x2b   :  { %261 = vrot.lane.b32.xlu0 %v235_v11, %s617_s11 }
  0x2e   :  { %299 = vrot.lane.b32.xlu1 %v540_v12, %s618_s16 }
  0x2f   :  { %286 = vrot.lane.b32.xlu0 %v285_v13, %s618_s16 }
  0x32   :  { %324 = vrot.lane.b32.xlu1 %v540_v12, %s619_s17 }
  0x33   :  { %311 = vrot.lane.b32.xlu0 %v285_v13, %s619_s17 }
  0x36   :  { %349 = vrot.lane.b32.xlu1 %v558_v14, %s620_s29 }
  0x37   :  { %336 = vrot.lane.b32.xlu0 %v335_v15, %s620_s29 }
  0x3a   :  { %374 = vrot.lane.b32.xlu1 %v558_v14, %s621_s30 }
  0x3b   :  { %361 = vrot.lane.b32.xlu0 %v335_v15, %s621_s30 }
  0x3e   :  { %399 = vrot.lane.b32.xlu1 %v640_v1, %s622_s2 }
  0x3f   :  { %387 = vrot.lane.b32.xlu0 %v649_v3, %s622_s2 }
  0x42   :  { %424 = vrot.lane.b32.xlu1 %v640_v1, %s623_s3 }
  0x43   :  { %412 = vrot.lane.b32.xlu0 %v649_v3, %s623_s3 }
  0x74   :  { %v37_v18 = vpop.permute.xlu1 %36  }
  0x75   :  { %v12_v19 = vpop.permute.xlu0 %11   ;;  %446 = vst.msk [vmem:[%s1251_s1 + $0x80] ss:$-126 sm:$0x3] %vm3_vm0, %v37_v18   ;;  %447 = vst.msk [vmem:[%s1251_s1 + $0x1a0] ss:$-126 sm:$0xc] %vm3_vm0, %v37_v18  }
  0x76   :  { %448 = vst.msk [vmem:[%s1251_s1 + $0x2c0] ss:$-126 sm:$0x30] %vm3_vm0, %v37_v18   ;;  %449 = vst.msk [vmem:[%s1251_s1 + $0x3e0] ss:$-126 sm:$0xc0] %vm3_vm0, %v37_v18  }
  0x77   :  { %437 = vst.msk [vmem:[%s1251_s1 + $0x1] ss:$162 sm:$0x3] %vm3_vm0, %v12_v19   ;;  %438 = vst.msk [vmem:[%s1251_s1 - $0x11f] ss:$162 sm:$0xc] %vm3_vm0, %v12_v19  }
  0x78   :  { %439 = vst.msk [vmem:[%s1251_s1 - $0x23f] ss:$162 sm:$0x30] %vm3_vm0, %v12_v19   ;;  %440 = vst.msk [vmem:[%s1251_s1 - $0x35f] ss:$162 sm:$0xc0] %vm3_vm0, %v12_v19   ;;  %v50_v20 = vpop.permute.xlu1 %49  }
  0x79   :  { %v25_v21 = vpop.permute.xlu0 %24   ;;  %451 = vst.msk [vmem:[%s1251_s1 + $0x110] ss:$-126 sm:$0x7] %vm3_vm0, %v50_v20   ;;  %452 = vst.msk [vmem:[%s1251_s1 + $0x230] ss:$-126 sm:$0x18] %vm3_vm0, %v50_v20  }
  0x7a   :  { %453 = vst.msk [vmem:[%s1251_s1 + $0x350] ss:$-126 sm:$0x60] %vm3_vm0, %v50_v20   ;;  %454 = vst.msk [vmem:[%s1251_s1 + $0xf7] sm:$0x80] %vm3_vm0, %v50_v20  }
  0x7b   :  { %442 = vst.msk [vmem:[%s1251_s1 + $0x91] ss:$-126 sm:$0x3] %vm3_vm0, %v25_v21   ;;  %443 = vst.msk [vmem:[%s1251_s1 + $0x1b1] ss:$-126 sm:$0xc] %vm3_vm0, %v25_v21  }
  0x7c   :  { %444 = vst.msk [vmem:[%s1251_s1 + $0x2d1] ss:$-126 sm:$0x30] %vm3_vm0, %v25_v21   ;;  %445 = vst.msk [vmem:[%s1251_s1 + $0x3f1] ss:$-126 sm:$0xc0] %vm3_vm0, %v25_v21   ;;  %v75_v22 = vpop.permute.xlu1 %74  }
  0x7d   :  { %v62_v23 = vpop.permute.xlu0 %61   ;;  %460 = vst.msk [vmem:[%s1251_s1 + $0x111] ss:$-126 sm:$0x7] %vm3_vm0, %v75_v22   ;;  %461 = vst.msk [vmem:[%s1251_s1 + $0x231] ss:$-126 sm:$0x18] %vm3_vm0, %v75_v22  }
  0x7e   :  { %462 = vst.msk [vmem:[%s1251_s1 + $0x351] ss:$-126 sm:$0x60] %vm3_vm0, %v75_v22   ;;  %463 = vst.msk [vmem:[%s1251_s1 + $0xf8] sm:$0x80] %vm3_vm0, %v75_v22  }
  0x7f   :  { %455 = vst.msk [vmem:[%s1251_s1 + $0x81] ss:$-126 sm:$0x3] %vm3_vm0, %v62_v23   ;;  %456 = vst.msk [vmem:[%s1251_s1 + $0x1a1] ss:$-126 sm:$0xc] %vm3_vm0, %v62_v23  }
  0x80   :  { %457 = vst.msk [vmem:[%s1251_s1 + $0x2c1] ss:$-126 sm:$0x30] %vm3_vm0, %v62_v23   ;;  %458 = vst.msk [vmem:[%s1251_s1 + $0x3e1] ss:$-126 sm:$0xc0] %vm3_vm0, %v62_v23   ;;  %v100_v24 = vpop.permute.xlu1 %99  }
  0x81   :  { %v87_v25 = vpop.permute.xlu0 %86   ;;  %469 = vst.msk [vmem:[%s1251_s1 + $0x70] ss:$162 sm:$0x3] %vm3_vm0, %v100_v24   ;;  %470 = vst.msk [vmem:[%s1251_s1 + $0x190] ss:$-126 sm:$0xc] %vm3_vm0, %v100_v24  }
  0x82   :  { %471 = vst.msk [vmem:[%s1251_s1 + $0x2b0] ss:$-126 sm:$0x30] %vm3_vm0, %v100_v24   ;;  %472 = vst.msk [vmem:[%s1251_s1 + $0x3d0] ss:$-126 sm:$0xc0] %vm3_vm0, %v100_v24  }
  0x83   :  { %464 = vst.msk [vmem:[%s1251_s1 + $0x100] ss:$-126 sm:$0x7] %vm3_vm0, %v87_v25   ;;  %465 = vst.msk [vmem:[%s1251_s1 + $0x220] ss:$-126 sm:$0x18] %vm3_vm0, %v87_v25  }
  0x84   :  { %466 = vst.msk [vmem:[%s1251_s1 + $0x340] ss:$-126 sm:$0x60] %vm3_vm0, %v87_v25   ;;  %467 = vst.msk [vmem:[%s1251_s1 + $0xe7] sm:$0x80] %vm3_vm0, %v87_v25   ;;  %v125_v26 = vpop.permute.xlu1 %124  }
  0x85   :  { %v112_v27 = vpop.permute.xlu0 %111   ;;  %478 = vst.msk [vmem:[%s1251_s1 + $0x71] ss:$162 sm:$0x3] %vm3_vm0, %v125_v26   ;;  %479 = vst.msk [vmem:[%s1251_s1 + $0x191] ss:$-126 sm:$0xc] %vm3_vm0, %v125_v26  }
  0x86   :  { %480 = vst.msk [vmem:[%s1251_s1 + $0x2b1] ss:$-126 sm:$0x30] %vm3_vm0, %v125_v26   ;;  %481 = vst.msk [vmem:[%s1251_s1 + $0x3d1] ss:$-126 sm:$0xc0] %vm3_vm0, %v125_v26  }
  0x87   :  { %473 = vst.msk [vmem:[%s1251_s1 + $0x101] ss:$-126 sm:$0x7] %vm3_vm0, %v112_v27   ;;  %474 = vst.msk [vmem:[%s1251_s1 + $0x221] ss:$-126 sm:$0x18] %vm3_vm0, %v112_v27  }
  0x88   :  { %475 = vst.msk [vmem:[%s1251_s1 + $0x341] ss:$-126 sm:$0x60] %vm3_vm0, %v112_v27   ;;  %476 = vst.msk [vmem:[%s1251_s1 + $0xe8] sm:$0x80] %vm3_vm0, %v112_v27   ;;  %v150_v28 = vpop.permute.xlu1 %149  }
  0x89   :  { %v137_v29 = vpop.permute.xlu0 %136   ;;  %487 = vst.msk [vmem:[%s1251_s1 + $0xf0] ss:$-126 sm:$0x3] %vm3_vm0, %v150_v28   ;;  %488 = vst.msk [vmem:[%s1251_s1 + $0x210] ss:$-126 sm:$0x1c] %vm3_vm0, %v150_v28  }
  0x8a   :  { %489 = vst.msk [vmem:[%s1251_s1 + $0x330] ss:$-126 sm:$0x60] %vm3_vm0, %v150_v28   ;;  %490 = vst.msk [vmem:[%s1251_s1 + $0xd7] sm:$0x80] %vm3_vm0, %v150_v28  }
  0x8b   :  { %482 = vst.msk [vmem:[%s1251_s1 + $0x60] ss:$162 sm:$0x3] %vm3_vm0, %v137_v29   ;;  %483 = vst.msk [vmem:[%s1251_s1 + $0x180] ss:$-126 sm:$0xc] %vm3_vm0, %v137_v29  }
  0x8c   :  { %484 = vst.msk [vmem:[%s1251_s1 + $0x2a0] ss:$-126 sm:$0x30] %vm3_vm0, %v137_v29   ;;  %485 = vst.msk [vmem:[%s1251_s1 + $0x3c0] ss:$-126 sm:$0xc0] %vm3_vm0, %v137_v29   ;;  %v175_v30 = vpop.permute.xlu1 %174  }
  0x8d   :  { %v162_v31 = vpop.permute.xlu0 %161   ;;  %496 = vst.msk [vmem:[%s1251_s1 + $0xf1] ss:$-126 sm:$0x3] %vm3_vm0, %v175_v30   ;;  %497 = vst.msk [vmem:[%s1251_s1 + $0x211] ss:$-126 sm:$0x1c] %vm3_vm0, %v175_v30  }
  0x8e   :  { %498 = vst.msk [vmem:[%s1251_s1 + $0x331] ss:$-126 sm:$0x60] %vm3_vm0, %v175_v30   ;;  %499 = vst.msk [vmem:[%s1251_s1 + $0xd8] sm:$0x80] %vm3_vm0, %v175_v30  }
  0x8f   :  { %491 = vst.msk [vmem:[%s1251_s1 + $0x61] ss:$162 sm:$0x3] %vm3_vm0, %v162_v31   ;;  %492 = vst.msk [vmem:[%s1251_s1 + $0x181] ss:$-126 sm:$0xc] %vm3_vm0, %v162_v31  }
  0x90   :  { %493 = vst.msk [vmem:[%s1251_s1 + $0x2a1] ss:$-126 sm:$0x30] %vm3_vm0, %v162_v31   ;;  %494 = vst.msk [vmem:[%s1251_s1 + $0x3c1] ss:$-126 sm:$0xc0] %vm3_vm0, %v162_v31   ;;  %v200_v32 = vpop.permute.xlu1 %199  }
  0x91   :  { %v187_v33 = vpop.permute.xlu0 %186   ;;  %505 = vst.msk [vmem:[%s1251_s1 + $0x50] ss:$162 sm:$0x3] %vm3_vm0, %v200_v32   ;;  %506 = vst.msk [vmem:[%s1251_s1 - $0xd0] ss:$162 sm:$0xc] %vm3_vm0, %v200_v32  }
  0x92   :  { %507 = vst.msk [vmem:[%s1251_s1 + $0x290] ss:$-126 sm:$0x30] %vm3_vm0, %v200_v32   ;;  %508 = vst.msk [vmem:[%s1251_s1 + $0x3b0] ss:$-126 sm:$0xc0] %vm3_vm0, %v200_v32  }
  0x93   :  { %500 = vst.msk [vmem:[%s1251_s1 + $0xe0] ss:$-126 sm:$0x3] %vm3_vm0, %v187_v33   ;;  %501 = vst.msk [vmem:[%s1251_s1 + $0x200] ss:$-126 sm:$0x1c] %vm3_vm0, %v187_v33  }
  0x94   :  { %502 = vst.msk [vmem:[%s1251_s1 + $0x320] ss:$-126 sm:$0x60] %vm3_vm0, %v187_v33   ;;  %503 = vst.msk [vmem:[%s1251_s1 + $0xc7] sm:$0x80] %vm3_vm0, %v187_v33   ;;  %v225_v34 = vpop.permute.xlu1 %224  }
  0x95   :  { %v212_v35 = vpop.permute.xlu0 %211   ;;  %514 = vst.msk [vmem:[%s1251_s1 + $0x51] ss:$162 sm:$0x3] %vm3_vm0, %v225_v34   ;;  %515 = vst.msk [vmem:[%s1251_s1 - $0xcf] ss:$162 sm:$0xc] %vm3_vm0, %v225_v34  }
  0x96   :  { %516 = vst.msk [vmem:[%s1251_s1 + $0x291] ss:$-126 sm:$0x30] %vm3_vm0, %v225_v34   ;;  %517 = vst.msk [vmem:[%s1251_s1 + $0x3b1] ss:$-126 sm:$0xc0] %vm3_vm0, %v225_v34  }
  0x97   :  { %509 = vst.msk [vmem:[%s1251_s1 + $0xe1] ss:$-126 sm:$0x3] %vm3_vm0, %v212_v35   ;;  %510 = vst.msk [vmem:[%s1251_s1 + $0x201] ss:$-126 sm:$0x1c] %vm3_vm0, %v212_v35  }
  0x98   :  { %511 = vst.msk [vmem:[%s1251_s1 + $0x321] ss:$-126 sm:$0x60] %vm3_vm0, %v212_v35   ;;  %512 = vst.msk [vmem:[%s1251_s1 + $0xc8] sm:$0x80] %vm3_vm0, %v212_v35   ;;  %v250_v36 = vpop.permute.xlu1 %249  }
  0x99   :  { %v237_v37 = vpop.permute.xlu0 %236   ;;  %523 = vst.msk [vmem:[%s1251_s1 + $0xd0] ss:$-126 sm:$0x3] %vm3_vm0, %v250_v36   ;;  %524 = vst.msk [vmem:[%s1251_s1 + $0x1f0] ss:$-126 sm:$0xc] %vm3_vm0, %v250_v36  }
  0x9a   :  { %525 = vst.msk [vmem:[%s1251_s1 + $0x310] ss:$-126 sm:$0x70] %vm3_vm0, %v250_v36   ;;  %526 = vst.msk [vmem:[%s1251_s1 + $0xb7] sm:$0x80] %vm3_vm0, %v250_v36  }
  0x9b   :  { %518 = vst.msk [vmem:[%s1251_s1 + $0x40] ss:$162 sm:$0x3] %vm3_vm0, %v237_v37   ;;  %519 = vst.msk [vmem:[%s1251_s1 - $0xe0] ss:$162 sm:$0xc] %vm3_vm0, %v237_v37  }
  0x9c   :  { %520 = vst.msk [vmem:[%s1251_s1 + $0x280] ss:$-126 sm:$0x30] %vm3_vm0, %v237_v37   ;;  %521 = vst.msk [vmem:[%s1251_s1 + $0x3a0] ss:$-126 sm:$0xc0] %vm3_vm0, %v237_v37   ;;  %v275_v38 = vpop.permute.xlu1 %274  }
  0x9d   :  { %v262_v39 = vpop.permute.xlu0 %261   ;;  %532 = vst.msk [vmem:[%s1251_s1 + $0xd1] ss:$-126 sm:$0x3] %vm3_vm0, %v275_v38   ;;  %533 = vst.msk [vmem:[%s1251_s1 + $0x1f1] ss:$-126 sm:$0xc] %vm3_vm0, %v275_v38  }
  0x9e   :  { %534 = vst.msk [vmem:[%s1251_s1 + $0x311] ss:$-126 sm:$0x70] %vm3_vm0, %v275_v38   ;;  %535 = vst.msk [vmem:[%s1251_s1 + $0xb8] sm:$0x80] %vm3_vm0, %v275_v38  }
  0x9f   :  { %527 = vst.msk [vmem:[%s1251_s1 + $0x41] ss:$162 sm:$0x3] %vm3_vm0, %v262_v39   ;;  %528 = vst.msk [vmem:[%s1251_s1 - $0xdf] ss:$162 sm:$0xc] %vm3_vm0, %v262_v39  }
  0xa0   :  { %529 = vst.msk [vmem:[%s1251_s1 + $0x281] ss:$-126 sm:$0x30] %vm3_vm0, %v262_v39   ;;  %530 = vst.msk [vmem:[%s1251_s1 + $0x3a1] ss:$-126 sm:$0xc0] %vm3_vm0, %v262_v39   ;;  %v300_v40 = vpop.permute.xlu1 %299  }
  0xa1   :  { %v287_v41 = vpop.permute.xlu0 %286   ;;  %541 = vst.msk [vmem:[%s1251_s1 + $0x30] ss:$162 sm:$0x3] %vm3_vm0, %v300_v40   ;;  %542 = vst.msk [vmem:[%s1251_s1 - $0xf0] ss:$162 sm:$0xc] %vm3_vm0, %v300_v40  }
  0xa2   :  { %543 = vst.msk [vmem:[%s1251_s1 - $0x210] ss:$162 sm:$0x30] %vm3_vm0, %v300_v40   ;;  %544 = vst.msk [vmem:[%s1251_s1 + $0x390] ss:$-126 sm:$0xc0] %vm3_vm0, %v300_v40  }
  0xa3   :  { %536 = vst.msk [vmem:[%s1251_s1 + $0xc0] ss:$-126 sm:$0x3] %vm3_vm0, %v287_v41   ;;  %537 = vst.msk [vmem:[%s1251_s1 + $0x1e0] ss:$-126 sm:$0xc] %vm3_vm0, %v287_v41  }
  0xa4   :  { %538 = vst.msk [vmem:[%s1251_s1 + $0x300] ss:$-126 sm:$0x70] %vm3_vm0, %v287_v41   ;;  %539 = vst.msk [vmem:[%s1251_s1 + $0xa7] sm:$0x80] %vm3_vm0, %v287_v41   ;;  %v325_v42 = vpop.permute.xlu1 %324  }
  0xa5   :  { %v312_v43 = vpop.permute.xlu0 %311   ;;  %550 = vst.msk [vmem:[%s1251_s1 + $0x31] ss:$162 sm:$0x3] %vm3_vm0, %v325_v42   ;;  %551 = vst.msk [vmem:[%s1251_s1 - $0xef] ss:$162 sm:$0xc] %vm3_vm0, %v325_v42  }
  0xa6   :  { %552 = vst.msk [vmem:[%s1251_s1 - $0x20f] ss:$162 sm:$0x30] %vm3_vm0, %v325_v42   ;;  %553 = vst.msk [vmem:[%s1251_s1 + $0x391] ss:$-126 sm:$0xc0] %vm3_vm0, %v325_v42  }
  0xa7   :  { %545 = vst.msk [vmem:[%s1251_s1 + $0xc1] ss:$-126 sm:$0x3] %vm3_vm0, %v312_v43   ;;  %546 = vst.msk [vmem:[%s1251_s1 + $0x1e1] ss:$-126 sm:$0xc] %vm3_vm0, %v312_v43  }
  0xa8   :  { %547 = vst.msk [vmem:[%s1251_s1 + $0x301] ss:$-126 sm:$0x70] %vm3_vm0, %v312_v43   ;;  %548 = vst.msk [vmem:[%s1251_s1 + $0xa8] sm:$0x80] %vm3_vm0, %v312_v43   ;;  %v350_v44 = vpop.permute.xlu1 %349  }
  0xa9   :  { %v337_v45 = vpop.permute.xlu0 %336   ;;  %559 = vst.msk [vmem:[%s1251_s1 + $0xb0] ss:$-126 sm:$0x3] %vm3_vm0, %v350_v44   ;;  %560 = vst.msk [vmem:[%s1251_s1 + $0x1d0] ss:$-126 sm:$0xc] %vm3_vm0, %v350_v44  }
  0xaa   :  { %561 = vst.msk [vmem:[%s1251_s1 + $0x2f0] ss:$-126 sm:$0x30] %vm3_vm0, %v350_v44   ;;  %562 = vst.msk [vmem:[%s1251_s1 + $0x410] ss:$-126 sm:$0xc0] %vm3_vm0, %v350_v44  }
  0xab   :  { %554 = vst.msk [vmem:[%s1251_s1 + $0x20] ss:$162 sm:$0x3] %vm3_vm0, %v337_v45   ;;  %555 = vst.msk [vmem:[%s1251_s1 - $0x100] ss:$162 sm:$0xc] %vm3_vm0, %v337_v45  }
  0xac   :  { %556 = vst.msk [vmem:[%s1251_s1 - $0x220] ss:$162 sm:$0x30] %vm3_vm0, %v337_v45   ;;  %557 = vst.msk [vmem:[%s1251_s1 + $0x380] ss:$-126 sm:$0xc0] %vm3_vm0, %v337_v45   ;;  %v375_v46 = vpop.permute.xlu1 %374  }
  0xad   :  { %v362_v47 = vpop.permute.xlu0 %361   ;;  %568 = vst.msk [vmem:[%s1251_s1 + $0xb1] ss:$-126 sm:$0x3] %vm3_vm0, %v375_v46   ;;  %569 = vst.msk [vmem:[%s1251_s1 + $0x1d1] ss:$-126 sm:$0xc] %vm3_vm0, %v375_v46  }
  0xae   :  { %570 = vst.msk [vmem:[%s1251_s1 + $0x2f1] ss:$-126 sm:$0x30] %vm3_vm0, %v375_v46   ;;  %571 = vst.msk [vmem:[%s1251_s1 + $0x411] ss:$-126 sm:$0xc0] %vm3_vm0, %v375_v46  }
  0xaf   :  { %563 = vst.msk [vmem:[%s1251_s1 + $0x21] ss:$162 sm:$0x3] %vm3_vm0, %v362_v47   ;;  %564 = vst.msk [vmem:[%s1251_s1 - $0xff] ss:$162 sm:$0xc] %vm3_vm0, %v362_v47  }
  0xb0   :  { %565 = vst.msk [vmem:[%s1251_s1 - $0x21f] ss:$162 sm:$0x30] %vm3_vm0, %v362_v47   ;;  %566 = vst.msk [vmem:[%s1251_s1 + $0x381] ss:$-126 sm:$0xc0] %vm3_vm0, %v362_v47   ;;  %v400_v48 = vpop.permute.xlu1 %399  }
  0xb1   :  { %v388_v49 = vpop.permute.xlu0 %387   ;;  %577 = vst.msk [vmem:[%s1251_s1 + $0x10] ss:$162 sm:$0x3] %vm3_vm0, %v400_v48   ;;  %578 = vst.msk [vmem:[%s1251_s1 - $0x110] ss:$162 sm:$0xc] %vm3_vm0, %v400_v48  }
  0xb2   :  { %579 = vst.msk [vmem:[%s1251_s1 - $0x230] ss:$162 sm:$0x30] %vm3_vm0, %v400_v48   ;;  %580 = vst.msk [vmem:[%s1251_s1 - $0x350] ss:$162 sm:$0xc0] %vm3_vm0, %v400_v48  }
  0xb3   :  { %573 = vst.msk [vmem:[%s1251_s1 + $0xa0] ss:$-126 sm:$0x3] %vm3_vm0, %v388_v49   ;;  %574 = vst.msk [vmem:[%s1251_s1 + $0x1c0] ss:$-126 sm:$0xc] %vm3_vm0, %v388_v49  }
  0xb4   :  { %575 = vst.msk [vmem:[%s1251_s1 + $0x2e0] ss:$-126 sm:$0x30] %vm3_vm0, %v388_v49   ;;  %576 = vst.msk [vmem:[%s1251_s1 + $0x400] ss:$-126 sm:$0xc0] %vm3_vm0, %v388_v49   ;;  %v425_v50 = vpop.permute.xlu1 %424  }
  0xb5   :  { %v413_v51 = vpop.permute.xlu0 %412   ;;  %586 = vst.msk [vmem:[%s1251_s1 + $0x11] ss:$162 sm:$0x3] %vm3_vm0, %v425_v50   ;;  %587 = vst.msk [vmem:[%s1251_s1 - $0x10f] ss:$162 sm:$0xc] %vm3_vm0, %v425_v50  }
  0xb6   :  { %588 = vst.msk [vmem:[%s1251_s1 - $0x22f] ss:$162 sm:$0x30] %vm3_vm0, %v425_v50   ;;  %589 = vst.msk [vmem:[%s1251_s1 - $0x34f] ss:$162 sm:$0xc0] %vm3_vm0, %v425_v50  }
  0xb7   :  { %582 = vst.msk [vmem:[%s1251_s1 + $0xa1] ss:$-126 sm:$0x3] %vm3_vm0, %v413_v51   ;;  %583 = vst.msk [vmem:[%s1251_s1 + $0x1c1] ss:$-126 sm:$0xc] %vm3_vm0, %v413_v51  }
  0xb8   :  { %584 = vst.msk [vmem:[%s1251_s1 + $0x2e1] ss:$-126 sm:$0x30] %vm3_vm0, %v413_v51   ;;  %585 = vst.msk [vmem:[%s1251_s1 + $0x401] ss:$-126 sm:$0xc0] %vm3_vm0, %v413_v51  }

// kernel: conv2d_bn_relu.1
= control target key start
LH: loop header
LB: loop body
LE: loop exit
PB: predicated region body
PF: predicated region fallthrough
CT: control target
= control target key end

     0   :  { %s7245_s18 = smov 0   ;;  %s7247_s19 = smov 0   ;;  %s8235_s0 = inlined_call_operand.vmem [shape: bf16[2,326,4], index: 0, kind: input, shape index: {}]   ;;  %s8236_s1 = inlined_call_operand.vmem [shape: bf16[9,4,128], index: 1, kind: input, shape index: {}]   ;;  %s8237_s2 = inlined_call_operand.vmem [shape: f32[1,128], index: 2, kind: input, shape index: {}]   ;;  %s8238_s3 = inlined_call_operand.vmem [shape: f32[1,128], index: 3, kind: input, shape index: {}]   ;;  %s8239_s4 = inlined_call_operand.vmem [shape: f32[288,1], index: 4, kind: input, shape index: {}]   ;;  %s8240_s5 = inlined_call_operand.vmem [shape: f32[2,288,128], index: 5, kind: output, shape index: {}]  }
   0x1   :  { %s7249_s20 = smov 0   ;;  %s7251_s21 = smov 0  }
   0x2   :  { %s7253_s22 = smov 0  }
   0x3 LB: > { %s24_s23 = sadd.s32 1, %s7203_s20  ;;  %s27_s24 = sadd.s32 1, %s7207_s21  ;;  %s7211_s22 = sphi %s7253_s22, %s15_s22   ;;  %s7207_s21 = sphi %s7251_s21, %s8244_s21   ;;  %s7203_s20 = sphi %s7249_s20, %s8243_s20   ;;  %s7199_s19 = sphi %s7247_s19, %s8242_s19   ;;  %s7195_s18 = sphi %s7245_s18, %s8241_s18  }
   0x4   : > { %p25_p0 = scmp.ge.s32.totalorder %s24_s23, 2  ;;  %p5790_p1 = scmp.ge.s32.totalorder %s7211_s22, 1 }
   0x5   : > { %p201_p2 = scmp.lt.s32.totalorder %s7211_s22, 5 }
   0x6   : > { %s8246_s23 = smov (%p25_p0, %s24_s23), 0  ;;  %s8248_s24 = smov (!%p25_p0, %s27_s24), %s7207_s21 }
   0x7   : > { %p202_p3 = pnand %p5790_p1, %p201_p2  ;;  %p29_p4 = scmp.ge.s32.totalorder %s8248_s24, 2 }
   0x8   : > { %s235_s25 = smul.u32 (!%p202_p3), %s7195_s18, %s7199_s19  ;;  %v279_v0 = vld [vmem:[%s8236_s1] sm:$0x3] (!%p202_p3)  ;;  %vm425_vm0 = vcmask (!%p202_p3), 1041408   ;;  %p230_p5 = scmp.lt.s32.totalorder (!%p202_p3), %s7195_s18, 1  ;;  %v5943_v2 = vld [vmem:[%s8236_s1 + $0x8] sm:$0x3] (!%p202_p3) }
   0x9   : > { %s8250_s24 = smov (%p29_p4, %s8248_s24), 0  ;;  %205 = sbr.rel (%p202_p3) target bundleno = 865 (0x361), region = 40 }
   0xa   : > { %6944 = vmatprep.subr.msk.bf16.mxu1 (!%p202_p3), %vm425_vm0, %v279_v0  ;;  %v427_v1 = vsel (!%p202_p3), %vm425_vm0, %v279_v0, 0  ;;  %p236_p6 = scmp.lt.s32.totalorder (!%p202_p3), %s235_s25, 1  ;;  %6948 = vmatprep.subr.msk.bf16.mxu0 (!%p202_p3), %vm425_vm0, %v5943_v2  ;;  %v7292_v3 = vsel (!%p202_p3), %vm425_vm0, %v5943_v2, 0  ;;  %v5981_v4 = vld [vmem:[%s8236_s1 + $0xa] sm:$0x3] (!%p202_p3)  ;;  %vm370_vm1 = vcmask (!%p202_p3), 31744  }
   0xb   : > { %6313 = vmatpush3.bf16.msra.mxu1 (!%p202_p3), %v427_v1  ;;  %v5829_v5 = vld [vmem:[%s8236_s1 + $0x2] sm:$0x3] (!%p202_p3)  ;;  %6465 = vmatpush3.bf16.msra.mxu0 (!%p202_p3), %v7292_v3  ;;  %vm2420_vm2 = vsmask.f32 (!%p202_p3), 6400  ;;  %v7318_v7 = vld [vmem:[%s8236_s1 + $0x4] sm:$0x3] (!%p202_p3) }
   0xc   : > { %6945 = vmatprep.subr.msk.bf16.mxu1 (!%p202_p3), %vm425_vm0, %v5829_v5  ;;  %6950 = vmatprep.subr.msk.bf16.mxu0 (!%p202_p3), %vm425_vm0, %v5981_v4  ;;  %v978_v9 = vsel (!%p202_p3), %vm425_vm0, %v5829_v5, 0  ;;  %v3158_v18 = vsel (!%p202_p3), %vm425_vm0, %v5981_v4, 0  ;;  %v7343_v40 = vld [vmem:[%s8236_s1 + $0xc] sm:$0x3] (!%p202_p3)  ;;  %vm3065_vm3 = vcmask (!%p202_p3), 1045504   ;;  %vm1397_vm5 = vcmask (!%p202_p3), 1046528  }
   0xd   : > { %vm774_vm4 = vsmask.f32 (!%p202_p3), 7424  ;;  %vm4088_vm6 = vsmask.f32 (!%p202_p3), 5376  ;;  %vm4733_vm7 = vcmask (!%p202_p3), 1044480   ;;  %p6133_p7 = scmp.ne.s32.totalorder (!%p202_p3), %s7199_s19, 0 }
  0x10   : > { %s231_s9 = scalar_select %p230_p5, %s7195_s18, 1 }
  0x11   : > { %s8252_s25 = smov (!%p236_p6, %s235_s25), 1  ;;  %p6134_p8 = scmp.ne.s32.totalorder (!%p6133_p7), %s7195_s18, 0 }
  0x12   : > { %s6954_s10 = smul.u32 164, %s231_s9 }
  0x13   : > { %s6955_s11 = smul.u32 288, %s8252_s25 }
  0x14   : > { %s7307_s14 = scalar_lea.vmem %s8235_s0, %s6954_s10 }
  0x15   : > { %s7312_s17 = scalar_lea.vmem %s8240_s5, %s6955_s11  ;;  %v6998_v6 = vld [vmem:[%s7307_s14] sm:$0xff]   ;;  %v6999_v8 = vld [vmem:[%s7307_s14 + $0x8] sm:$0xff]   ;;  %v7001_v11 = vld [vmem:[%s7307_s14 + $0x10] sm:$0xff]  }
  0x16   : > { %6314 = vmatprep.mubr.msk.bf16.mxu1 %vm370_vm1, %v6998_v6  ;;  %v7000_v10 = vld [vmem:[%s7307_s14 + $0x8] sm:$0xfe]   ;;  %v7002_v12 = vld [vmem:[%s7307_s14 + $0x10] sm:$0xff]   ;;  %v2430_v15 = vshrl.u32 %v7001_v11, 16  ;;  %v2433_v16 = vshll.u32 %v7001_v11, 16  ;;  %v7003_v17 = vld [vmem:[%s7307_s14 + $0x18] sm:$0xff]  }
  0x17   : > { %6315 = vmatmul.mubr.msk.bf16.vlgmr.msra.gmra.mrb[0].mxu1 %vm370_vm1, %v6999_v8  ;;  %v2422_v13 = vshrl.u32 %v7000_v10, 16  ;;  %v2425_v14 = vshll.u32 %v7000_v10, 16  ;;  %v2439_v23 = vshrl.u32 %v7003_v17, 16  ;;  %v2442_v24 = vshll.u32 %v7003_v17, 16  ;;  %v7004_v25 = vld [vmem:[%s7307_s14 + $0x18] sm:$0xff]   ;;  %v7005_v26 = vld [vmem:[%s7307_s14 + $0x20] sm:$0xff]  }
  0x18   : > { %6351 = vmatpush3.bf16.msra.mxu1 %v978_v9  ;;  %6318 = vmatprep.mubr.msk.bf16.mxu1 %vm370_vm1, %v7002_v12  ;;  %v2432_v21 = vrot.slane %v2430_v15, 1  ;;  %v2435_v22 = vrot.slane %v2433_v16, 2  ;;  %v2448_v31 = vshrl.u32 %v7005_v26, 16  ;;  %v2451_v32 = vshll.u32 %v7005_v26, 16  ;;  %v7006_v33 = vld [vmem:[%s7307_s14 + $0x20] sm:$0xff]   ;;  %v7007_v34 = vld [vmem:[%s7307_s14 + $0x28] sm:$0xff]  }
  0x19   : > { %6946 = vmatprep.subr.msk.bf16.mxu1 %vm425_vm0, %v7318_v7  ;;  %v2424_v19 = vrot.slane %v2422_v13, 1  ;;  %v2427_v20 = vrot.slane %v2425_v14, 2  ;;  %v2441_v29 = vrot.slane %v2439_v23, 1  ;;  %v2444_v30 = vrot.slane %v2442_v24, 2  ;;  %v7008_v42 = vld [vmem:[%s7307_s14 + $0x28] sm:$0xff]   ;;  %v7009_v43 = vld [vmem:[%s7307_s14 + $0x30] sm:$0xff]  }
  0x1a   : > { %v2436_v28 = vor.u32 %v2435_v22, %v2432_v21  ;;  %v2450_v37 = vrot.slane %v2448_v31, 1  ;;  %v2453_v38 = vrot.slane %v2451_v32, 2  ;;  %v2457_v39 = vshrl.u32 %v7007_v34, 16  ;;  %v7010_v47 = vld [vmem:[%s7307_s14 + $0x30] sm:$0xff]   ;;  %v7011_v51 = vld [vmem:[%s7307_s14 + $0x38] sm:$0xff]   ;;  %v7013_v58 = vld [vmem:[%s7307_s14 + $0x40] sm:$0xff]  }
  0x1b   : > { %v2428_v27 = vor.u32 %v2427_v20, %v2424_v19  ;;  %v2445_v36 = vor.u32 %v2444_v30, %v2441_v29  ;;  %v2460_v41 = vshll.u32 %v7007_v34, 16  ;;  %v2466_v49 = vshrl.u32 %v7009_v43, 16  ;;  %v7015_v1 = vld [vmem:[%s7307_s14 + $0x48] sm:$0xff]   ;;  %v7012_v4 = vld [vmem:[%s7307_s14 + $0x38] sm:$0xff]   ;;  %v7017_v8 = vld [vmem:[%s7307_s14 + $0x50] sm:$0xff]  }
  0x1c   : > { %v2454_v45 = vor.u32 %v2453_v38, %v2450_v37  ;;  %v2459_v46 = vrot.slane %v2457_v39, 1  ;;  %v2469_v50 = vshll.u32 %v7009_v43, 16  ;;  %v2475_v56 = vshrl.u32 %v7011_v51, 16  ;;  %v7014_v12 = vld [vmem:[%s7307_s14 + $0x40] sm:$0xff]   ;;  %v7016_v23 = vld [vmem:[%s7307_s14 + $0x48] sm:$0xff]   ;;  %v7018_v24 = vld [vmem:[%s7307_s14 + $0x50] sm:$0xff]  }
  0x1d   : > { %v2437_v35 = vsel %vm2420_vm2, %v2428_v27, %v2436_v28  ;;  %v2446_v44 = vsel %vm2420_vm2, %v2436_v28, %v2445_v36  ;;  %v2462_v48 = vrot.slane %v2460_v41, 2  ;;  %v2468_v54 = vrot.slane %v2466_v49, 1  ;;  %v7022_v29 = vld [vmem:[%s7307_s14 + $0x10] sm:$0xff]   ;;  %v7021_v34 = vld [vmem:[%s7307_s14 + $0x8] sm:$0xfc]   ;;  %v7023_v37 = vld [vmem:[%s7307_s14 + $0x60] sm:$0xff]  }
  0x1e   : > { %6466 = vmatprep.mubr.msk.bf16.mxu0 %vm370_vm1, %v2437_v35  ;;  %v2455_v52 = vsel %vm2420_vm2, %v2445_v36, %v2454_v45  ;;  %v2471_v55 = vrot.slane %v2469_v50, 2  ;;  %v2478_v57 = vshll.u32 %v7011_v51, 16  ;;  %v2477_v60 = vrot.slane %v2475_v56, 1  ;;  %v7020_v35 = vld [vmem:[%s7307_s14 + $0x58] sm:$0xff]   ;;  %v7035_v49 = vld [vmem:[%s7307_s14] sm:$0xff]   ;;  %v7028_v50 = vld [vmem:[%s7307_s14 + $0x28] sm:$0xff]  }
  0x1f   : > { %6319 = vmatmul.mubr.msk.bf16.gmra.mrb[4].mxu1 %vm370_vm1, %v7004_v25  ;;  %6467 = vmatmul.mubr.msk.bf16.vlgmr.msra.gmra.mrb[0].mxu0 %vm370_vm1, %v2446_v44  ;;  %v2463_v53 = vor.u32 %v2462_v48, %v2459_v46  ;;  %v2484_v63 = vshrl.u32 %v7013_v58, 16  ;;  %v2487_v0 = vshll.u32 %v7013_v58, 16  ;;  %v2493_v9 = vshrl.u32 %v7015_v1, 16  ;;  %v7026_v44 = vld [vmem:[%s7307_s14 + $0x20] sm:$0xff]  }
  0x20   : > { %6322 = vmatprep.mubr.msk.bf16.mxu1 %vm370_vm1, %v7006_v33  ;;  %6503 = vmatpush3.bf16.msra.mxu0 %v3158_v18  ;;  %v2472_v59 = vor.u32 %v2471_v55, %v2468_v54  ;;  %v2480_v62 = vrot.slane %v2478_v57, 2  ;;  %v2496_v10 = vshll.u32 %v7015_v1, 16  ;;  %v2502_v14 = vshrl.u32 %v7017_v8, 16  ;;  %v7019_v18 = vld [vmem:[%s7307_s14 + $0x58] sm:$0xff]   ;;  %v7030_v55 = vld [vmem:[%s7307_s14 + $0x30] sm:$0xff]  }
  0x21   : > { %6470 = vmatprep.mubr.msk.bf16.mxu0 %vm370_vm1, %v2455_v52  ;;  %6951 = vmatprep.subr.msk.bf16.mxu0 %vm425_vm0, %v7343_v40  ;;  %v2464_v61 = vsel %vm2420_vm2, %v2454_v45, %v2463_v53  ;;  %v2486_v5 = vrot.slane %v2484_v63, 1  ;;  %v2489_v6 = vrot.slane %v2487_v0, 2  ;;  %v2505_v15 = vshll.u32 %v7017_v8, 16  ;;  %v7025_v45 = vld [vmem:[%s7307_s14 + $0x68] sm:$0xff]   ;;  %v7032_v0 = vld [vmem:[%s7307_s14 + $0x38] sm:$0xff]   ;;  %v7038_v1 = vld [vmem:[%s7307_s14 + $0x10] sm:$0xff]  }
  0x22   : > { %v2473_v2 = vsel %vm2420_vm2, %v2463_v53, %v2472_v59  ;;  %v2481_v11 = vor.u32 %v2480_v62, %v2477_v60  ;;  %v2495_v16 = vrot.slane %v2493_v9, 1  ;;  %v2498_v17 = vrot.slane %v2496_v10, 2  ;;  %v7036_v53 = vld [vmem:[%s7307_s14 + $0x8] sm:$0xff]  }
  0x23   : > { %v2490_v13 = vor.u32 %v2489_v6, %v2486_v5  ;;  %v2504_v21 = vrot.slane %v2502_v14, 1  ;;  %v2507_v22 = vrot.slane %v2505_v15, 2  ;;  %v2511_v26 = vshrl.u32 %v7019_v18, 16  ;;  %v7411_v57 = vld [vmem:[%s8236_s1 + $0xe] sm:$0x3]  ;;  %v7040_v6 = vld [vmem:[%s7307_s14 + $0x18] sm:$0xff]  }
  0x24   : > { %v2482_v19 = vsel %vm2420_vm2, %v2472_v59, %v2481_v11  ;;  %v2499_v25 = vor.u32 %v2498_v17, %v2495_v16  ;;  %v2514_v27 = vshll.u32 %v7019_v18, 16  ;;  %v3066_v38 = vrot.slane %v7021_v34, 2  ;;  %v7029_v59 = vld [vmem:[%s7307_s14 + $0x78] sm:$0xff]   ;;  %v7033_v10 = vld [vmem:[%s7307_s14 + $0x88] sm:$0xff]  }
  0x25   : > { %v2491_v20 = vsel %vm2420_vm2, %v2481_v11, %v2490_v13  ;;  %v2508_v28 = vor.u32 %v2507_v22, %v2504_v21  ;;  %v2513_v31 = vrot.slane %v2511_v26, 1  ;;  %v3067_v39 = vrot.slane %v7022_v29, 2  ;;  %v7037_v18 = vld [vmem:[%s7307_s14 + $0x48] sm:$0xff]  }
  0x26   : > { %v2500_v30 = vsel %vm2420_vm2, %v2490_v13, %v2499_v25  ;;  %v2516_v32 = vrot.slane %v2514_v27, 2  ;;  %v3071_v48 = vrot.slane %v7026_v44, 2  ;;  %v3669_v52 = vsel %vm425_vm0, %v7343_v40, 0  ;;  %v7031_v40 = vld [vmem:[%s7307_s14 + $0x80] sm:$0xff]   ;;  %v7044_v27 = vld [vmem:[%s7307_s14 + $0x28] sm:$0xff]   ;;  %v7048_v44 = vld [vmem:[%s7307_s14 + $0x38] sm:$0xff]  }
  0x27   : > { %6323 = vmatmul.mubr.msk.bf16.gmra.mrb[8].mxu1 %vm370_vm1, %v7008_v42  ;;  %6471 = vmatmul.mubr.msk.bf16.gmra.mrb[4].mxu0 %vm370_vm1, %v2464_v61  ;;  %v2509_v33 = vsel %vm2420_vm2, %v2499_v25, %v2508_v28  ;;  %v7024_v42 = vld [vmem:[%s7307_s14 + $0x18] sm:$0xff]   ;;  %v3068_v43 = vsel %vm3065_vm3, %v3066_v38, %v3067_v39  ;;  %v778_v56 = vshll.u32 %v7035_v49, 16  ;;  %v3073_v58 = vrot.slane %v7028_v50, 2 }
  0x28   : > { %6326 = vmatprep.mubr.msk.bf16.mxu1 %vm370_vm1, %v7010_v47  ;;  %6474 = vmatprep.mubr.msk.bf16.mxu0 %vm370_vm1, %v2473_v2  ;;  %v7384_v36 = vor.u32 %v2516_v32, %v2513_v31  ;;  %v3069_v46 = vrot.slane %v7024_v42, 2  ;;  %v7027_v47 = vld [vmem:[%s7307_s14 + $0x70] sm:$0xff]   ;;  %v783_v60 = vshll.u32 %v7036_v53, 16  ;;  %v3075_v61 = vrot.slane %v7030_v55, 2  ;;  %v7041_v38 = vld [vmem:[%s7307_s14 + $0x58] sm:$0xff]  }
  0x29   : > { %v776_v62 = vshrl.u32 %v7035_v49, 16  ;;  %v780_v63 = vrot.slane %v778_v56, 1  ;;  %v3074_v2 = vsel %vm3065_vm3, %v3071_v48, %v3073_v58  ;;  %v791_v11 = vshll.u32 %v7038_v1, 16  ;;  %v7045_v56 = vld [vmem:[%s7307_s14 + $0x68] sm:$0xff]  }
  0x2a   : > { %v2518_v41 = vsel %vm2420_vm2, %v2508_v28, %v7384_v36  ;;  %v3070_v51 = vsel %vm3065_vm3, %v3067_v39, %v3069_v46  ;;  %v3072_v54 = vsel %vm3065_vm3, %v3069_v46, %v3071_v48  ;;  %v785_v5 = vrot.slane %v783_v60, 1 }
  0x2b   : > { %v3076_v8 = vsel %vm3065_vm3, %v3073_v58, %v3075_v61  ;;  %v781_v9 = vor.u32 %v780_v63, %v776_v62  ;;  %v787_v13 = vshrl.u32 %v7036_v53, 16  ;;  %v795_v16 = vshrl.u32 %v7038_v1, 16  ;;  %v7052_v1 = vld [vmem:[%s7307_s14 + $0x48] sm:$0xff]  }
  0x2c   : > { %v799_v17 = vshll.u32 %v7040_v6, 16  ;;  %v1490_v28 = vsel %vm425_vm0, %v7318_v7, 0  ;;  %v3081_v29 = vrot.slane %v7037_v18, 2  ;;  %v7043_v7 = vld [vmem:[%s7307_s14 + $0x60] sm:$0xff]   ;;  %v3085_v48 = vrot.slane %v7041_v38, 2 }
  0x2d   : > { %v786_v15 = vsel %vm774_vm4, %v781_v9, %v785_v5  ;;  %v789_v22 = vor.u32 %v787_v13, %v785_v5  ;;  %v3087_v49 = vrot.slane %v7043_v7, 2 }
  0x2e   : > { %v801_v26 = vrot.slane %v799_v17, 1  ;;  %v7051_v17 = vld [vmem:[%s7307_s14 + $0x80] sm:$0xff]  }
  0x2f   : > { %6327 = vmatmul.mubr.msk.bf16.gmra.mrb[12].mxu1 %vm370_vm1, %v7012_v4  ;;  %6475 = vmatmul.mubr.msk.bf16.gmra.mrb[8].mxu0 %vm370_vm1, %v2482_v19  ;;  %v7034_v4 = vld [vmem:[%s7307_s14 + $0x40] sm:$0xff]   ;;  %v793_v19 = vrot.slane %v791_v11, 1  ;;  %v3088_v62 = vsel %vm3065_vm3, %v3085_v48, %v3087_v49  ;;  %v847_v11 = vshll.u32 %v7052_v1, 16 }
  0x30   : > { %6330 = vmatprep.mubr.msk.bf16.mxu1 %vm370_vm1, %v7014_v12  ;;  %6478 = vmatprep.mubr.msk.bf16.mxu0 %vm370_vm1, %v2491_v20  ;;  %v3077_v12 = vrot.slane %v7032_v0, 2  ;;  %v3079_v14 = vrot.slane %v7034_v4, 2  ;;  %v7042_v20 = vld [vmem:[%s7307_s14 + $0x20] sm:$0xff]  }
  0x31   : > { %v797_v25 = vor.u32 %v795_v16, %v793_v19  ;;  %v794_v31 = vsel %vm774_vm4, %v789_v22, %v793_v19  ;;  %v7480_v22 = vld [vmem:[%s8236_s1 + $0x6] sm:$0x3] }
  0x32   : > { %v3078_v21 = vsel %vm3065_vm3, %v3075_v61, %v3077_v12  ;;  %v3082_v42 = vsel %vm3065_vm3, %v3079_v14, %v3081_v29  ;;  %v7047_v61 = vld [vmem:[%s7307_s14 + $0x70] sm:$0xff]  }
  0x33   : > { %v802_v34 = vsel %vm774_vm4, %v797_v25, %v801_v26 }
  0x37   : > { %6331 = vmatmul.mubr.msk.bf16.gmra.mrb[16].mxu1 %vm370_vm1, %v7016_v23  ;;  %6479 = vmatmul.mubr.msk.bf16.gmra.mrb[12].mxu0 %vm370_vm1, %v2500_v30  ;;  %v7039_v23 = vld [vmem:[%s7307_s14 + $0x50] sm:$0xff]   ;;  %v807_v30 = vshll.u32 %v7042_v20, 16 }
  0x38   : > { %6334 = vmatprep.mubr.msk.bf16.mxu1 %vm370_vm1, %v7018_v24  ;;  %6482 = vmatprep.mubr.msk.bf16.mxu0 %vm370_vm1, %v2509_v33  ;;  %v3080_v24 = vsel %vm3065_vm3, %v3077_v12, %v3079_v14  ;;  %v3083_v32 = vrot.slane %v7039_v23, 2  ;;  %v803_v33 = vshrl.u32 %v7040_v6, 16  ;;  %v3091_v6 = vrot.slane %v7047_v61, 2  ;;  %v7049_v12 = vld [vmem:[%s7307_s14 + $0x78] sm:$0xff]   ;;  %v7054_v14 = vld [vmem:[%s7307_s14 + $0x50] sm:$0xff]  }
  0x39   : > { %v809_v39 = vrot.slane %v807_v30, 1  ;;  %v855_v23 = vshll.u32 %v7054_v14, 16 }
  0x3f   : > { %6335 = vmatmul.mubr.msk.bf16.gmra.mrb[20].mxu1 %vm370_vm1, %v7020_v35  ;;  %6483 = vmatmul.mubr.msk.bf16.gmra.mrb[16].mxu0 %vm370_vm1, %v2518_v41  ;;  %v811_v35 = vshrl.u32 %v7042_v20, 16  ;;  %v7046_v41 = vld [vmem:[%s7307_s14 + $0x30] sm:$0xff]   ;;  %v849_v20 = vrot.slane %v847_v11, 1  ;;  %v7062_v11 = vld [vmem:[%s7307_s14 + $0x20] sm:$0xff]  }
  0x40   : > { %6338 = vmatprep.mubr.msk.bf16.mxu1 %vm370_vm1, %v7023_v37  ;;  %6504 = vmatprep.mubr.msk.bf16.mxu0 %vm370_vm1, %v3068_v43  ;;  %v815_v37 = vshll.u32 %v7044_v27, 16  ;;  %v805_v43 = vor.u32 %v803_v33, %v801_v26  ;;  %v823_v50 = vshll.u32 %v7046_v41, 16  ;;  %v827_v53 = vshrl.u32 %v7046_v41, 16  ;;  %v7058_v33 = vld [vmem:[%s7307_s14 + $0x60] sm:$0xff]   ;;  %v7061_v41 = vld [vmem:[%s7307_s14 + $0x68] sm:$0xff]  }
  0x41   : > { %v813_v46 = vor.u32 %v811_v35, %v809_v39  ;;  %v3095_v26 = vrot.slane %v7051_v17, 2  ;;  %v7069_v17 = vld [vmem:[%s7307_s14 + $0x88] sm:$0xff]  }
  0x42   : > { %v825_v58 = vrot.slane %v823_v50, 1  ;;  %v879_v50 = vshll.u32 %v7061_v41, 16 }
  0x44   : > { %v829_v63 = vor.u32 %v827_v53, %v825_v58 }
  0x47   : > { %6339 = vmatmul.mubr.msk.bf16.gmra.mrb[24].mxu1 %vm370_vm1, %v7025_v45  ;;  %6505 = vmatmul.mubr.msk.bf16.vlgmr.msra.gmra.mrb[0].mxu0 %vm370_vm1, %v3070_v51  ;;  %v3084_v45 = vsel %vm3065_vm3, %v3081_v29, %v3083_v32  ;;  %v810_v51 = vsel %vm774_vm4, %v805_v43, %v809_v39  ;;  %v859_v29 = vshrl.u32 %v7054_v14, 16  ;;  %v871_v43 = vshll.u32 %v7058_v33, 16 }
  0x48   : > { %6342 = vmatprep.mubr.msk.bf16.mxu1 %vm370_vm1, %v7027_v47  ;;  %6541 = vmatpush3.bf16.msra.mxu0 %v3669_v52  ;;  %v817_v47 = vrot.slane %v815_v37, 1  ;;  %v819_v52 = vshrl.u32 %v7044_v27, 16  ;;  %v851_v27 = vshrl.u32 %v7052_v1, 16  ;;  %v7055_v37 = vld [vmem:[%s7307_s14 + $0x90] sm:$0xff]   ;;  %v883_v1 = vshrl.u32 %v7061_v41, 16 }
  0x49   : > { %6508 = vmatprep.mubr.msk.bf16.mxu0 %vm370_vm1, %v3072_v54  ;;  %6952 = vmatprep.subr.msk.bf16.mxu0 %vm425_vm0, %v7411_v57  ;;  %v831_v54 = vshll.u32 %v7048_v44, 16 }
  0x4a   : > { %v818_v55 = vsel %vm774_vm4, %v813_v46, %v817_v47  ;;  %v821_v60 = vor.u32 %v819_v52, %v817_v47  ;;  %v853_v35 = vor.u32 %v851_v27, %v849_v20  ;;  %v7063_v52 = vld [vmem:[%s7307_s14 + $0x70] sm:$0xff]  }
  0x4b   : > { %v833_v0 = vrot.slane %v831_v54, 1  ;;  %v7066_v27 = vld [vmem:[%s7307_s14 + $0x30] sm:$0xff]  }
  0x4c   : > { %v826_v5 = vsel %vm774_vm4, %v821_v60, %v825_v58  ;;  %v7059_v58 = vld [vmem:[%s7307_s14 + $0x10] sm:$0xfc]   ;;  %v7065_v60 = vld [vmem:[%s7307_s14 + $0x78] sm:$0xff]  }
  0x4d   : > { %v834_v9 = vsel %vm774_vm4, %v829_v63, %v833_v0 }
  0x4f   : > { %6343 = vmatmul.mubr.msk.bf16.gmra.mrb[28].mxu1 %vm370_vm1, %v7029_v59  ;;  %6509 = vmatmul.mubr.msk.bf16.gmra.mrb[4].mxu0 %vm370_vm1, %v3074_v2  ;;  %v7050_v59 = vld [vmem:[%s7307_s14 + $0x40] sm:$0xff]   ;;  %v3089_v2 = vrot.slane %v7045_v56, 2 }
  0x50   : > { %6346 = vmatprep.mubr.msk.bf16.mxu1 %vm370_vm1, %v7031_v40  ;;  %6512 = vmatprep.mubr.msk.bf16.mxu0 %vm370_vm1, %v3076_v8  ;;  %v3086_v40 = vsel %vm3065_vm3, %v3083_v32, %v3085_v48  ;;  %v839_v4 = vshll.u32 %v7050_v59, 16  ;;  %v835_v8 = vshrl.u32 %v7048_v44, 16  ;;  %v857_v32 = vrot.slane %v855_v23, 1  ;;  %v7057_v48 = vld [vmem:[%s7307_s14 + $0x98] ss:$0 sps:$4 sm:$0x33]  }
  0x51   : > { %v3092_v18 = vsel %vm3065_vm3, %v3089_v2, %v3091_v6  ;;  %v3101_v61 = vrot.slane %v7057_v48, 2  ;;  %v899_v23 = vshrl.u32 %v7065_v60, 16 }
  0x52   : > { %v841_v13 = vrot.slane %v839_v4, 1  ;;  %v837_v16 = vor.u32 %v835_v8, %v833_v0  ;;  %v861_v39 = vor.u32 %v859_v29, %v857_v32  ;;  %v858_v44 = vsel %vm774_vm4, %v853_v35, %v857_v32  ;;  %v7067_v8 = vld [vmem:[%s7307_s14 + $0x80] sm:$0xff]   ;;  %v7071_v29 = vld [vmem:[%s7307_s14 + $0x90] ss:$0 sps:$4 sm:$0x11]   ;;  %v7068_v32 = vld [vmem:[%s7307_s14 + $0x38] sm:$0xff]  }
  0x53   : > { %v3586_v41 = vrot.slane %v7068_v32, 2  ;;  %v7088_v32 = vld [vmem:[%s7307_s14 + $0x40] sm:$0xff]  }
  0x54   : > { %v842_v25 = vsel %vm774_vm4, %v837_v16, %v841_v13 }
  0x57   : > { %6347 = vmatmul.mubr.msk.bf16.gmra.mrb[32].mxu1 %vm370_vm1, %v7033_v10  ;;  %6513 = vmatmul.mubr.msk.bf16.gmra.mrb[8].mxu0 %vm370_vm1, %v3078_v21  ;;  %v843_v10 = vshrl.u32 %v7050_v59, 16  ;;  %v7056_v21 = vld [vmem:[%s7307_s14 + $0x58] sm:$0xff]  }
  0x58   : > { %6352 = vmatprep.mubr.msk.bf16.mxu1 %vm370_vm1, %v786_v15  ;;  %6516 = vmatprep.mubr.msk.bf16.mxu0 %vm370_vm1, %v3080_v24  ;;  %v3090_v15 = vsel %vm3065_vm3, %v3087_v49, %v3089_v2  ;;  %v3093_v24 = vrot.slane %v7049_v12, 2  ;;  %v863_v30 = vshll.u32 %v7056_v21, 16  ;;  %v867_v46 = vshrl.u32 %v7056_v21, 16 }
  0x59   : > { %v845_v19 = vor.u32 %v843_v10, %v841_v13  ;;  %v875_v49 = vshrl.u32 %v7058_v33, 16  ;;  %v3577_v2 = vrot.slane %v7059_v58, 2  ;;  %v7064_v13 = vld [vmem:[%s7307_s14 + $0x28] sm:$0xff]   ;;  %v4314_v33 = vsel %vm425_vm0, %v7411_v57, 0 }
  0x5a   : > { %v3096_v38 = vsel %vm3065_vm3, %v3093_v24, %v3095_v26  ;;  %v865_v7 = vrot.slane %v863_v30, 1  ;;  %v3582_v21 = vrot.slane %v7064_v13, 2 }
  0x5c   : > { %v866_v47 = vsel %vm774_vm4, %v861_v39, %v865_v7  ;;  %v869_v54 = vor.u32 %v867_v46, %v865_v7  ;;  %v919_v39 = vshll.u32 %v7071_v29, 16  ;;  %v3584_v7 = vrot.slane %v7066_v27, 2  ;;  %v7070_v46 = vld [vmem:[%s7307_s14 + $0x40] sm:$0xff]  }
  0x5e   : > { %v3585_v48 = vsel %vm3065_vm3, %v3582_v21, %v3584_v7 }
  0x5f   : > { %6353 = vmatmul.mubr.msk.bf16.vlgmr.msra.gmra.mrb[0].mxu1 %vm370_vm1, %v794_v31  ;;  %6517 = vmatmul.mubr.msk.bf16.gmra.mrb[12].mxu0 %vm370_vm1, %v3082_v42  ;;  %v7053_v31 = vld [vmem:[%s7307_s14 + $0x88] sm:$0xff]  }
  0x60   : > { %6356 = vmatprep.mubr.msk.bf16.mxu1 %vm370_vm1, %v802_v34  ;;  %6389 = vmatpush3.bf16.msra.mxu1 %v1490_v28  ;;  %v850_v28 = vsel %vm774_vm4, %v845_v19, %v849_v20  ;;  %v3094_v34 = vsel %vm3065_vm3, %v3091_v6, %v3093_v24  ;;  %v3097_v42 = vrot.slane %v7053_v31, 2  ;;  %v895_v6 = vshll.u32 %v7065_v60, 16  ;;  %v7075_v60 = vld [vmem:[%s7307_s14 + $0x50] sm:$0xff]  }
  0x61   : > { %6520 = vmatprep.mubr.msk.bf16.mxu0 %vm370_vm1, %v3084_v45  ;;  %6947 = vmatprep.subr.msk.bf16.mxu1 %vm425_vm0, %v7480_v22  ;;  %v3099_v45 = vrot.slane %v7055_v37, 2  ;;  %v3580_v19 = vrot.slane %v7062_v11, 2 }
  0x62   : > { %v3098_v53 = vsel %vm3065_vm3, %v3095_v26, %v3097_v42  ;;  %v897_v16 = vrot.slane %v895_v6, 1  ;;  %v911_v26 = vshll.u32 %v7069_v17, 16  ;;  %v7080_v6 = vld [vmem:[%s7307_s14 + $0x20] sm:$0xff]  }
  0x63   : > { %v3100_v56 = vsel %vm3065_vm3, %v3097_v42, %v3099_v45  ;;  %v3102_v10 = vsel %vm3065_vm3, %v3099_v45, %v3101_v61  ;;  %v915_v42 = vshrl.u32 %v7069_v17, 16  ;;  %v7073_v45 = vld [vmem:[%s7307_s14] sm:$0xfe]   ;;  %v1405_v13 = vrot.slane %v7080_v6, 1 }
  0x64   : > { %v901_v31 = vor.u32 %v899_v23, %v897_v16  ;;  %v913_v37 = vrot.slane %v911_v26, 1  ;;  %v7086_v23 = vld [vmem:[%s7307_s14 + $0x38] sm:$0xff]   ;;  %v7100_v6 = vld [vmem:[%s7307_s14 + $0x20] sm:$0xff]  }
  0x65   : > { %v1411_v29 = vrot.slane %v7086_v23, 1 }
  0x67   : > { %6357 = vmatmul.mubr.msk.bf16.gmra.mrb[4].mxu1 %vm370_vm1, %v810_v51  ;;  %6521 = vmatmul.mubr.msk.bf16.gmra.mrb[16].mxu0 %vm370_vm1, %v3086_v40  ;;  %v873_v51 = vrot.slane %v871_v43, 1  ;;  %v881_v40 = vrot.slane %v879_v50, 1  ;;  %v7074_v43 = vld [vmem:[%s7307_s14 + $0x8] sm:$0xff]   ;;  %v3587_v50 = vsel %vm3065_vm3, %v3584_v7, %v3586_v41  ;;  %v1413_v7 = vrot.slane %v7088_v32, 1 }
  0x68   : > { %6360 = vmatprep.mubr.msk.bf16.mxu1 %vm370_vm1, %v818_v55  ;;  %6524 = vmatprep.mubr.msk.bf16.mxu0 %vm370_vm1, %v3088_v62  ;;  %v7060_v55 = vld [vmem:[%s7307_s14 + $0x18] sm:$0xff]   ;;  %v887_v62 = vshll.u32 %v7063_v52, 16 }
  0x69   : > { %v877_v59 = vor.u32 %v875_v49, %v873_v51  ;;  %v874_v63 = vsel %vm774_vm4, %v869_v54, %v873_v51  ;;  %v3578_v0 = vrot.slane %v7060_v55, 2  ;;  %v885_v12 = vor.u32 %v883_v1, %v881_v40  ;;  %v7072_v51 = vld [vmem:[%s7307_s14 + $0x48] sm:$0xff]  }
  0x6a   : > { %v917_v49 = vor.u32 %v915_v42, %v913_v37  ;;  %v3588_v54 = vrot.slane %v7070_v46, 2  ;;  %v3590_v58 = vrot.slane %v7072_v51, 2 }
  0x6b   : > { %v882_v4 = vsel %vm774_vm4, %v877_v59, %v881_v40  ;;  %v3579_v14 = vsel %vm3065_vm3, %v3577_v2, %v3578_v0  ;;  %v3581_v30 = vsel %vm3065_vm3, %v3578_v0, %v3580_v19  ;;  %v7078_v40 = vld [vmem:[%s7307_s14 + $0x18] sm:$0xff]   ;;  %v3592_v2 = vrot.slane %v7075_v60, 2 }
  0x6c   : > { %v3589_v61 = vsel %vm3065_vm3, %v3586_v41, %v3588_v54  ;;  %v3591_v0 = vsel %vm3065_vm3, %v3588_v54, %v3590_v58  ;;  %v1403_v1 = vrot.slane %v7078_v40, 1  ;;  %v7089_v41 = vld [vmem:[%s7307_s14 + $0x88] sm:$0xff]   ;;  %v7093_v54 = vld [vmem:[%s7307_s14 + $0x98] sm:$0xff]  }
  0x6d   : > { %v3593_v11 = vsel %vm3065_vm3, %v3590_v58, %v3592_v2  ;;  %v3606_v46 = vrot.slane %v7089_v41, 2  ;;  %v7096_v58 = vld [vmem:[%s7307_s14 + $0x60] sm:$0xff]   ;;  %v7099_v40 = vld [vmem:[%s7307_s14 + $0x68] sm:$0xff]  }
  0x6f   : > { %6361 = vmatmul.mubr.msk.bf16.gmra.mrb[8].mxu1 %vm370_vm1, %v826_v5  ;;  %6525 = vmatmul.mubr.msk.bf16.gmra.mrb[20].mxu0 %vm370_vm1, %v3090_v15  ;;  %v891_v5 = vshrl.u32 %v7063_v52, 16  ;;  %v1398_v52 = vrot.slane %v7073_v45, 1  ;;  %v7092_v45 = vld [vmem:[%s7307_s14 + $0x50] sm:$0xff]  }
  0x70   : > { %6364 = vmatprep.mubr.msk.bf16.mxu1 %vm370_vm1, %v834_v9  ;;  %6528 = vmatprep.mubr.msk.bf16.mxu0 %vm370_vm1, %v3092_v18  ;;  %v889_v9 = vrot.slane %v887_v62, 1  ;;  %v903_v18 = vshll.u32 %v7067_v8, 16  ;;  %v1417_v51 = vrot.slane %v7092_v45, 1 }
  0x72   : > { %v893_v15 = vor.u32 %v891_v5, %v889_v9  ;;  %v890_v20 = vsel %vm774_vm4, %v885_v12, %v889_v9  ;;  %v7082_v9 = vld [vmem:[%s7307_s14 + $0x28] sm:$0xff]   ;;  %v7079_v12 = vld [vmem:[%s7307_s14 + $0x60] sm:$0xff]  }
  0x73   : > { %v3596_v17 = vrot.slane %v7079_v12, 2  ;;  %v7102_v12 = vld [vmem:[%s7307_s14 + $0x28] sm:$0xff]  }
  0x74   : > { %v898_v24 = vsel %vm774_vm4, %v893_v15, %v897_v16  ;;  %v7081_v15 = vld [vmem:[%s7307_s14 + $0x68] sm:$0xff]   ;;  %v1407_v16 = vrot.slane %v7082_v9, 1 }
  0x77   : > { %6365 = vmatmul.mubr.msk.bf16.gmra.mrb[12].mxu1 %vm370_vm1, %v842_v25  ;;  %6529 = vmatmul.mubr.msk.bf16.gmra.mrb[24].mxu0 %vm370_vm1, %v3094_v34  ;;  %v907_v25 = vshrl.u32 %v7067_v8, 16  ;;  %v3583_v34 = vsel %vm3065_vm3, %v3580_v19, %v3582_v21  ;;  %v7084_v19 = vld [vmem:[%s7307_s14 + $0x30] sm:$0xff]   ;;  %v1408_v21 = vsel %vm1397_vm5, %v1405_v13, %v1407_v16 }
  0x78   : > { %6368 = vmatprep.mubr.msk.bf16.mxu1 %vm370_vm1, %v850_v28  ;;  %6532 = vmatprep.mubr.msk.bf16.mxu0 %vm370_vm1, %v3096_v38  ;;  %v905_v28 = vrot.slane %v903_v18, 1  ;;  %v7537_v38 = vld [vmem:[%s8236_s1 + $0x10] sm:$0x3]  ;;  %v1406_v18 = vsel %vm1397_vm5, %v1403_v1, %v1405_v13  ;;  %v1409_v26 = vrot.slane %v7084_v19, 1  ;;  %v4110_v19 = vshll.u32 %v7100_v6, 16 }
  0x7a   : > { %v909_v35 = vor.u32 %v907_v25, %v905_v28  ;;  %v906_v57 = vsel %vm774_vm4, %v901_v31, %v905_v28  ;;  %v7083_v25 = vld [vmem:[%s7307_s14 + $0x70] sm:$0xff]   ;;  %v7085_v28 = vld [vmem:[%s7307_s14 + $0x78] sm:$0xff]   ;;  %v1410_v31 = vsel %vm1397_vm5, %v1407_v16, %v1409_v26 }
  0x7f   : > { %6369 = vmatmul.mubr.msk.bf16.gmra.mrb[16].mxu1 %vm370_vm1, %v858_v44  ;;  %6533 = vmatmul.mubr.msk.bf16.gmra.mrb[28].mxu0 %vm370_vm1, %v3098_v53  ;;  %v914_v44 = vsel %vm774_vm4, %v909_v35, %v913_v37  ;;  %v1399_v53 = vrot.slane %v7074_v43, 1  ;;  %v7090_v35 = vld [vmem:[%s7307_s14 + $0x48] sm:$0xff]  }
  0x80   : > { %6372 = vmatprep.mubr.msk.bf16.mxu1 %vm370_vm1, %v866_v47  ;;  %6536 = vmatprep.mubr.msk.bf16.mxu0 %vm370_vm1, %v3100_v56  ;;  %v921_v47 = vrot.slane %v919_v39, 1  ;;  %v7076_v56 = vld [vmem:[%s7307_s14 + $0x10] sm:$0xff]   ;;  %v7087_v39 = vld [vmem:[%s7307_s14 + $0x80] sm:$0xff]   ;;  %v1415_v42 = vrot.slane %v7090_v35, 1 }
  0x81   : > { %v1400_v59 = vsel %vm1397_vm5, %v1398_v52, %v1399_v53  ;;  %v1401_v62 = vrot.slane %v7076_v56, 1  ;;  %v3604_v43 = vrot.slane %v7087_v39, 2  ;;  %v7098_v52 = vld [vmem:[%s7307_s14 + $0x18] sm:$0xff]   ;;  %v7097_v56 = vld [vmem:[%s7307_s14 + $0x10] sm:$0xfc]   ;;  %v7105_v39 = vld [vmem:[%s7307_s14 + $0x80] sm:$0xff]  }
  0x82   : > { %v922_v55 = vsel %vm774_vm4, %v917_v49, %v921_v47  ;;  %v1416_v47 = vsel %vm1397_vm5, %v1413_v7, %v1415_v42  ;;  %v7091_v49 = vld [vmem:[%s7307_s14 + $0x90] sm:$0xff]   ;;  %v1418_v60 = vsel %vm1397_vm5, %v1415_v42, %v1417_v51 }
  0x83   : > { %v1404_v8 = vsel %vm1397_vm5, %v1401_v62, %v1403_v1 }
  0x87   : > { %6373 = vmatmul.mubr.msk.bf16.gmra.mrb[20].mxu1 %vm370_vm1, %v874_v63  ;;  %6537 = vmatmul.mubr.msk.bf16.gmra.mrb[32].mxu0 %vm370_vm1, %v3102_v10  ;;  %v7077_v63 = vld [vmem:[%s7307_s14 + $0x58] sm:$0xff]   ;;  %v2001_v10 = vsel %vm425_vm0, %v7480_v22, 0  ;;  %v7168_v22 = vld [vmem:[%s8236_s1 + $0x8] sm:$0x3] }
  0x88   : > { %6376 = vmatprep.mubr.msk.bf16.mxu1 %vm370_vm1, %v882_v4  ;;  %6542 = vmatprep.mubr.msk.bf16.mxu0 %vm370_vm1, %v3579_v14  ;;  %v1402_v4 = vsel %vm1397_vm5, %v1399_v53, %v1401_v62  ;;  %v3594_v5 = vrot.slane %v7077_v63, 2  ;;  %v3607_v53 = vsel %vm3065_vm3, %v3604_v43, %v3606_v46  ;;  %v4098_v62 = vshrl.u32 %v7098_v52, 16 }
  0x89   : > { %v4101_v63 = vshll.u32 %v7098_v52, 16 }
  0x8a   : > { %v3595_v14 = vsel %vm3065_vm3, %v3592_v2, %v3594_v5  ;;  %v4090_v2 = vshrl.u32 %v7097_v56, 16  ;;  %v4100_v9 = vrot.slane %v4098_v62, 2 }
  0x8f   : > { %6377 = vmatmul.mubr.msk.bf16.gmra.mrb[24].mxu1 %vm370_vm1, %v890_v20  ;;  %6543 = vmatmul.mubr.msk.bf16.vlgmr.msra.gmra.mrb[0].mxu0 %vm370_vm1, %v3581_v30  ;;  %v3598_v20 = vrot.slane %v7081_v15, 2  ;;  %v3600_v30 = vrot.slane %v7083_v25, 2  ;;  %v4119_v25 = vshll.u32 %v7102_v12, 16 }
  0x90   : > { %6380 = vmatprep.mubr.msk.bf16.mxu1 %vm370_vm1, %v898_v24  ;;  %6579 = vmatpush3.bf16.msra.mxu0 %v4314_v33  ;;  %v3597_v24 = vsel %vm3065_vm3, %v3594_v5, %v3596_v17  ;;  %v3602_v33 = vrot.slane %v7085_v28, 2  ;;  %v1421_v5 = vrot.slane %v7096_v58, 1  ;;  %v7104_v28 = vld [vmem:[%s7307_s14 + $0x30] sm:$0xff]  }
  0x91   : > { %6546 = vmatprep.mubr.msk.bf16.mxu0 %vm370_vm1, %v3583_v34  ;;  %6953 = vmatprep.subr.msk.bf16.mxu0 %vm425_vm0, %v7537_v38  ;;  %v3599_v27 = vsel %vm3065_vm3, %v3596_v17, %v3598_v20  ;;  %v1412_v34 = vsel %vm1397_vm5, %v1409_v26, %v1411_v29  ;;  %v3601_v37 = vsel %vm3065_vm3, %v3598_v20, %v3600_v30  ;;  %v7101_v17 = vld [vmem:[%s7307_s14 + $0x70] sm:$0xff]   ;;  %v4116_v20 = vshrl.u32 %v7102_v12, 16  ;;  %v7103_v26 = vld [vmem:[%s7307_s14 + $0x78] sm:$0xff]  }
  0x92   : > { %v4121_v35 = vrot.slane %v4119_v25, 3  ;;  %v7113_v12 = vld [vmem:[%s7307_s14 + $0x50] sm:$0xff]  }
  0x93   : > { %v4118_v32 = vrot.slane %v4116_v20, 2  ;;  %v4164_v20 = vshll.u32 %v7113_v12, 16 }
  0x95   : > { %v4122_v45 = vor.u32 %v4121_v35, %v4118_v32  ;;  %v7117_v32 = vld [vmem:[%s7307_s14 + $0x60] sm:$0xff]  }
  0x97   : > { %6381 = vmatmul.mubr.msk.bf16.gmra.mrb[28].mxu1 %vm370_vm1, %v906_v57  ;;  %6547 = vmatmul.mubr.msk.bf16.gmra.mrb[4].mxu0 %vm370_vm1, %v3585_v48  ;;  %v3603_v57 = vsel %vm3065_vm3, %v3600_v30, %v3602_v33  ;;  %v7094_v48 = vld [vmem:[%s7307_s14 + $0x58] sm:$0xff]  }
  0x98   : > { %6384 = vmatprep.mubr.msk.bf16.mxu1 %vm370_vm1, %v914_v44  ;;  %6550 = vmatprep.mubr.msk.bf16.mxu0 %vm370_vm1, %v3587_v50  ;;  %v1414_v44 = vsel %vm1397_vm5, %v1411_v29, %v1413_v7  ;;  %v3605_v50 = vsel %vm3065_vm3, %v3602_v33, %v3604_v43  ;;  %v7106_v33 = vld [vmem:[%s7307_s14 + $0x38] sm:$0xff]   ;;  %v4125_v7 = vshrl.u32 %v7104_v28, 16 }
  0x99   : > { %v4134_v43 = vshrl.u32 %v7106_v33, 16 }
  0x9f   : > { %6385 = vmatmul.mubr.msk.bf16.gmra.mrb[32].mxu1 %vm370_vm1, %v922_v55  ;;  %6551 = vmatmul.mubr.msk.bf16.gmra.mrb[8].mxu0 %vm370_vm1, %v3589_v61  ;;  %v1419_v55 = vrot.slane %v7094_v48, 1  ;;  %v7095_v61 = vld [vmem:[%s7307_s14 + $0xa0] ss:$0 sps:$4 sm:$0x33]   ;;  %v4127_v48 = vrot.slane %v4125_v7, 2 }
  0xa0   : > { %6390 = vmatprep.mubr.msk.bf16.mxu1 %vm370_vm1, %v1400_v59  ;;  %6554 = vmatprep.mubr.msk.bf16.mxu0 %vm370_vm1, %v3591_v0  ;;  %v3608_v59 = vrot.slane %v7091_v49, 2  ;;  %v3610_v0 = vrot.slane %v7093_v54, 2  ;;  %v3612_v16 = vrot.slane %v7095_v61, 2 }
  0xa1   : > { %v1420_v1 = vsel %vm1397_vm5, %v1417_v51, %v1419_v55  ;;  %v7108_v51 = vld [vmem:[%s7307_s14 + $0x40] sm:$0xff]  }
  0xa2   : > { %v3611_v13 = vsel %vm3065_vm3, %v3608_v59, %v3610_v0  ;;  %v3613_v29 = vsel %vm3065_vm3, %v3610_v0, %v3612_v16  ;;  %v4143_v62 = vshrl.u32 %v7108_v51, 16  ;;  %v7109_v0 = vld [vmem:[%s7307_s14 + $0x90] ss:$0 sps:$4 sm:$0x11]  }
  0xa7   : > { %6391 = vmatmul.mubr.msk.bf16.vlgmr.msra.gmra.mrb[0].mxu1 %vm370_vm1, %v1402_v4  ;;  %6555 = vmatmul.mubr.msk.bf16.gmra.mrb[12].mxu0 %vm370_vm1, %v3593_v11  ;;  %v4093_v4 = vshll.u32 %v7097_v56, 16  ;;  %v1423_v11 = vrot.slane %v7099_v40, 1 }
  0xa8   : > { %6394 = vmatprep.mubr.msk.bf16.mxu1 %vm370_vm1, %v1404_v8  ;;  %6427 = vmatpush3.bf16.msra.mxu1 %v2001_v10  ;;  %v3609_v8 = vsel %vm3065_vm3, %v3606_v46, %v3608_v59  ;;  %v4103_v10 = vrot.slane %v4101_v63, 3  ;;  %v7110_v59 = vld [vmem:[%s7307_s14 + $0x48] sm:$0xff]   ;;  %v4146_v63 = vshll.u32 %v7108_v51, 16 }
  0xa9   : > { %6949 = vmatprep.subr.msk.bf16.mxu1 %vm425_vm0, %v7168_v22  ;;  %6558 = vmatprep.mubr.msk.bf16.mxu0 %vm370_vm1, %v3595_v14  ;;  %v4092_v14 = vrot.slane %v4090_v2, 2  ;;  %v4095_v15 = vrot.slane %v4093_v4, 3  ;;  %v4107_v22 = vshrl.u32 %v7100_v6, 16  ;;  %v4155_v2 = vshll.u32 %v7110_v59, 16  ;;  %v7111_v4 = vld [vmem:[%s7307_s14 + $0x8] sm:$0xfe]  }
  0xaa   : > { %v4104_v23 = vor.u32 %v4103_v10, %v4100_v9  ;;  %v4145_v9 = vrot.slane %v4143_v62, 2  ;;  %v4148_v10 = vrot.slane %v4146_v63, 3  ;;  %v7122_v63 = vld [vmem:[%s7307_s14 + $0x38] sm:$0xff]  }
  0xab   : > { %v4109_v30 = vrot.slane %v4107_v22, 2  ;;  %v7115_v22 = vld [vmem:[%s7307_s14 + $0x58] sm:$0xff]  }
  0xac   : > { %v4170_v25 = vshrl.u32 %v7115_v22, 16 }
  0xaf   : > { %6395 = vmatmul.mubr.msk.bf16.gmra.mrb[4].mxu1 %vm370_vm1, %v1406_v18  ;;  %6559 = vmatmul.mubr.msk.bf16.gmra.mrb[16].mxu0 %vm370_vm1, %v3597_v24  ;;  %v1422_v18 = vsel %vm1397_vm5, %v1419_v55, %v1421_v5  ;;  %v1424_v24 = vsel %vm1397_vm5, %v1421_v5, %v1423_v11  ;;  %v4826_v55 = vsel %vm425_vm0, %v7537_v38, 0  ;;  %v7112_v5 = vld [vmem:[%s7307_s14 + $0x10] sm:$0xff]  }
  0xb0   : > { %6398 = vmatprep.mubr.msk.bf16.mxu1 %vm370_vm1, %v1408_v21  ;;  %6562 = vmatprep.mubr.msk.bf16.mxu0 %vm370_vm1, %v3599_v27  ;;  %v4096_v21 = vor.u32 %v4095_v15, %v4092_v14  ;;  %v1425_v27 = vrot.slane %v7101_v17, 1  ;;  %v4157_v14 = vrot.slane %v4155_v2, 3  ;;  %v1909_v15 = vrot.slane %v7111_v4, 1  ;;  %v7124_v2 = vld [vmem:[%s7307_s14 + $0x40] sm:$0xff]  }
  0xb1   : > { %v1910_v16 = vrot.slane %v7112_v5, 1  ;;  %v4149_v17 = vor.u32 %v4148_v10, %v4145_v9  ;;  %v7125_v9 = vld [vmem:[%s7307_s14 + $0x80] sm:$0xff]  }
  0xb2   : > { %v1426_v42 = vsel %vm1397_vm5, %v1423_v11, %v1425_v27  ;;  %v1433_v11 = vrot.slane %v7109_v0, 1 }
  0xb7   : > { %6399 = vmatmul.mubr.msk.bf16.gmra.mrb[8].mxu1 %vm370_vm1, %v1410_v31  ;;  %6563 = vmatmul.mubr.msk.bf16.gmra.mrb[20].mxu0 %vm370_vm1, %v3601_v37  ;;  %v4112_v31 = vrot.slane %v4110_v19, 3  ;;  %v1427_v37 = vrot.slane %v7103_v26, 1  ;;  %v4161_v19 = vshrl.u32 %v7113_v12, 16  ;;  %v4173_v26 = vshll.u32 %v7115_v22, 16 }
  0xb8   : > { %6402 = vmatprep.mubr.msk.bf16.mxu1 %vm370_vm1, %v1412_v34  ;;  %6566 = vmatprep.mubr.msk.bf16.mxu0 %vm370_vm1, %v3603_v57  ;;  %v4105_v34 = vsel %vm4088_vm6, %v4096_v21, %v4104_v23  ;;  %v4128_v57 = vshll.u32 %v7104_v28, 16  ;;  %v7114_v21 = vld [vmem:[%s7307_s14 + $0x18] sm:$0xff]   ;;  %v4215_v22 = vshrl.u32 %v7125_v9, 16 }
  0xb9   : > { %v4113_v41 = vor.u32 %v4112_v31, %v4109_v30  ;;  %v1428_v46 = vsel %vm1397_vm5, %v1425_v27, %v1427_v37  ;;  %v7116_v27 = vld [vmem:[%s7307_s14 + $0x20] sm:$0xff]   ;;  %v4166_v30 = vrot.slane %v4164_v20, 3  ;;  %v1912_v31 = vrot.slane %v7114_v21, 1 }
  0xba   : > { %v4130_v49 = vrot.slane %v4128_v57, 3  ;;  %v4175_v35 = vrot.slane %v4173_v26, 3  ;;  %v4217_v26 = vrot.slane %v4215_v22, 2 }
  0xbb   : > { %v4114_v52 = vsel %vm4088_vm6, %v4104_v23, %v4113_v41  ;;  %v4123_v56 = vsel %vm4088_vm6, %v4113_v41, %v4122_v45  ;;  %v1913_v57 = vsel %vm1397_vm5, %v1910_v16, %v1912_v31  ;;  %v4179_v41 = vshrl.u32 %v7117_v32, 16 }
  0xbc   : > { %v4131_v40 = vor.u32 %v4130_v49, %v4127_v48  ;;  %v7120_v48 = vld [vmem:[%s7307_s14 + $0x30] sm:$0xff]  }
  0xbe   : > { %v4132_v6 = vsel %vm4088_vm6, %v4122_v45, %v4131_v40 }
  0xbf   : > { %6403 = vmatmul.mubr.msk.bf16.gmra.mrb[12].mxu1 %vm370_vm1, %v1414_v44  ;;  %6567 = vmatmul.mubr.msk.bf16.gmra.mrb[24].mxu0 %vm370_vm1, %v3605_v50  ;;  %v4137_v44 = vshll.u32 %v7106_v33, 16  ;;  %v1429_v50 = vrot.slane %v7105_v39, 1  ;;  %v7119_v39 = vld [vmem:[%s7307_s14 + $0x68] sm:$0xff]  }
  0xc0   : > { %6406 = vmatprep.mubr.msk.bf16.mxu1 %vm370_vm1, %v1416_v47  ;;  %6570 = vmatprep.mubr.msk.bf16.mxu0 %vm370_vm1, %v3607_v53  ;;  %v7107_v47 = vld [vmem:[%s7307_s14 + $0x88] sm:$0xff]   ;;  %v4136_v53 = vrot.slane %v4134_v43, 2 }
  0xc1   : > { %v4139_v54 = vrot.slane %v4137_v44, 3  ;;  %v1431_v58 = vrot.slane %v7107_v47, 1  ;;  %v7118_v43 = vld [vmem:[%s7307_s14 + $0x28] sm:$0xff]   ;;  %v4191_v47 = vshll.u32 %v7119_v39, 16 }
  0xc3   : > { %v4140_v61 = vor.u32 %v4139_v54, %v4136_v53  ;;  %v1432_v38 = vsel %vm1397_vm5, %v1429_v50, %v1431_v58  ;;  %v7121_v53 = vld [vmem:[%s7307_s14 + $0x70] sm:$0xff]  }
  0xc4   : > { %v4200_v62 = vshll.u32 %v7121_v53, 16 }
  0xc5   : > { %v4150_v28 = vsel %vm4088_vm6, %v4140_v61, %v4149_v17 }
  0xc7   : > { %6407 = vmatmul.mubr.msk.bf16.gmra.mrb[16].mxu1 %vm370_vm1, %v1418_v60  ;;  %6571 = vmatmul.mubr.msk.bf16.gmra.mrb[28].mxu0 %vm370_vm1, %v3609_v8  ;;  %v1430_v60 = vsel %vm1397_vm5, %v1427_v37, %v1429_v50  ;;  %v4141_v8 = vsel %vm4088_vm6, %v4131_v40, %v4140_v61  ;;  %v1914_v37 = vrot.slane %v7116_v27, 1  ;;  %v4181_v50 = vrot.slane %v4179_v41, 2 }
  0xc8   : > { %6410 = vmatprep.mubr.msk.bf16.mxu1 %vm370_vm1, %v1420_v1  ;;  %6574 = vmatprep.mubr.msk.bf16.mxu0 %vm370_vm1, %v3611_v13  ;;  %v4152_v1 = vshrl.u32 %v7110_v59, 16  ;;  %v7123_v59 = vld [vmem:[%s7307_s14 + $0x78] sm:$0xff]   ;;  %v4197_v61 = vshrl.u32 %v7121_v53, 16 }
  0xc9   : > { %v1915_v45 = vsel %vm1397_vm5, %v1912_v31, %v1914_v37 }
  0xca   : > { %v4154_v13 = vrot.slane %v4152_v1, 2  ;;  %v4209_v1 = vshll.u32 %v7123_v59, 16  ;;  %v4199_v5 = vrot.slane %v4197_v61, 2 }
  0xcc   : > { %v4158_v23 = vor.u32 %v4157_v14, %v4154_v13  ;;  %v4211_v12 = vrot.slane %v4209_v1, 3  ;;  %v1922_v13 = vrot.slane %v7124_v2, 1  ;;  %v7127_v14 = vld [vmem:[%s7307_s14 + $0x88] sm:$0xff]   ;;  %v7135_v2 = vld [vmem:[%s7307_s14 + $0x10] sm:$0xf8]  }
  0xcd   : > { %v4224_v21 = vshrl.u32 %v7127_v14, 16 }
  0xce   : > { %v4159_v33 = vsel %vm4088_vm6, %v4149_v17, %v4158_v23  ;;  %v4218_v17 = vshll.u32 %v7125_v9, 16  ;;  %v7139_v9 = vld [vmem:[%s7307_s14 + $0x78] sm:$0xff]  }
  0xcf   : > { %6411 = vmatmul.mubr.msk.bf16.gmra.mrb[20].mxu1 %vm370_vm1, %v1422_v18  ;;  %6575 = vmatmul.mubr.msk.bf16.gmra.mrb[32].mxu0 %vm370_vm1, %v3613_v29  ;;  %v1434_v18 = vsel %vm1397_vm5, %v1431_v58, %v1433_v11  ;;  %v4163_v29 = vrot.slane %v4161_v19, 2  ;;  %v1918_v58 = vrot.slane %v7120_v48, 1  ;;  %v4226_v31 = vrot.slane %v4224_v21, 2  ;;  %v7143_v21 = vld [vmem:[%s7307_s14 + $0x88] sm:$0xff]  }
  0xd0   : > { %6414 = vmatprep.mubr.msk.bf16.mxu1 %vm370_vm1, %v1424_v24  ;;  %6580 = vmatprep.mubr.msk.bf16.mxu0 %vm370_vm1, %v4105_v34  ;;  %v1911_v24 = vsel %vm1397_vm5, %v1909_v15, %v1910_v16  ;;  %v4172_v34 = vrot.slane %v4170_v25, 2  ;;  %v4220_v27 = vrot.slane %v4218_v17, 3  ;;  %v7140_v17 = vld [vmem:[%s7307_s14 + $0x28] sm:$0xff]  }
  0xd1   : > { %v4167_v7 = vor.u32 %v4166_v30, %v4163_v29  ;;  %v7129_v29 = vld [vmem:[%s7307_s14 + $0x90] sm:$0xff]  }
  0xd2   : > { %v4176_v44 = vor.u32 %v4175_v35, %v4172_v34  ;;  %v7131_v34 = vld [vmem:[%s7307_s14 + $0x98] sm:$0xff]   ;;  %v4221_v35 = vor.u32 %v4220_v27, %v4217_v26  ;;  %v7149_v26 = vld [vmem:[%s7307_s14 + $0x60] sm:$0xff]  }
  0xd3   : > { %v4168_v49 = vsel %vm4088_vm6, %v4158_v23, %v4167_v7  ;;  %v4227_v23 = vshll.u32 %v7127_v14, 16 }
  0xd4   : > { %v4177_v54 = vsel %vm4088_vm6, %v4167_v7, %v4176_v44  ;;  %v4236_v7 = vshll.u32 %v7129_v29, 16 }
  0xd6   : > { %v4238_v48 = vrot.slane %v4236_v7, 3  ;;  %v7151_v7 = vld [vmem:[%s7307_s14 + $0x68] sm:$0xff]  }
  0xd7   : > { %6415 = vmatmul.mubr.msk.bf16.gmra.mrb[24].mxu1 %vm370_vm1, %v1426_v42  ;;  %6581 = vmatmul.mubr.msk.bf16.vlgmr.msra.gmra.mrb[0].mxu0 %vm370_vm1, %v4114_v52  ;;  %v4182_v42 = vshll.u32 %v7117_v32, 16  ;;  %v1916_v52 = vrot.slane %v7118_v43, 1  ;;  %v4229_v32 = vrot.slane %v4227_v23, 3  ;;  %v4242_v43 = vshrl.u32 %v7131_v34, 16 }
  0xd8   : > { %6418 = vmatprep.mubr.msk.bf16.mxu1 %vm370_vm1, %v1428_v46  ;;  %6617 = vmatpush3.bf16.msra.mxu0 %v4826_v55  ;;  %v4188_v46 = vshrl.u32 %v7119_v39, 16  ;;  %v4233_v39 = vshrl.u32 %v7129_v29, 16  ;;  %v4739_v23 = vrot.slane %v7140_v17, 3  ;;  %v1940_v29 = vrot.slane %v7143_v21, 1 }
  0xd9   : > { %6584 = vmatprep.mubr.msk.bf16.mxu0 %vm370_vm1, %v4123_v56  ;;  %v4184_v51 = vrot.slane %v4182_v42, 3  ;;  %v4193_v56 = vrot.slane %v4191_v47, 3  ;;  %v1919_v0 = vsel %vm1397_vm5, %v1916_v52, %v1918_v58  ;;  %v4230_v41 = vor.u32 %v4229_v32, %v4226_v31  ;;  %v7144_v31 = vld [vmem:[%s7307_s14 + $0x38] sm:$0xff]  }
  0xda   : > { %v4190_v55 = vrot.slane %v4188_v46, 2  ;;  %v4235_v47 = vrot.slane %v4233_v39, 2  ;;  %v7147_v39 = vld [vmem:[%s7307_s14 + $0x98] ss:$0 sps:$4 sm:$0x11]  }
  0xdb   : > { %v4185_v40 = vor.u32 %v4184_v51, %v4181_v50  ;;  %v7133_v50 = vld [vmem:[%s7307_s14 + $0xa0] ss:$0 sps:$4 sm:$0x77]   ;;  %v4231_v51 = vsel %vm4088_vm6, %v4221_v35, %v4230_v41 }
  0xdd   : > { %v4186_v4 = vsel %vm4088_vm6, %v4176_v44, %v4185_v40  ;;  %v4245_v44 = vshll.u32 %v7131_v34, 16  ;;  %v2523_v34 = vshll.u32 %v7149_v26, 16 }
  0xdf   : > { %6419 = vmatmul.mubr.msk.bf16.gmra.mrb[28].mxu1 %vm370_vm1, %v1430_v60  ;;  %6585 = vmatmul.mubr.msk.bf16.gmra.mrb[4].mxu0 %vm370_vm1, %v4132_v6  ;;  %v1917_v60 = vsel %vm1397_vm5, %v1914_v37, %v1916_v52  ;;  %v4202_v6 = vrot.slane %v4200_v62, 3  ;;  %v4244_v52 = vrot.slane %v4242_v43, 2  ;;  %v4247_v53 = vrot.slane %v4245_v44, 3  ;;  %v7137_v62 = vld [vmem:[%s7307_s14 + $0x70] sm:$0xff]  }
  0xe0   : > { %6422 = vmatprep.mubr.msk.bf16.mxu1 %vm370_vm1, %v1432_v38  ;;  %6588 = vmatprep.mubr.msk.bf16.mxu0 %vm370_vm1, %v4141_v8  ;;  %v4206_v38 = vshrl.u32 %v7123_v59, 16  ;;  %v1920_v8 = vrot.slane %v7122_v63, 1  ;;  %v4254_v59 = vshll.u32 %v7133_v50, 16  ;;  %v2525_v43 = vrot.slane %v2523_v34, 2  ;;  %v7153_v44 = vld [vmem:[%s7307_s14 + $0x70] sm:$0xff]  }
  0xe1   : > { %v4203_v15 = vor.u32 %v4202_v6, %v4199_v5  ;;  %v1934_v5 = vrot.slane %v7137_v62, 1  ;;  %v7163_v34 = vld [vmem:[%s7307_s14 + $0x98] ss:$0 sps:$4 sm:$0x33]  }
  0xe2   : > { %v4208_v11 = vrot.slane %v4206_v38, 2  ;;  %v1921_v16 = vsel %vm1397_vm5, %v1918_v58, %v1920_v8  ;;  %v1923_v20 = vsel %vm1397_vm5, %v1920_v8, %v1922_v13  ;;  %v4251_v58 = vshrl.u32 %v7133_v50, 16 }
  0xe4   : > { %v4212_v19 = vor.u32 %v4211_v12, %v4208_v11 }
  0xe6   : > { %v4213_v30 = vsel %vm4088_vm6, %v4203_v15, %v4212_v19  ;;  %v4222_v46 = vsel %vm4088_vm6, %v4212_v19, %v4221_v35 }
  0xe7   : > { %6423 = vmatmul.mubr.msk.bf16.gmra.mrb[32].mxu1 %vm370_vm1, %v1434_v18  ;;  %6589 = vmatmul.mubr.msk.bf16.gmra.mrb[8].mxu0 %vm370_vm1, %v4150_v28  ;;  %v7126_v18 = vld [vmem:[%s7307_s14 + $0x48] sm:$0xff]  }
  0xe8   : > { %6428 = vmatprep.mubr.msk.bf16.mxu1 %vm370_vm1, %v1911_v24  ;;  %6592 = vmatprep.mubr.msk.bf16.mxu0 %vm370_vm1, %v4159_v33  ;;  %v7128_v24 = vld [vmem:[%s7307_s14 + $0x50] sm:$0xff]   ;;  %v1924_v28 = vrot.slane %v7126_v18, 1 }
  0xe9   : > { %v1926_v33 = vrot.slane %v7128_v24, 1 }
  0xea   : > { %v1925_v37 = vsel %vm1397_vm5, %v1922_v13, %v1924_v28  ;;  %v7141_v13 = vld [vmem:[%s7307_s14 + $0x80] sm:$0xff]  }
  0xeb   : > { %v1927_v42 = vsel %vm1397_vm5, %v1924_v28, %v1926_v33  ;;  %v1938_v18 = vrot.slane %v7141_v13, 1  ;;  %v7142_v28 = vld [vmem:[%s7307_s14 + $0x30] sm:$0xff]  }
  0xec   : > { %v4741_v35 = vrot.slane %v7142_v28, 3 }
  0xef   : > { %6429 = vmatmul.mubr.msk.bf16.vlgmr.msra.gmra.mrb[0].mxu1 %vm370_vm1, %v1913_v57  ;;  %6593 = vmatmul.mubr.msk.bf16.gmra.mrb[12].mxu0 %vm370_vm1, %v4168_v49  ;;  %v7130_v57 = vld [vmem:[%s7307_s14 + $0x58] sm:$0xff]  }
  0xf0   : > { %6432 = vmatprep.mubr.msk.bf16.mxu1 %vm370_vm1, %v1915_v45  ;;  %6655 = vmatpush3.bf16.msra.mxu1 %v7292_v3  ;;  %v4194_v3 = vor.u32 %v4193_v56, %v4190_v55  ;;  %v7132_v45 = vld [vmem:[%s7307_s14 + $0x60] sm:$0xff]   ;;  %v1928_v49 = vrot.slane %v7130_v57, 1  ;;  %v4239_v55 = vor.u32 %v4238_v48, %v4235_v47  ;;  %v4743_v57 = vrot.slane %v7144_v31, 3 }
  0xf1   : > { %6596 = vmatprep.mubr.msk.bf16.mxu0 %vm370_vm1, %v4177_v54  ;;  %v1930_v54 = vrot.slane %v7132_v45, 1  ;;  %v4742_v45 = vsel %vm4733_vm7, %v4739_v23, %v4741_v35  ;;  %v1944_v47 = vrot.slane %v7147_v39, 1  ;;  %v2529_v48 = vshrl.u32 %v7151_v7, 16 }
  0xf2   : > { %v4195_v10 = vsel %vm4088_vm6, %v4185_v40, %v4194_v3  ;;  %v4204_v25 = vsel %vm4088_vm6, %v4194_v3, %v4203_v15  ;;  %v1929_v56 = vsel %vm1397_vm5, %v1926_v33, %v1928_v49  ;;  %v7134_v40 = vld [vmem:[%s7307_s14 + $0x68] sm:$0xff]   ;;  %v4240_v63 = vsel %vm4088_vm6, %v4230_v41, %v4239_v55  ;;  %v7138_v15 = vld [vmem:[%s7307_s14 + $0x20] sm:$0xff]  }
  0xf3   : > { %v1931_v61 = vsel %vm1397_vm5, %v1928_v49, %v1930_v54  ;;  %v4253_v3 = vrot.slane %v4251_v58, 2  ;;  %v1932_v38 = vrot.slane %v7134_v40, 1  ;;  %v4737_v19 = vrot.slane %v7138_v15, 3  ;;  %v7155_v40 = vld [vmem:[%s7307_s14 + $0x78] sm:$0xff]  }
  0xf4   : > { %v2520_v33 = vshrl.u32 %v7149_v26, 16  ;;  %v2532_v49 = vshll.u32 %v7151_v7, 16  ;;  %v4744_v50 = vsel %vm4733_vm7, %v4741_v35, %v4743_v57  ;;  %v2531_v58 = vrot.slane %v2529_v48, 1  ;;  %v7156_v26 = vld [vmem:[%s7307_s14 + $0x68] sm:$0xff]  }
  0xf5   : > { %v1933_v8 = vsel %vm1397_vm5, %v1930_v54, %v1932_v38  ;;  %v1935_v12 = vsel %vm1397_vm5, %v1932_v38, %v1934_v5  ;;  %v2541_v54 = vshll.u32 %v7153_v44, 16  ;;  %v7150_v38 = vld [vmem:[%s7307_s14 + $0x50] sm:$0xff]   ;;  %v4755_v35 = vrot.slane %v7156_v26, 3 }
  0xf7   : > { %6433 = vmatmul.mubr.msk.bf16.gmra.mrb[4].mxu1 %vm370_vm1, %v1917_v60  ;;  %6597 = vmatmul.mubr.msk.bf16.gmra.mrb[16].mxu0 %vm370_vm1, %v4186_v4  ;;  %v4248_v60 = vor.u32 %v4247_v53, %v4244_v52  ;;  %v7136_v4 = vld [vmem:[%s7307_s14 + $0x18] sm:$0xff]   ;;  %v2538_v53 = vshrl.u32 %v7153_v44, 16  ;;  %v2586_v44 = vshll.u32 %v7163_v34, 16 }
  0xf8   : > { %6436 = vmatprep.mubr.msk.bf16.mxu1 %vm370_vm1, %v1919_v0  ;;  %6600 = vmatprep.mubr.msk.bf16.mxu0 %vm370_vm1, %v4195_v10  ;;  %v4256_v0 = vrot.slane %v4254_v59, 3  ;;  %v4734_v10 = vrot.slane %v7135_v2, 3  ;;  %v4735_v11 = vrot.slane %v7136_v4, 3  ;;  %v2534_v59 = vrot.slane %v2532_v49, 2 }
  0xf9   : > { %v4249_v1 = vsel %vm4088_vm6, %v4239_v55, %v4248_v60  ;;  %v2540_v62 = vrot.slane %v2538_v53, 1  ;;  %v2547_v2 = vshrl.u32 %v7155_v40, 16  ;;  %v2550_v4 = vshll.u32 %v7155_v40, 16 }
  0xfa   : > { %v4257_v6 = vor.u32 %v4256_v0, %v4253_v3  ;;  %v4736_v22 = vsel %vm4733_vm7, %v4734_v10, %v4735_v11  ;;  %v4738_v27 = vsel %vm4733_vm7, %v4735_v11, %v4737_v19  ;;  %v7157_v3 = vld [vmem:[%s7307_s14 + $0x80] sm:$0xff]   ;;  %v4749_v10 = vrot.slane %v7150_v38, 3 }
  0xfb   : > { %v2552_v13 = vrot.slane %v2550_v4, 2  ;;  %v7167_v4 = vld [vmem:[%s7307_s14 + $0xa0] ss:$0 sps:$4 sm:$0x77]  }
  0xfc   : > { %v4258_v14 = vsel %vm4088_vm6, %v4248_v60, %v4257_v6  ;;  %v7152_v6 = vld [vmem:[%s7307_s14 + $0x58] sm:$0xff]  }
  0xfd   : > { %v4751_v15 = vrot.slane %v7152_v6, 3  ;;  %v4769_v6 = vrot.slane %v7167_v4, 3 }
  0xff   : > { %6437 = vmatmul.mubr.msk.bf16.gmra.mrb[8].mxu1 %vm370_vm1, %v1921_v16  ;;  %6601 = vmatmul.mubr.msk.bf16.gmra.mrb[20].mxu0 %vm370_vm1, %v4204_v25  ;;  %v1936_v16 = vrot.slane %v7139_v9, 1  ;;  %v7145_v25 = vld [vmem:[%s7307_s14 + $0x90] sm:$0xff]   ;;  %v2559_v9 = vshll.u32 %v7157_v3, 16 }
 0x100   : > { %6440 = vmatprep.mubr.msk.bf16.mxu1 %vm370_vm1, %v1923_v20  ;;  %6604 = vmatprep.mubr.msk.bf16.mxu0 %vm370_vm1, %v4213_v30  ;;  %v4740_v30 = vsel %vm4733_vm7, %v4737_v19, %v4739_v23  ;;  %v1942_v32 = vrot.slane %v7145_v25, 1  ;;  %v4752_v25 = vsel %vm4733_vm7, %v4749_v10, %v4751_v15 }
 0x101   : > { %v1937_v20 = vsel %vm1397_vm5, %v1934_v5, %v1936_v16  ;;  %v1939_v24 = vsel %vm1397_vm5, %v1936_v16, %v1938_v18  ;;  %v2561_v17 = vrot.slane %v2559_v9, 2 }
 0x102   : > { %v1943_v41 = vsel %vm1397_vm5, %v1940_v29, %v1942_v32 }
 0x107   : > { %6441 = vmatmul.mubr.msk.bf16.gmra.mrb[12].mxu1 %vm370_vm1, %v1925_v37  ;;  %6605 = vmatmul.mubr.msk.bf16.gmra.mrb[24].mxu0 %vm370_vm1, %v4222_v46  ;;  %v1941_v37 = vsel %vm1397_vm5, %v1938_v18, %v1940_v29  ;;  %v7146_v46 = vld [vmem:[%s7307_s14 + $0x40] sm:$0xff]   ;;  %v7161_v18 = vld [vmem:[%s7307_s14 + $0x90] sm:$0xff]  }
 0x108   : > { %6444 = vmatprep.mubr.msk.bf16.mxu1 %vm370_vm1, %v1927_v42  ;;  %6608 = vmatprep.mubr.msk.bf16.mxu0 %vm370_vm1, %v4231_v51  ;;  %v2522_v42 = vrot.slane %v2520_v33, 1  ;;  %v7148_v51 = vld [vmem:[%s7307_s14 + $0x48] sm:$0xff]   ;;  %v4745_v55 = vrot.slane %v7146_v46, 3  ;;  %v2574_v28 = vshrl.u32 %v7161_v18, 16  ;;  %v2577_v29 = vshll.u32 %v7161_v18, 16  ;;  %v7160_v46 = vld [vmem:[%s7307_s14 + $0x78] sm:$0xff]  }
 0x109   : > { %v4747_v60 = vrot.slane %v7148_v51, 3  ;;  %v2588_v51 = vrot.slane %v2586_v44, 2 }
 0x10a   : > { %v2526_v52 = vor.u32 %v2525_v43, %v2522_v42  ;;  %v4746_v0 = vsel %vm4733_vm7, %v4743_v57, %v4745_v55  ;;  %v2576_v39 = vrot.slane %v2574_v28, 1  ;;  %v2579_v7 = vrot.slane %v2577_v29, 2 }
 0x10b   : > { %v4748_v5 = vsel %vm4733_vm7, %v4745_v55, %v4747_v60  ;;  %v4750_v19 = vsel %vm4733_vm7, %v4747_v60, %v4749_v10  ;;  %v2583_v43 = vshrl.u32 %v7163_v34, 16  ;;  %v7162_v55 = vld [vmem:[%s7307_s14 + $0x80] sm:$0xff]  }
 0x10c   : > { %v4761_v40 = vrot.slane %v7162_v55, 3 }
 0x10f   : > { %6445 = vmatmul.mubr.msk.bf16.gmra.mrb[16].mxu1 %vm370_vm1, %v1929_v56  ;;  %6609 = vmatmul.mubr.msk.bf16.gmra.mrb[28].mxu0 %vm370_vm1, %v4240_v63  ;;  %v1945_v56 = vsel %vm1397_vm5, %v1942_v32, %v1944_v47  ;;  %v2543_v63 = vrot.slane %v2541_v54, 2  ;;  %v2580_v47 = vor.u32 %v2579_v7, %v2576_v39 }
 0x110   : > { %6448 = vmatprep.mubr.msk.bf16.mxu1 %vm370_vm1, %v1931_v61  ;;  %6612 = vmatprep.mubr.msk.bf16.mxu0 %vm370_vm1, %v4249_v1  ;;  %v2527_v61 = vsel %vm2420_vm2, %v7384_v36, %v2526_v52  ;;  %v2535_v1 = vor.u32 %v2534_v59, %v2531_v58  ;;  %v2556_v36 = vshrl.u32 %v7157_v3, 16  ;;  %v7164_v59 = vld [vmem:[%s7307_s14 + $0x88] sm:$0xff]  }
 0x112   : > { %v2536_v11 = vsel %vm2420_vm2, %v2526_v52, %v2535_v1  ;;  %v4759_v52 = vrot.slane %v7160_v46, 3 }
 0x117   : > { %6449 = vmatmul.mubr.msk.bf16.gmra.mrb[20].mxu1 %vm370_vm1, %v1933_v8  ;;  %6613 = vmatmul.mubr.msk.bf16.gmra.mrb[32].mxu0 %vm370_vm1, %v4258_v14  ;;  %v2544_v8 = vor.u32 %v2543_v63, %v2540_v62  ;;  %v7159_v14 = vld [vmem:[%s7307_s14 + $0x88] sm:$0xff]   ;;  %v4762_v62 = vsel %vm4733_vm7, %v4759_v52, %v4761_v40  ;;  %v7165_v63 = vld [vmem:[%s7307_s14 + $0x90] sm:$0xff]  }
 0x118   : > { %6452 = vmatprep.mubr.msk.bf16.mxu1 %vm370_vm1, %v1935_v12  ;;  %6618 = vmatprep.mubr.msk.bf16.mxu0 %vm370_vm1, %v4736_v22  ;;  %v2549_v12 = vrot.slane %v2547_v2, 1  ;;  %v2558_v22 = vrot.slane %v2556_v36, 1  ;;  %v2565_v23 = vshrl.u32 %v7159_v14, 16  ;;  %v4765_v38 = vrot.slane %v7165_v63, 3 }
 0x119   : > { %v2545_v16 = vsel %vm2420_vm2, %v2535_v1, %v2544_v8 }
 0x11a   : > { %v2553_v21 = vor.u32 %v2552_v13, %v2549_v12  ;;  %v2567_v32 = vrot.slane %v2565_v23, 1 }
 0x11c   : > { %v2554_v31 = vsel %vm2420_vm2, %v2544_v8, %v2553_v21 }
 0x11f   : > { %6453 = vmatmul.mubr.msk.bf16.gmra.mrb[24].mxu1 %vm370_vm1, %v1937_v20  ;;  %6619 = vmatmul.mubr.msk.bf16.vlgmr.msra.gmra.mrb[0].mxu0 %vm370_vm1, %v4738_v27  ;;  %v7154_v20 = vld [vmem:[%s7307_s14 + $0x60] sm:$0xff]   ;;  %v2562_v27 = vor.u32 %v2561_v17, %v2558_v22 }
 0x120   : > { %6456 = vmatprep.mubr.msk.bf16.mxu1 %vm370_vm1, %v1939_v24  ;;  %6622 = vmatprep.mubr.msk.bf16.mxu0 %vm370_vm1, %v4740_v30  ;;  %v2568_v24 = vshll.u32 %v7159_v14, 16  ;;  %v4753_v30 = vrot.slane %v7154_v20, 3 }
 0x122   : > { %v2570_v33 = vrot.slane %v2568_v24, 2  ;;  %v4754_v57 = vsel %vm4733_vm7, %v4751_v15, %v4753_v30 }
 0x124   : > { %v2571_v42 = vor.u32 %v2570_v33, %v2567_v32 }
 0x126   : > { %v2572_v49 = vsel %vm2420_vm2, %v2562_v27, %v2571_v42  ;;  %v2581_v53 = vsel %vm2420_vm2, %v2571_v42, %v2580_v47 }
 0x127   : > { %6457 = vmatmul.mubr.msk.bf16.gmra.mrb[28].mxu1 %vm370_vm1, %v1941_v37  ;;  %6623 = vmatmul.mubr.msk.bf16.gmra.mrb[4].mxu0 %vm370_vm1, %v4742_v45  ;;  %v2563_v37 = vsel %vm2420_vm2, %v2553_v21, %v2562_v27  ;;  %v4756_v45 = vsel %vm4733_vm7, %v4753_v30, %v4755_v35 }
 0x128   : > { %6460 = vmatprep.mubr.msk.bf16.mxu1 %vm370_vm1, %v1943_v41  ;;  %6626 = vmatprep.mubr.msk.bf16.mxu0 %vm370_vm1, %v4744_v50  ;;  %v7158_v41 = vld [vmem:[%s7307_s14 + $0x70] sm:$0xff]   ;;  %v2585_v50 = vrot.slane %v2583_v43, 1 }
 0x129   : > { %v4757_v48 = vrot.slane %v7158_v41, 3 }
 0x12b   : > { %v4758_v54 = vsel %vm4733_vm7, %v4755_v35, %v4757_v48  ;;  %v4760_v58 = vsel %vm4733_vm7, %v4757_v48, %v4759_v52 }
 0x12f   : > { %6461 = vmatmul.mubr.msk.bf16.gmra.mrb[32].mxu1 %vm370_vm1, %v1945_v56  ;;  %6627 = vmatmul.mubr.msk.bf16.gmra.mrb[8].mxu0 %vm370_vm1, %v4746_v0  ;;  %v2589_v56 = vor.u32 %v2588_v51, %v2585_v50  ;;  %v7166_v0 = vld [vmem:[%s7307_s14 + $0x98] sm:$0xff]  }
 0x130   : > { %6486 = vmatprep.mubr.msk.bf16.mxu1 %vm370_vm1, %v2527_v61  ;;  %6630 = vmatprep.mubr.msk.bf16.mxu0 %vm370_vm1, %v4748_v5  ;;  %v4763_v61 = vrot.slane %v7164_v59, 3  ;;  %v4767_v1 = vrot.slane %v7166_v0, 3 }
 0x131   : > { %v2590_v60 = vsel %vm2420_vm2, %v2580_v47, %v2589_v56 }
 0x132   : > { %v4764_v3 = vsel %vm4733_vm7, %v4761_v40, %v4763_v61  ;;  %v4766_v2 = vsel %vm4733_vm7, %v4763_v61, %v4765_v38  ;;  %v4768_v5 = vsel %vm4733_vm7, %v4765_v38, %v4767_v1  ;;  %v4770_v8 = vsel %vm4733_vm7, %v4767_v1, %v4769_v6 }
 0x137   : > { %6487 = vmatmul.mubr.msk.bf16.vlgmr.msra.gmra.mrb[20].mxu1 %vm370_vm1, %v2536_v11  ;;  %6631 = vmatmul.mubr.msk.bf16.gmra.mrb[12].mxu0 %vm370_vm1, %v4750_v19 }
 0x138   : > { %6490 = vmatprep.mubr.msk.bf16.mxu1 %vm370_vm1, %v2545_v16  ;;  %6634 = vmatprep.mubr.msk.bf16.mxu0 %vm370_vm1, %v4752_v25 }
 0x13f   : > { %6491 = vmatmul.mubr.msk.bf16.gmra.mrb[24].mxu1 %vm370_vm1, %v2554_v31  ;;  %6635 = vmatmul.mubr.msk.bf16.gmra.mrb[16].mxu0 %vm370_vm1, %v4754_v57 }
 0x140   : > { %6494 = vmatprep.mubr.msk.bf16.mxu1 %vm370_vm1, %v2563_v37  ;;  %6638 = vmatprep.mubr.msk.bf16.mxu0 %vm370_vm1, %v4756_v45 }
 0x147   : > { %6495 = vmatmul.mubr.msk.bf16.gmra.mrb[28].mxu1 %vm370_vm1, %v2572_v49  ;;  %6639 = vmatmul.mubr.msk.bf16.gmra.mrb[20].mxu0 %vm370_vm1, %v4758_v54 }
 0x148   : > { %6498 = vmatprep.mubr.msk.bf16.mxu1 %vm370_vm1, %v2581_v53  ;;  %6642 = vmatprep.mubr.msk.bf16.mxu0 %vm370_vm1, %v4760_v58 }
 0x14f   : > { %6499 = vmatmul.mubr.msk.bf16.gmra.mrb[32].mxu1 %vm370_vm1, %v2590_v60  ;;  %6643 = vmatmul.mubr.msk.bf16.gmra.mrb[24].mxu0 %vm370_vm1, %v4762_v62 }
 0x150   : > { %6646 = vmatprep.mubr.msk.bf16.mxu0 %vm370_vm1, %v4764_v3 }
 0x157   : > { %6647 = vmatmul.mubr.msk.bf16.gmra.mrb[28].mxu0 %vm370_vm1, %v4766_v2 }
 0x158   : > { %6650 = vmatprep.mubr.msk.bf16.mxu0 %vm370_vm1, %v4768_v5 }
 0x15f   : > { %6651 = vmatmul.mubr.msk.bf16.gmra.mrb[32].mxu0 %vm370_vm1, %v4770_v8 }
 0x1c2   : > { %v6430_v36 = vpop.f32.mrb[0].mxu1 }
 0x1c3   : > { %v2037_v9 = vpop.f32.mrb[1].mxu1 }
 0x1c4   : > { %v6431_v10 = vpop.f32.mrb[2].mxu1 }
 0x1c5   : > { %v2040_v11 = vpop.f32.mrb[3].mxu1 }
 0x1ca   : > { %v6434_v12 = vpop.f32.mrb[4].mxu1 }
 0x1cb   : > { %v2053_v13 = vpop.f32.mrb[5].mxu1 }
 0x1cc   : > { %v6435_v14 = vpop.f32.mrb[6].mxu1 }
 0x1cd   : > { %v2056_v15 = vpop.f32.mrb[7].mxu1 }
 0x1d2   : > { %v6438_v16 = vpop.f32.mrb[8].mxu1 }
 0x1d3   : > { %v2069_v22 = vpop.f32.mrb[9].mxu1 }
 0x1d4   : > { %v6439_v17 = vpop.f32.mrb[10].mxu1 }
 0x1d5   : > { %v2072_v18 = vpop.f32.mrb[11].mxu1 }
 0x1da   : > { %v6442_v19 = vpop.f32.mrb[12].mxu1 }
 0x1db   : > { %v2085_v20 = vpop.f32.mrb[13].mxu1 }
 0x1dc   : > { %v6443_v21 = vpop.f32.mrb[14].mxu1 }
 0x1dd   : > { %v2088_v23 = vpop.f32.mrb[15].mxu1 }
 0x1e2   : > { %v6446_v24 = vpop.f32.mrb[16].mxu1 }
 0x1e3   : > { %v2101_v25 = vpop.f32.mrb[17].mxu1 }
 0x1e4   : > { %v6447_v26 = vpop.f32.mrb[18].mxu1 }
 0x1e5   : > { %v2104_v27 = vpop.f32.mrb[19].mxu1 }
 0x1f2   : > { %v6620_v28 = vpop.f32.mrb[0].mxu0 }
 0x1f3   : > { %v7846_v29 = vadd.f32 %v6620_v28, %v6430_v36  ;;  %v4862_v30 = vpop.f32.mrb[1].mxu0 }
 0x1f4   : > { %v7848_v31 = vadd.f32 %v4862_v30, %v2037_v9  ;;  %v6621_v32 = vpop.f32.mrb[2].mxu0 }
 0x1f5   : > { %v7850_v33 = vadd.f32 %v6621_v32, %v6431_v10  ;;  %v4865_v34 = vpop.f32.mrb[3].mxu0 }
 0x1f6   : > { %v7852_v35 = vadd.f32 %v4865_v34, %v2040_v11 }
 0x1fa   : > { %v6624_v37 = vpop.f32.mrb[4].mxu0 }
 0x1fb   : > { %v7854_v39 = vadd.f32 %v6624_v37, %v6434_v12  ;;  %v4878_v7 = vpop.f32.mrb[5].mxu0 }
 0x1fc   : > { %v7856_v57 = vadd.f32 %v4878_v7, %v2053_v13  ;;  %v6625_v41 = vpop.f32.mrb[6].mxu0 }
 0x1fd   : > { %v7858_v42 = vadd.f32 %v6625_v41, %v6435_v14  ;;  %v4881_v43 = vpop.f32.mrb[7].mxu0 }
 0x1fe   : > { %v7860_v44 = vadd.f32 %v4881_v43, %v2056_v15 }
 0x202   : > { %v6628_v45 = vpop.f32.mrb[8].mxu0 }
 0x203   : > { %v7862_v46 = vadd.f32 %v6628_v45, %v6438_v16  ;;  %v4894_v47 = vpop.f32.mrb[9].mxu0 }
 0x204   : > { %v7864_v48 = vadd.f32 %v4894_v47, %v2069_v22  ;;  %v6629_v49 = vpop.f32.mrb[10].mxu0 }
 0x205   : > { %v7866_v50 = vadd.f32 %v6629_v49, %v6439_v17  ;;  %v4897_v51 = vpop.f32.mrb[11].mxu0 }
 0x206   : > { %v7868_v52 = vadd.f32 %v4897_v51, %v2072_v18 }
 0x20a   : > { %v6488_v53 = vpop.f32.mrb[20].mxu1  ;;  %v6632_v58 = vpop.f32.mrb[12].mxu0 }
 0x20b   : > { %v2762_v54 = vpop.f32.mrb[21].mxu1  ;;  %v7870_v59 = vadd.f32 %v6632_v58, %v6442_v19  ;;  %v4910_v40 = vpop.f32.mrb[13].mxu0 }
 0x20c   : > { %v6489_v55 = vpop.f32.mrb[22].mxu1  ;;  %v7872_v60 = vadd.f32 %v4910_v40, %v2085_v20  ;;  %v6633_v61 = vpop.f32.mrb[14].mxu0 }
 0x20d   : > { %v2765_v56 = vpop.f32.mrb[23].mxu1  ;;  %v7874_v62 = vadd.f32 %v6633_v61, %v6443_v21  ;;  %v4913_v63 = vpop.f32.mrb[15].mxu0 }
 0x20e   : > { %v7876_v3 = vadd.f32 %v4913_v63, %v2088_v23 }
 0x212   : > { %v6492_v0 = vpop.f32.mrb[24].mxu1  ;;  %v6636_v4 = vpop.f32.mrb[16].mxu0 }
 0x213   : > { %v2778_v38 = vpop.f32.mrb[25].mxu1  ;;  %v7878_v5 = vadd.f32 %v6636_v4, %v6446_v24  ;;  %v4926_v6 = vpop.f32.mrb[17].mxu0 }
 0x214   : > { %v6493_v1 = vpop.f32.mrb[26].mxu1  ;;  %v7880_v8 = vadd.f32 %v4926_v6, %v2101_v25  ;;  %v6637_v36 = vpop.f32.mrb[18].mxu0 }
 0x215   : > { %v2781_v2 = vpop.f32.mrb[27].mxu1  ;;  %v7882_v9 = vadd.f32 %v6637_v36, %v6447_v26  ;;  %v4929_v10 = vpop.f32.mrb[19].mxu0 }
 0x216   : > { %v7884_v11 = vadd.f32 %v4929_v10, %v2104_v27 }
 0x21a   : > { %v6496_v12 = vpop.f32.mrb[28].mxu1  ;;  %v6640_v16 = vpop.f32.mrb[20].mxu0 }
 0x21b   : > { %v2794_v13 = vpop.f32.mrb[29].mxu1  ;;  %v7886_v22 = vadd.f32 %v6640_v16, %v6488_v53  ;;  %v4942_v17 = vpop.f32.mrb[21].mxu0 }
 0x21c   : > { %v6497_v14 = vpop.f32.mrb[30].mxu1  ;;  %v7888_v18 = vadd.f32 %v4942_v17, %v2762_v54  ;;  %v6641_v19 = vpop.f32.mrb[22].mxu0 }
 0x21d   : > { %v2797_v15 = vpop.f32.mrb[31].mxu1  ;;  %v7890_v20 = vadd.f32 %v6641_v19, %v6489_v55  ;;  %v4945_v21 = vpop.f32.mrb[23].mxu0 }
 0x21e   : > { %v7892_v23 = vadd.f32 %v4945_v21, %v2765_v56 }
 0x222   : > { %v6500_v24 = vpop.f32.mrb[32].mxu1  ;;  %v6644_v28 = vpop.f32.mrb[24].mxu0 }
 0x223   : > { %v2810_v25 = vpop.f32.mrb[33].mxu1  ;;  %v7894_v30 = vadd.f32 %v6644_v28, %v6492_v0  ;;  %v4958_v32 = vpop.f32.mrb[25].mxu0 }
 0x224   : > { %v6501_v26 = vpop.f32.mrb[34].mxu1  ;;  %v7896_v34 = vadd.f32 %v4958_v32, %v2778_v38  ;;  %v6645_v37 = vpop.f32.mrb[26].mxu0 }
 0x225   : > { %v2813_v27 = vpop.f32.mrb[35].mxu1  ;;  %v7898_v7 = vadd.f32 %v6645_v37, %v6493_v1  ;;  %v4961_v41 = vpop.f32.mrb[27].mxu0 }
 0x226   : > { %v7900_v43 = vadd.f32 %v4961_v41, %v2781_v2 }
 0x22a   : > { %v6648_v45 = vpop.f32.mrb[28].mxu0 }
 0x22b   : > { %v7902_v47 = vadd.f32 %v6648_v45, %v6496_v12  ;;  %v4974_v49 = vpop.f32.mrb[29].mxu0 }
 0x22c   : > { %v7904_v51 = vadd.f32 %v4974_v49, %v2794_v13  ;;  %v6649_v53 = vpop.f32.mrb[30].mxu0 }
 0x22d   : > { %v7906_v54 = vadd.f32 %v6649_v53, %v6497_v14  ;;  %v4977_v55 = vpop.f32.mrb[31].mxu0 }
 0x22e   : > { %v7908_v56 = vadd.f32 %v4977_v55, %v2797_v15 }
 0x230   : > { %5152 = sbr.rel (%p6133_p7) target bundleno = 828 (0x33c), region = 44 }
 0x232   : > { %v6652_v58 = vpop.f32.mrb[32].mxu0 }
 0x233   : > { %v7910_v40 = vadd.f32 %v6652_v58, %v6500_v24  ;;  %v4990_v61 = vpop.f32.mrb[33].mxu0 }
 0x234   : > { %v7912_v63 = vadd.f32 %v4990_v61, %v2810_v25  ;;  %v6653_v0 = vpop.f32.mrb[34].mxu0 }
 0x235   : > { %v7914_v38 = vadd.f32 %v6653_v0, %v6501_v26  ;;  %v4993_v1 = vpop.f32.mrb[35].mxu0 }
 0x236   : > { %v7916_v2 = vadd.f32 %v4993_v1, %v2813_v27 }
 0x237   : > { %5156 = sbr.rel (%p6134_p8) target bundleno = 574 (0x23e), region = 48  ;;  %v7213_v4 = vmov (!%p6134_p8), 0.0  }
 0x238   : > { %5157 = vst [vmem:[#allocation3] sm:$0x1] (!%p6134_p8), %v7213_v4  ;;  %5158 = vst [vmem:[#allocation4] sm:$0x1] (!%p6134_p8), %v7213_v4 }
 0x23e PF: > { %v5161_v6 = vld [vmem:[%s8239_s4 + $0x10] sm:$0xff]  ;;  %v5159_v36 = vld [vmem:[%s8239_s4] sm:$0xff]  ;;  %v7214_v10 = vmov 0   ;;  %v5162_v12 = vld [vmem:[%s8239_s4 + $0x18] sm:$0xff]  ;;  %p6135_p9 = scmp.ne.s32.totalorder %s7195_s18, 1 }
 0x23f   : > { %7170 = vset.pattern.permute.xlu1 %v7214_v10  ;;  %7169 = vset.pattern.permute.xlu0 %v7214_v10  ;;  %v5160_v13 = vld [vmem:[%s8239_s4 + $0x8] sm:$0xff]  ;;  %v5163_v15 = vld [vmem:[%s8239_s4 + $0x20] sm:$0xff]  ;;  %v5166_v16 = vld [vmem:[%s8239_s4 + $0x38] sm:$0xff] }
 0x240   : > { %5207 = vperm.xlu1 %7170, %v5161_v6   ;;  %5197 = vperm.xlu0 %7169, %v5159_v36   ;;  %v5164_v14 = vld [vmem:[%s8239_s4 + $0x28] sm:$0xff]  ;;  %v5165_v17 = vld [vmem:[%s8239_s4 + $0x30] sm:$0xff]  ;;  %v5167_v21 = vld [vmem:[%s8239_s4 + $0x40] sm:$0xff] }
 0x241   : > { %v5168_v19 = vld [vmem:[%s8239_s4 + $0x48] sm:$0xff]  ;;  %v5170_v24 = vld [vmem:[%s8239_s4 + $0x58] sm:$0xff]  ;;  %v5169_v25 = vld [vmem:[%s8239_s4 + $0x50] sm:$0xff] }
 0x242   : > { %v5172_v26 = vld [vmem:[%s8239_s4 + $0x68] sm:$0xff]  ;;  %v5171_v27 = vld [vmem:[%s8239_s4 + $0x60] sm:$0xff]  ;;  %v5174_v28 = vld [vmem:[%s8239_s4 + $0x78] sm:$0xff] }
 0x243   : > { %v5173_v32 = vld [vmem:[%s8239_s4 + $0x70] sm:$0xff]  ;;  %v5176_v37 = vld [vmem:[%s8239_s4 + $0x88] sm:$0xff]  ;;  %v5175_v41 = vld [vmem:[%s8239_s4 + $0x80] sm:$0xff] }
 0x244   : > { %5212 = vperm.xlu1 %7170, %v5162_v12   ;;  %5202 = vperm.xlu0 %7169, %v5160_v13   ;;  %v5178_v45 = vld [vmem:[%s8239_s4 + $0x98] sm:$0xff]  ;;  %v5177_v49 = vld [vmem:[%s8239_s4 + $0x90] sm:$0xff]  ;;  %v5180_v53 = vld [vmem:[%s8239_s4 + $0xa8] sm:$0xff] }
 0x245   : > { %v5179_v55 = vld [vmem:[%s8239_s4 + $0xa0] sm:$0xff]  ;;  %v5182_v58 = vld [vmem:[%s8239_s4 + $0xb8] sm:$0xff]  ;;  %v5181_v61 = vld [vmem:[%s8239_s4 + $0xb0] sm:$0xff] }
 0x246   : > { %v5184_v0 = vld [vmem:[%s8239_s4 + $0xc8] sm:$0xff]  ;;  %v5183_v1 = vld [vmem:[%s8239_s4 + $0xc0] sm:$0xff]  ;;  %v5186_v4 = vld [vmem:[%s8239_s4 + $0xd8] sm:$0xff] }
 0x247   : > { %v5185_v6 = vld [vmem:[%s8239_s4 + $0xd0] sm:$0xff]  ;;  %v5188_v36 = vld [vmem:[%s8239_s4 + $0xe8] sm:$0xff]  ;;  %v5187_v10 = vld [vmem:[%s8239_s4 + $0xe0] sm:$0xff] }
 0x248   : > { %5222 = vperm.xlu1 %7170, %v5164_v14   ;;  %5217 = vperm.xlu0 %7169, %v5163_v15   ;;  %v5190_v12 = vld [vmem:[%s8239_s4 + $0xf8] sm:$0xff]  ;;  %v5189_v13 = vld [vmem:[%s8239_s4 + $0xf0] sm:$0xff]  ;;  %v5192_v14 = vld [vmem:[%s8239_s4 + $0x108] sm:$0xff] }
 0x249   : > { %v5191_v15 = vld [vmem:[%s8239_s4 + $0x100] sm:$0xff] }
 0x24c   : > { %5232 = vperm.xlu1 %7170, %v5166_v16   ;;  %5227 = vperm.xlu0 %7169, %v5165_v17   ;;  %v5194_v16 = vld [vmem:[%s8239_s4 + $0x118] sm:$0xff]  ;;  %v5193_v17 = vld [vmem:[%s8239_s4 + $0x110] sm:$0xff] }
 0x250   : > { %5242 = vperm.xlu1 %7170, %v5168_v19   ;;  %5237 = vperm.xlu0 %7169, %v5167_v21  }
 0x254   : > { %5252 = vperm.xlu1 %7170, %v5170_v24   ;;  %5247 = vperm.xlu0 %7169, %v5169_v25  }
 0x258   : > { %5262 = vperm.xlu1 %7170, %v5172_v26   ;;  %5257 = vperm.xlu0 %7169, %v5171_v27  }
 0x25c   : > { %5272 = vperm.xlu1 %7170, %v5174_v28   ;;  %5267 = vperm.xlu0 %7169, %v5173_v32  }
 0x260   : > { %5282 = vperm.xlu1 %7170, %v5176_v37   ;;  %5277 = vperm.xlu0 %7169, %v5175_v41  }
 0x264   : > { %5292 = vperm.xlu1 %7170, %v5178_v45   ;;  %5287 = vperm.xlu0 %7169, %v5177_v49  }
 0x268   : > { %5302 = vperm.xlu1 %7170, %v5180_v53   ;;  %5297 = vperm.xlu0 %7169, %v5179_v55  }
 0x26c   : > { %5312 = vperm.xlu1 %7170, %v5182_v58   ;;  %5307 = vperm.xlu0 %7169, %v5181_v61  }
 0x270   : > { %5322 = vperm.xlu1 %7170, %v5184_v0   ;;  %5317 = vperm.xlu0 %7169, %v5183_v1  }
 0x274   : > { %5332 = vperm.xlu1 %7170, %v5186_v4   ;;  %5327 = vperm.xlu0 %7169, %v5185_v6  }
 0x278   : > { %5342 = vperm.xlu1 %7170, %v5188_v36   ;;  %5337 = vperm.xlu0 %7169, %v5187_v10  }
 0x27c   : > { %5352 = vperm.xlu1 %7170, %v5190_v12   ;;  %5347 = vperm.xlu0 %7169, %v5189_v13  }
 0x280   : > { %5362 = vperm.xlu1 %7170, %v5192_v14   ;;  %5357 = vperm.xlu0 %7169, %v5191_v15  }
 0x284   : > { %5372 = vperm.xlu1 %7170, %v5194_v16   ;;  %5367 = vperm.xlu0 %7169, %v5193_v17  }
 0x2bf   : > { %v5208_v19 = vpop.permute.xlu1 %5207  ;;  %v5198_v21 = vpop.permute.xlu0 %5197 }
 0x2c0   : > { %v5375_v24 = vmul.f32 %v7848_v31, %v5198_v21  ;;  %v5377_v27 = vmul.f32 %v7846_v29, %v5208_v19 }
 0x2c2   : > { %v5456_v32 = vmul.f32 %v5375_v24, %v5375_v24  ;;  %v5458_v55 = vmul.f32 %v5377_v27, %v5377_v27 }
 0x2c3   : > { %v5213_v25 = vpop.permute.xlu1 %5212  ;;  %v5203_v26 = vpop.permute.xlu0 %5202 }
 0x2c4   : > { %v5376_v28 = vmul.f32 %v7852_v35, %v5203_v26  ;;  %v5378_v37 = vmul.f32 %v7850_v33, %v5213_v25 }
 0x2c6   : > { %v5412_v41 = vadd.f32 %v5376_v28, %v5375_v24  ;;  %v5457_v45 = vmul.f32 %v5376_v28, %v5376_v28  ;;  %v5459_v1 = vmul.f32 %v5378_v37, %v5378_v37 }
 0x2c7   : > { %v5223_v49 = vpop.permute.xlu1 %5222  ;;  %v5218_v53 = vpop.permute.xlu0 %5217 }
 0x2c8   : > { %v5413_v58 = vadd.f32 %v5412_v41, %v5377_v27  ;;  %v5492_v61 = vadd.f32 %v5457_v45, %v5456_v32  ;;  %v5379_v0 = vmul.f32 %v7856_v57, %v5218_v53  ;;  %v5380_v6 = vmul.f32 %v7860_v44, %v5223_v49 }
 0x2ca   : > { %v5493_v4 = vadd.f32 %v5492_v61, %v5458_v55  ;;  %v5414_v36 = vadd.f32 %v5413_v58, %v5378_v37  ;;  %v5460_v15 = vmul.f32 %v5379_v0, %v5379_v0  ;;  %v5461_v17 = vmul.f32 %v5380_v6, %v5380_v6 }
 0x2cb   : > { %v5233_v10 = vpop.permute.xlu1 %5232  ;;  %v5228_v12 = vpop.permute.xlu0 %5227 }
 0x2cc   : > { %v5494_v13 = vadd.f32 %v5493_v4, %v5459_v1  ;;  %v5415_v14 = vadd.f32 %v5414_v36, %v5379_v0  ;;  %v5381_v16 = vmul.f32 %v7854_v39, %v5228_v12  ;;  %v5382_v21 = vmul.f32 %v7858_v42, %v5233_v10 }
 0x2ce   : > { %v5495_v19 = vadd.f32 %v5494_v13, %v5460_v15  ;;  %v5416_v24 = vadd.f32 %v5415_v14, %v5380_v6  ;;  %v5462_v32 = vmul.f32 %v5381_v16, %v5381_v16  ;;  %v5463_v37 = vmul.f32 %v5382_v21, %v5382_v21 }
 0x2cf   : > { %v5243_v25 = vpop.permute.xlu1 %5242  ;;  %v5238_v26 = vpop.permute.xlu0 %5237 }
 0x2d0   : > { %v5496_v27 = vadd.f32 %v5495_v19, %v5461_v17  ;;  %v5417_v28 = vadd.f32 %v5416_v24, %v5381_v16  ;;  %v5383_v41 = vmul.f32 %v7864_v48, %v5238_v26  ;;  %v5384_v49 = vmul.f32 %v7868_v52, %v5243_v25 }
 0x2d2   : > { %v5497_v45 = vadd.f32 %v5496_v27, %v5462_v32  ;;  %v5418_v53 = vadd.f32 %v5417_v28, %v5382_v21  ;;  %v5464_v1 = vmul.f32 %v5383_v41, %v5383_v41  ;;  %v5465_v6 = vmul.f32 %v5384_v49, %v5384_v49 }
 0x2d3   : > { %v5253_v55 = vpop.permute.xlu1 %5252  ;;  %v5248_v58 = vpop.permute.xlu0 %5247 }
 0x2d4   : > { %v5498_v61 = vadd.f32 %v5497_v45, %v5463_v37  ;;  %v5419_v0 = vadd.f32 %v5418_v53, %v5383_v41  ;;  %v5385_v4 = vmul.f32 %v7862_v46, %v5248_v58  ;;  %v5386_v10 = vmul.f32 %v7866_v50, %v5253_v55 }
 0x2d6   : > { %v5499_v36 = vadd.f32 %v5498_v61, %v5464_v1  ;;  %v5420_v12 = vadd.f32 %v5419_v0, %v5384_v49  ;;  %v5466_v17 = vmul.f32 %v5385_v4, %v5385_v4  ;;  %v5467_v21 = vmul.f32 %v5386_v10, %v5386_v10 }
 0x2d7   : > { %v5263_v13 = vpop.permute.xlu1 %5262  ;;  %v5258_v14 = vpop.permute.xlu0 %5257 }
 0x2d8   : > { %v5500_v15 = vadd.f32 %v5499_v36, %v5465_v6  ;;  %v5421_v16 = vadd.f32 %v5420_v12, %v5385_v4  ;;  %v5387_v19 = vmul.f32 %v7872_v60, %v5258_v14  ;;  %v5388_v25 = vmul.f32 %v7876_v3, %v5263_v13 }
 0x2da   : > { %v5501_v24 = vadd.f32 %v5500_v15, %v5466_v17  ;;  %v5422_v26 = vadd.f32 %v5421_v16, %v5386_v10  ;;  %v5468_v37 = vmul.f32 %v5387_v19, %v5387_v19  ;;  %v5469_v49 = vmul.f32 %v5388_v25, %v5388_v25 }
 0x2db   : > { %v5273_v27 = vpop.permute.xlu1 %5272  ;;  %v5268_v28 = vpop.permute.xlu0 %5267 }
 0x2dc   : > { %v5502_v32 = vadd.f32 %v5501_v24, %v5467_v21  ;;  %v5423_v41 = vadd.f32 %v5422_v26, %v5387_v19  ;;  %v5389_v45 = vmul.f32 %v7870_v59, %v5268_v28  ;;  %v5390_v55 = vmul.f32 %v7874_v62, %v5273_v27 }
 0x2de   : > { %v5503_v53 = vadd.f32 %v5502_v32, %v5468_v37  ;;  %v5424_v58 = vadd.f32 %v5423_v41, %v5388_v25  ;;  %v5470_v6 = vmul.f32 %v5389_v45, %v5389_v45  ;;  %v5471_v10 = vmul.f32 %v5390_v55, %v5390_v55 }
 0x2df   : > { %v5283_v61 = vpop.permute.xlu1 %5282  ;;  %v5278_v0 = vpop.permute.xlu0 %5277 }
 0x2e0   : > { %v5504_v1 = vadd.f32 %v5503_v53, %v5469_v49  ;;  %v5425_v4 = vadd.f32 %v5424_v58, %v5389_v45  ;;  %v5391_v36 = vmul.f32 %v7880_v8, %v5278_v0  ;;  %v5392_v13 = vmul.f32 %v7884_v11, %v5283_v61 }
 0x2e2   : > { %v5505_v12 = vadd.f32 %v5504_v1, %v5470_v6  ;;  %v5426_v14 = vadd.f32 %v5425_v4, %v5390_v55  ;;  %v5472_v21 = vmul.f32 %v5391_v36, %v5391_v36  ;;  %v5473_v25 = vmul.f32 %v5392_v13, %v5392_v13 }
 0x2e3   : > { %v5293_v15 = vpop.permute.xlu1 %5292  ;;  %v5288_v16 = vpop.permute.xlu0 %5287 }
 0x2e4   : > { %v5506_v17 = vadd.f32 %v5505_v12, %v5471_v10  ;;  %v5427_v19 = vadd.f32 %v5426_v14, %v5391_v36  ;;  %v5393_v24 = vmul.f32 %v7878_v5, %v5288_v16  ;;  %v5394_v27 = vmul.f32 %v7882_v9, %v5293_v15 }
 0x2e6   : > { %v5507_v26 = vadd.f32 %v5506_v17, %v5472_v21  ;;  %v5428_v28 = vadd.f32 %v5427_v19, %v5392_v13  ;;  %v5474_v49 = vmul.f32 %v5393_v24, %v5393_v24  ;;  %v5475_v55 = vmul.f32 %v5394_v27, %v5394_v27 }
 0x2e7   : > { %v5303_v32 = vpop.permute.xlu1 %5302  ;;  %v5298_v41 = vpop.permute.xlu0 %5297 }
 0x2e8   : > { %v5508_v37 = vadd.f32 %v5507_v26, %v5473_v25  ;;  %v5429_v45 = vadd.f32 %v5428_v28, %v5393_v24  ;;  %v5395_v53 = vmul.f32 %v7888_v18, %v5298_v41  ;;  %v5396_v61 = vmul.f32 %v7892_v23, %v5303_v32 }
 0x2ea   : > { %v5509_v58 = vadd.f32 %v5508_v37, %v5474_v49  ;;  %v5430_v0 = vadd.f32 %v5429_v45, %v5394_v27  ;;  %v5476_v10 = vmul.f32 %v5395_v53, %v5395_v53  ;;  %v5477_v13 = vmul.f32 %v5396_v61, %v5396_v61 }
 0x2eb   : > { %v5313_v1 = vpop.permute.xlu1 %5312  ;;  %v5308_v4 = vpop.permute.xlu0 %5307 }
 0x2ec   : > { %v5510_v6 = vadd.f32 %v5509_v58, %v5475_v55  ;;  %v5431_v36 = vadd.f32 %v5430_v0, %v5395_v53  ;;  %v5397_v12 = vmul.f32 %v7886_v22, %v5308_v4  ;;  %v5398_v15 = vmul.f32 %v7890_v20, %v5313_v1 }
 0x2ee   : > { %v5511_v14 = vadd.f32 %v5510_v6, %v5476_v10  ;;  %v5432_v16 = vadd.f32 %v5431_v36, %v5396_v61  ;;  %v5478_v25 = vmul.f32 %v5397_v12, %v5397_v12  ;;  %v5479_v27 = vmul.f32 %v5398_v15, %v5398_v15 }
 0x2ef   : > { %v5323_v17 = vpop.permute.xlu1 %5322  ;;  %v5318_v19 = vpop.permute.xlu0 %5317 }
 0x2f0   : > { %v5512_v21 = vadd.f32 %v5511_v14, %v5477_v13  ;;  %v5433_v24 = vadd.f32 %v5432_v16, %v5397_v12  ;;  %v5399_v26 = vmul.f32 %v7896_v34, %v5318_v19  ;;  %v5400_v32 = vmul.f32 %v7900_v43, %v5323_v17 }
 0x2f2   : > { %v5513_v28 = vadd.f32 %v5512_v21, %v5478_v25  ;;  %v5434_v41 = vadd.f32 %v5433_v24, %v5398_v15  ;;  %v5480_v55 = vmul.f32 %v5399_v26, %v5399_v26  ;;  %v5481_v61 = vmul.f32 %v5400_v32, %v5400_v32 }
 0x2f3   : > { %v5333_v37 = vpop.permute.xlu1 %5332  ;;  %v5328_v45 = vpop.permute.xlu0 %5327 }
 0x2f4   : > { %v5514_v49 = vadd.f32 %v5513_v28, %v5479_v27  ;;  %v5435_v53 = vadd.f32 %v5434_v41, %v5399_v26  ;;  %v5401_v58 = vmul.f32 %v7894_v30, %v5328_v45  ;;  %v5402_v1 = vmul.f32 %v7898_v7, %v5333_v37 }
 0x2f6   : > { %v5515_v0 = vadd.f32 %v5514_v49, %v5480_v55  ;;  %v5436_v4 = vadd.f32 %v5435_v53, %v5400_v32  ;;  %v5482_v13 = vmul.f32 %v5401_v58, %v5401_v58  ;;  %v5483_v15 = vmul.f32 %v5402_v1, %v5402_v1 }
 0x2f7   : > { %v5343_v6 = vpop.permute.xlu1 %5342  ;;  %v5338_v36 = vpop.permute.xlu0 %5337 }
 0x2f8   : > { %v5516_v10 = vadd.f32 %v5515_v0, %v5481_v61  ;;  %v5437_v12 = vadd.f32 %v5436_v4, %v5401_v58  ;;  %v5403_v14 = vmul.f32 %v7904_v51, %v5338_v36  ;;  %v5404_v17 = vmul.f32 %v7908_v56, %v5343_v6 }
 0x2fa   : > { %v5517_v16 = vadd.f32 %v5516_v10, %v5482_v13  ;;  %v5438_v19 = vadd.f32 %v5437_v12, %v5402_v1  ;;  %v5484_v27 = vmul.f32 %v5403_v14, %v5403_v14  ;;  %v5485_v32 = vmul.f32 %v5404_v17, %v5404_v17 }
 0x2fb   : > { %v5353_v21 = vpop.permute.xlu1 %5352  ;;  %v5348_v24 = vpop.permute.xlu0 %5347 }
 0x2fc   : > { %v5518_v25 = vadd.f32 %v5517_v16, %v5483_v15  ;;  %v5439_v26 = vadd.f32 %v5438_v19, %v5403_v14  ;;  %v5405_v28 = vmul.f32 %v7902_v47, %v5348_v24  ;;  %v5406_v37 = vmul.f32 %v7906_v54, %v5353_v21 }
 0x2fe   : > { %v5519_v41 = vadd.f32 %v5518_v25, %v5484_v27  ;;  %v5440_v45 = vadd.f32 %v5439_v26, %v5404_v17  ;;  %v5486_v61 = vmul.f32 %v5405_v28, %v5405_v28  ;;  %v5487_v1 = vmul.f32 %v5406_v37, %v5406_v37 }
 0x2ff   : > { %v5363_v49 = vpop.permute.xlu1 %5362  ;;  %v5358_v53 = vpop.permute.xlu0 %5357 }
 0x300   : > { %v5520_v55 = vadd.f32 %v5519_v41, %v5485_v32  ;;  %v5441_v58 = vadd.f32 %v5440_v45, %v5405_v28  ;;  %v5407_v0 = vmul.f32 %v7912_v63, %v5358_v53  ;;  %v5408_v6 = vmul.f32 %v7916_v2, %v5363_v49 }
 0x302   : > { %v5521_v4 = vadd.f32 %v5520_v55, %v5486_v61  ;;  %v5442_v36 = vadd.f32 %v5441_v58, %v5406_v37  ;;  %v5488_v15 = vmul.f32 %v5407_v0, %v5407_v0  ;;  %v5489_v17 = vmul.f32 %v5408_v6, %v5408_v6 }
 0x303   : > { %v5373_v10 = vpop.permute.xlu1 %5372  ;;  %v5368_v12 = vpop.permute.xlu0 %5367 }
 0x304   : > { %v5522_v13 = vadd.f32 %v5521_v4, %v5487_v1  ;;  %v5443_v14 = vadd.f32 %v5442_v36, %v5407_v0  ;;  %v5409_v16 = vmul.f32 %v7910_v40, %v5368_v12  ;;  %v5410_v21 = vmul.f32 %v7914_v38, %v5373_v10  ;;  %v5411_v36 = vld [vmem:[#allocation3] sm:$0x1] }
 0x306   : > { %v5523_v19 = vadd.f32 %v5522_v13, %v5488_v15  ;;  %v5444_v24 = vadd.f32 %v5443_v14, %v5408_v6  ;;  %v5490_v27 = vmul.f32 %v5409_v16, %v5409_v16  ;;  %v5491_v28 = vmul.f32 %v5410_v21, %v5410_v21  ;;  %v5455_v6 = vld [vmem:[#allocation4] sm:$0x1] }
 0x308   : > { %v5524_v25 = vadd.f32 %v5523_v19, %v5489_v17  ;;  %v5445_v26 = vadd.f32 %v5444_v24, %v5409_v16 }
 0x30a   : > { %v5446_v32 = vadd.f32 %v5445_v26, %v5410_v21  ;;  %v5525_v41 = vadd.f32 %v5524_v25, %v5490_v27  ;;  %v5547_v27 = vld [vmem:[%s8237_s2] sm:$0x1] (!%p6135_p9) }
 0x30c   : > { %v5447_v45 = vrot.slane %v5446_v32, 4  ;;  %v5526_v37 = vadd.f32 %v5525_v41, %v5491_v28  ;;  %v5550_v41 = vld [vmem:[%s8238_s3] sm:$0x1] (!%p6135_p9) }
 0x30e   : > { %v5448_v49 = vadd.f32 %v5447_v45, %v5446_v32  ;;  %v5527_v53 = vrot.slane %v5526_v37, 4 }
 0x310   : > { %v5449_v55 = vrot.slane %v5448_v49, 2  ;;  %v5528_v58 = vadd.f32 %v5527_v53, %v5526_v37 }
 0x312   : > { %v5450_v61 = vadd.f32 %v5449_v55, %v5448_v49  ;;  %v5529_v0 = vrot.slane %v5528_v58, 2 }
 0x314   : > { %v5451_v1 = vrot.slane %v5450_v61, 1  ;;  %v5530_v4 = vadd.f32 %v5529_v0, %v5528_v58 }
 0x316   : > { %v5452_v12 = vadd.f32 %v5451_v1, %v5450_v61  ;;  %v5531_v10 = vrot.slane %v5530_v4, 1  ;;  %5538 = sbr.rel (%p6135_p9) target bundleno = 828 (0x33c), region = 52 }
 0x318   : > { %v5453_v13 = vadd.f32 %v5452_v12, %v5411_v36  ;;  %v5532_v14 = vadd.f32 %v5531_v10, %v5530_v4 }
 0x31a   : > { %5454 = vst [vmem:[#allocation3] sm:$0x1] %v5453_v13  ;;  %v5533_v15 = vadd.f32 %v5532_v14, %v5455_v6 }
 0x31c   : > { %5534 = vst [vmem:[#allocation4] sm:$0x1] %v5533_v15 }
 0x321   : > { %v5539_v16 = vld [vmem:[#allocation3] sm:$0x1] }
 0x322   : > { %v5540_v19 = vmul.f32 0.001953125, %v5539_v16 }
 0x323   : > { %v5541_v17 = vld [vmem:[#allocation4] sm:$0x1] }
 0x324   : > { %v5542_v21 = vmul.f32 0.001953125, %v5541_v17  ;;  %v5543_v24 = vmul.f32 %v5540_v19, %v5540_v19 }
 0x326   : > { %v5544_v25 = vsub.f32 %v5542_v21, %v5543_v24 }
 0x328   : > { %v5545_v26 = vadd.f32 1e-05, %v5544_v25 }
 0x32a   : > { %7171 = vrsqrt.f32 %v5545_v26 }
 0x334   : > { %v7172_v28 = vpop.eup %7171 }
 0x335   : > { %v5548_v32 = vmul.f32 %v7172_v28, %v5547_v27 }
 0x337   : > { %5549 = vst [vmem:[#allocation5] sm:$0x1] %v5548_v32  ;;  %v5551_v45 = vmul.f32 %v5548_v32, %v5540_v19 }
 0x339   : > { %v5552_v37 = vsub.f32 %v5550_v41, %v5551_v45 }
 0x33b   : > { %5553 = vst [vmem:[#allocation6] sm:$0x1] %v5552_v37 }
 0x33c PF: > { %p6136_p10 = scmp.ne.s32.totalorder %s7199_s19, 1 }
 0x33e   : > { %5557 = sbr.rel (%p6136_p10) target bundleno = 865 (0x361), region = 56  ;;  %v8072_v49 = vld [vmem:[#allocation5] ss:$0 sm:$0xff] (!%p6136_p10) }
 0x33f   : > { %v5565_v55 = vmul.f32 (!%p6136_p10), %v7848_v31, %v8072_v49  ;;  %v5566_v58 = vmul.f32 (!%p6136_p10), %v7852_v35, %v8072_v49  ;;  %v5567_v61 = vmul.f32 (!%p6136_p10), %v7846_v29, %v8072_v49  ;;  %v5568_v0 = vmul.f32 (!%p6136_p10), %v7850_v33, %v8072_v49 }
 0x340   : > { %v5569_v1 = vmul.f32 (!%p6136_p10), %v7856_v57, %v8072_v49  ;;  %v5570_v4 = vmul.f32 (!%p6136_p10), %v7860_v44, %v8072_v49  ;;  %v5571_v36 = vmul.f32 (!%p6136_p10), %v7854_v39, %v8072_v49  ;;  %v5572_v31 = vmul.f32 (!%p6136_p10), %v7858_v42, %v8072_v49 }
 0x341   : > { %v5573_v21 = vmul.f32 (!%p6136_p10), %v7864_v48, %v8072_v49  ;;  %v5574_v24 = vmul.f32 (!%p6136_p10), %v7868_v52, %v8072_v49  ;;  %v5575_v25 = vmul.f32 (!%p6136_p10), %v7862_v46, %v8072_v49  ;;  %v5576_v26 = vmul.f32 (!%p6136_p10), %v7866_v50, %v8072_v49 }
 0x342   : > { %v8074_v53 = vld [vmem:[#allocation6] ss:$0 sm:$0xff] (!%p6136_p10)  ;;  %v5577_v27 = vmul.f32 (!%p6136_p10), %v7872_v60, %v8072_v49  ;;  %v5578_v28 = vmul.f32 (!%p6136_p10), %v7876_v3, %v8072_v49  ;;  %v5579_v48 = vmul.f32 (!%p6136_p10), %v7870_v59, %v8072_v49  ;;  %v5580_v52 = vmul.f32 (!%p6136_p10), %v7874_v62, %v8072_v49 }
 0x343   : > { %v5608_v35 = vadd.f32 (!%p6136_p10), %v8074_v53, %v5565_v55  ;;  %v5609_v29 = vadd.f32 (!%p6136_p10), %v8074_v53, %v5566_v58  ;;  %v5610_v33 = vadd.f32 (!%p6136_p10), %v8074_v53, %v5567_v61  ;;  %v5611_v57 = vadd.f32 (!%p6136_p10), %v8074_v53, %v5568_v0 }
 0x344   : > { %v5612_v44 = vadd.f32 (!%p6136_p10), %v8074_v53, %v5569_v1  ;;  %v5613_v12 = vadd.f32 (!%p6136_p10), %v8074_v53, %v5570_v4  ;;  %v5614_v39 = vadd.f32 (!%p6136_p10), %v8074_v53, %v5571_v36  ;;  %v5615_v42 = vadd.f32 (!%p6136_p10), %v8074_v53, %v5572_v31 }
 0x345   : > { %v5644_v10 = vmax.f32 %v5608_v35, 0.0  ;;  %v5645_v6 = vmax.f32 %v5609_v29, 0.0  ;;  %v5646_v13 = vmax.f32 %v5610_v33, 0.0  ;;  %v5647_v14 = vmax.f32 %v5611_v57, 0.0 }
 0x346   : > { %v5648_v15 = vmax.f32 %v5612_v44, 0.0  ;;  %v5649_v16 = vmax.f32 %v5613_v12, 0.0  ;;  %v5650_v17 = vmax.f32 %v5614_v39, 0.0  ;;  %v5651_v19 = vmax.f32 %v5615_v42, 0.0 }
 0x347   : > { %5680 = vst [vmem:[%s7312_s17] sm:$0xff] %v5644_v10  ;;  %5681 = vst [vmem:[%s7312_s17 + $0x8] sm:$0xff] %v5645_v6  ;;  %v5616_v46 = vadd.f32 %v8074_v53, %v5573_v21  ;;  %v5617_v50 = vadd.f32 %v8074_v53, %v5574_v24  ;;  %v5618_v32 = vadd.f32 %v8074_v53, %v5575_v25 }
 0x348   : > { %5682 = vst [vmem:[%s7312_s17 + $0x10] sm:$0xff] %v5646_v13  ;;  %5683 = vst [vmem:[%s7312_s17 + $0x18] sm:$0xff] %v5647_v14  ;;  %v5619_v60 = vadd.f32 %v8074_v53, %v5576_v26  ;;  %v5620_v3 = vadd.f32 %v8074_v53, %v5577_v27  ;;  %v5621_v41 = vadd.f32 %v8074_v53, %v5578_v28 }
 0x349   : > { %5684 = vst [vmem:[%s7312_s17 + $0x20] sm:$0xff] %v5648_v15  ;;  %5685 = vst [vmem:[%s7312_s17 + $0x28] sm:$0xff] %v5649_v16  ;;  %v5622_v59 = vadd.f32 %v8074_v53, %v5579_v48  ;;  %v5623_v62 = vadd.f32 %v8074_v53, %v5580_v52  ;;  %v5652_v45 = vmax.f32 %v5616_v46, 0.0  ;;  %v5653_v37 = vmax.f32 %v5617_v50, 0.0 }
 0x34a   : > { %5686 = vst [vmem:[%s7312_s17 + $0x30] sm:$0xff] %v5650_v17  ;;  %5687 = vst [vmem:[%s7312_s17 + $0x38] sm:$0xff] %v5651_v19  ;;  %v5654_v55 = vmax.f32 %v5618_v32, 0.0  ;;  %v5655_v58 = vmax.f32 %v5619_v60, 0.0  ;;  %v5656_v61 = vmax.f32 %v5620_v3, 0.0  ;;  %v5657_v0 = vmax.f32 %v5621_v41, 0.0 }
 0x34b   : > { %v5658_v1 = vmax.f32 %v5622_v59, 0.0  ;;  %v5659_v4 = vmax.f32 %v5623_v62, 0.0  ;;  %5688 = vst [vmem:[%s7312_s17 + $0x40] sm:$0xff] %v5652_v45  ;;  %5689 = vst [vmem:[%s7312_s17 + $0x48] sm:$0xff] %v5653_v37  ;;  %v5581_v36 = vmul.f32 %v7880_v8, %v8072_v49  ;;  %v5582_v31 = vmul.f32 %v7884_v11, %v8072_v49 }
 0x34c   : > { %5690 = vst [vmem:[%s7312_s17 + $0x50] sm:$0xff] %v5654_v55  ;;  %5691 = vst [vmem:[%s7312_s17 + $0x58] sm:$0xff] %v5655_v58  ;;  %v5583_v35 = vmul.f32 %v7878_v5, %v8072_v49  ;;  %v5584_v29 = vmul.f32 %v7882_v9, %v8072_v49  ;;  %v5585_v33 = vmul.f32 %v7888_v18, %v8072_v49 }
 0x34d   : > { %5692 = vst [vmem:[%s7312_s17 + $0x60] sm:$0xff] %v5656_v61  ;;  %5693 = vst [vmem:[%s7312_s17 + $0x68] sm:$0xff] %v5657_v0  ;;  %v5586_v57 = vmul.f32 %v7892_v23, %v8072_v49  ;;  %v5587_v8 = vmul.f32 %v7886_v22, %v8072_v49  ;;  %v5588_v11 = vmul.f32 %v7890_v20, %v8072_v49 }
 0x34e   : > { %5694 = vst [vmem:[%s7312_s17 + $0x70] sm:$0xff] %v5658_v1  ;;  %5695 = vst [vmem:[%s7312_s17 + $0x78] sm:$0xff] %v5659_v4  ;;  %v5624_v5 = vadd.f32 %v8074_v53, %v5581_v36  ;;  %v5625_v9 = vadd.f32 %v8074_v53, %v5582_v31  ;;  %v5626_v44 = vadd.f32 %v8074_v53, %v5583_v35 }
 0x34f   : > { %v5627_v18 = vadd.f32 %v8074_v53, %v5584_v29  ;;  %v5628_v23 = vadd.f32 %v8074_v53, %v5585_v33  ;;  %v5629_v12 = vadd.f32 %v8074_v53, %v5586_v57  ;;  %v5630_v22 = vadd.f32 %v8074_v53, %v5587_v8 }
 0x350   : > { %v5631_v20 = vadd.f32 %v8074_v53, %v5588_v11  ;;  %v5660_v39 = vmax.f32 %v5624_v5, 0.0  ;;  %v5661_v42 = vmax.f32 %v5625_v9, 0.0  ;;  %v5662_v10 = vmax.f32 %v5626_v44, 0.0 }
 0x351   : > { %v5663_v6 = vmax.f32 %v5627_v18, 0.0  ;;  %v5664_v13 = vmax.f32 %v5628_v23, 0.0  ;;  %v5665_v14 = vmax.f32 %v5629_v12, 0.0  ;;  %v5666_v15 = vmax.f32 %v5630_v22, 0.0 }
 0x352   : > { %v5667_v16 = vmax.f32 %v5631_v20, 0.0  ;;  %5696 = vst [vmem:[%s7312_s17 + $0x80] sm:$0xff] %v5660_v39  ;;  %5697 = vst [vmem:[%s7312_s17 + $0x88] sm:$0xff] %v5661_v42  ;;  %v5589_v17 = vmul.f32 %v7896_v34, %v8072_v49  ;;  %v5590_v19 = vmul.f32 %v7900_v43, %v8072_v49  ;;  %v5591_v21 = vmul.f32 %v7894_v30, %v8072_v49 }
 0x353   : > { %5698 = vst [vmem:[%s7312_s17 + $0x90] sm:$0xff] %v5662_v10  ;;  %5699 = vst [vmem:[%s7312_s17 + $0x98] sm:$0xff] %v5663_v6  ;;  %v5592_v24 = vmul.f32 %v7898_v7, %v8072_v49  ;;  %v5593_v25 = vmul.f32 %v7904_v51, %v8072_v49  ;;  %v5594_v26 = vmul.f32 %v7908_v56, %v8072_v49 }
 0x354   : > { %5700 = vst [vmem:[%s7312_s17 + $0xa0] sm:$0xff] %v5664_v13  ;;  %5701 = vst [vmem:[%s7312_s17 + $0xa8] sm:$0xff] %v5665_v14  ;;  %v5595_v34 = vmul.f32 %v7902_v47, %v8072_v49  ;;  %v5596_v43 = vmul.f32 %v7906_v54, %v8072_v49  ;;  %v5632_v30 = vadd.f32 %v8074_v53, %v5589_v17 }
 0x355   : > { %5702 = vst [vmem:[%s7312_s17 + $0xb0] sm:$0xff] %v5666_v15  ;;  %5703 = vst [vmem:[%s7312_s17 + $0xb8] sm:$0xff] %v5667_v16  ;;  %v5633_v7 = vadd.f32 %v8074_v53, %v5590_v19  ;;  %v5634_v27 = vadd.f32 %v8074_v53, %v5591_v21  ;;  %v5635_v51 = vadd.f32 %v8074_v53, %v5592_v24 }
 0x356   : > { %v5636_v56 = vadd.f32 %v8074_v53, %v5593_v25  ;;  %v5637_v28 = vadd.f32 %v8074_v53, %v5594_v26  ;;  %v5638_v47 = vadd.f32 %v8074_v53, %v5595_v34  ;;  %v5639_v54 = vadd.f32 %v8074_v53, %v5596_v43 }
 0x357   : > { %v5668_v48 = vmax.f32 %v5632_v30, 0.0  ;;  %v5669_v52 = vmax.f32 %v5633_v7, 0.0  ;;  %v5670_v46 = vmax.f32 %v5634_v27, 0.0  ;;  %v5671_v50 = vmax.f32 %v5635_v51, 0.0 }
 0x358   : > { %v5672_v32 = vmax.f32 %v5636_v56, 0.0  ;;  %v5673_v60 = vmax.f32 %v5637_v28, 0.0  ;;  %v5674_v3 = vmax.f32 %v5638_v47, 0.0  ;;  %v5675_v41 = vmax.f32 %v5639_v54, 0.0 }
 0x359   : > { %5704 = vst [vmem:[%s7312_s17 + $0xc0] sm:$0xff] %v5668_v48  ;;  %5705 = vst [vmem:[%s7312_s17 + $0xc8] sm:$0xff] %v5669_v52  ;;  %v5597_v59 = vmul.f32 %v7912_v63, %v8072_v49  ;;  %v5598_v62 = vmul.f32 %v7916_v2, %v8072_v49  ;;  %v5599_v45 = vmul.f32 %v7910_v40, %v8072_v49 }
 0x35a   : > { %5706 = vst [vmem:[%s7312_s17 + $0xd0] sm:$0xff] %v5670_v46  ;;  %5707 = vst [vmem:[%s7312_s17 + $0xd8] sm:$0xff] %v5671_v50  ;;  %v5600_v37 = vmul.f32 %v7914_v38, %v8072_v49 }
 0x35b   : > { %5708 = vst [vmem:[%s7312_s17 + $0xe0] sm:$0xff] %v5672_v32  ;;  %5709 = vst [vmem:[%s7312_s17 + $0xe8] sm:$0xff] %v5673_v60  ;;  %v5640_v55 = vadd.f32 %v8074_v53, %v5597_v59  ;;  %v5641_v63 = vadd.f32 %v8074_v53, %v5598_v62  ;;  %v5642_v58 = vadd.f32 %v8074_v53, %v5599_v45 }
 0x35c   : > { %5710 = vst [vmem:[%s7312_s17 + $0xf0] sm:$0xff] %v5674_v3  ;;  %5711 = vst [vmem:[%s7312_s17 + $0xf8] sm:$0xff] %v5675_v41  ;;  %v5643_v2 = vadd.f32 %v8074_v53, %v5600_v37 }
 0x35d   : > { %v5676_v61 = vmax.f32 %v5640_v55, 0.0  ;;  %v5677_v0 = vmax.f32 %v5641_v63, 0.0  ;;  %v5678_v40 = vmax.f32 %v5642_v58, 0.0 }
 0x35e   : > { %v5679_v1 = vmax.f32 %v5643_v2, 0.0 }
 0x35f   : > { %5712 = vst [vmem:[%s7312_s17 + $0x100] sm:$0xff] %v5676_v61  ;;  %5713 = vst [vmem:[%s7312_s17 + $0x108] sm:$0xff] %v5677_v0 }
 0x360   : > { %5714 = vst [vmem:[%s7312_s17 + $0x110] sm:$0xff] %v5678_v40  ;;  %5715 = vst [vmem:[%s7312_s17 + $0x118] sm:$0xff] %v5679_v1 }
 0x361 PF: > { %s15_s22 = sadd.s32 1, %s7211_s22   ;;  %s8241_s18 = smov %s7203_s20 }
 0x362   : > { %p12_p11 = scmp.ge.s32.totalorder %s15_s22, 6   ;;  %s8242_s19 = smov %s7207_s21 }
 0x363   : > { %s8243_s20 = smov %s8246_s23  ;;  %s8244_s21 = smov %s8250_s24 }
 0x364   :  { %14 = sbr.rel (!%p12_p11) target bundleno = 3 (0x3), region = 94 }

</bundles_post_ra>
